<compile_context>
chip_gen: v6e
topology: v6e:2x2x1
jax: 0.10.0
libtpu: 0.0.40
codegen_flags: <defaults>
</compile_context>

<pallas_src>
import functools
import math

import jax
import jax.numpy as jnp
from jax.experimental import pallas as pl
from jax.experimental.pallas import tpu as pltpu

# MXU operand dtype (perf review: bf16 operands on v6e/v7x, f32 accumulate and
# epilogues).  Set to jnp.float32 for exact f32-operand parity with the reference.
MXU_DTYPE = jnp.bfloat16


def _pick_tm(m, cap=256):
    """Largest row tile (multiple of 8) that divides m exactly -> no padding."""
    if m <= cap or m % 8 != 0:
        return m
    best = 8
    t = 16
    while t <= cap:
        if m % t == 0:
            best = t
        t += 8
    return best


# ----------------------------- Pallas kernels ------------------------------

def _matmul_kernel(x_ref, w_ref, b_ref, o_ref, *, activation):
    w = w_ref[...]
    acc = jnp.dot(x_ref[...].astype(w.dtype), w, preferred_element_type=jnp.float32)
    acc = acc + b_ref[...]
    if activation == "relu":
        acc = jnp.maximum(acc, 0.0)
    o_ref[...] = acc.astype(o_ref.dtype)


def pallas_matmul(x, w, b, activation=None):
    """act(x @ w + b). x:(M,K) f32, w:(K,N) MXU dtype, b:(N,). Tiled over M, no pad."""
    M, K = x.shape
    N = w.shape[1]
    TM = _pick_tm(M)
    # TODO(synk): add K-accumulation + N(>=128) tiling before scaling to weights
    #             that no longer fit VMEM (v7x: 64 MiB physical).
    return pl.pallas_call(
        functools.partial(_matmul_kernel, activation=activation),
        out_shape=jax.ShapeDtypeStruct((M, N), jnp.float32),
        grid=(M // TM,),
        in_specs=[pl.BlockSpec((TM, K), lambda i: (i, 0)),
                  pl.BlockSpec((K, N), lambda i: (0, 0)),
                  pl.BlockSpec((1, N), lambda i: (0, 0))],
        out_specs=pl.BlockSpec((TM, N), lambda i: (i, 0)),
        compiler_params=pltpu.CompilerParams(dimension_semantics=("parallel",)),
    )(x, w, b.reshape(1, N).astype(jnp.float32))


def _matmul_res_ln_kernel(x_ref, w_ref, b_ref, r_ref, g_ref, beta_ref, o_ref,
                          *, half, eps):
    w = w_ref[...]
    y = jnp.dot(x_ref[...].astype(w.dtype), w, preferred_element_type=jnp.float32)
    h = y + b_ref[...] + r_ref[...]

    def norm(t):
        mu = jnp.mean(t, axis=-1, keepdims=True)
        var = jnp.mean(jnp.square(t - mu), axis=-1, keepdims=True)
        return (t - mu) * jax.lax.rsqrt(var + eps)

    hn = jnp.concatenate([norm(h[:, :half]), norm(h[:, half:])], axis=-1)
    o_ref[...] = (hn * g_ref[...] + beta_ref[...]).astype(o_ref.dtype)


def pallas_matmul_res_ln(x, w, b, res, gamma, beta, eps=1e-5):
    """LayerNorm_{a,b}(res + x @ w + b): complex linear + residual + per-half LN."""
    M, K = x.shape
    N = w.shape[1]
    TM = _pick_tm(M)
    row = lambda v: v.reshape(1, N).astype(jnp.float32)
    return pl.pallas_call(
        functools.partial(_matmul_res_ln_kernel, half=N // 2, eps=eps),
        out_shape=jax.ShapeDtypeStruct((M, N), jnp.float32),
        grid=(M // TM,),
        in_specs=[pl.BlockSpec((TM, K), lambda i: (i, 0)),
                  pl.BlockSpec((K, N), lambda i: (0, 0)),
                  pl.BlockSpec((1, N), lambda i: (0, 0)),
                  pl.BlockSpec((TM, N), lambda i: (i, 0)),
                  pl.BlockSpec((1, N), lambda i: (0, 0)),
                  pl.BlockSpec((1, N), lambda i: (0, 0))],
        out_specs=pl.BlockSpec((TM, N), lambda i: (i, 0)),
        compiler_params=pltpu.CompilerParams(dimension_semantics=("parallel",)),
    )(x, w, row(b), res, row(gamma), row(beta))


def _conv_bn_relu_pool_kernel(xe_ref, xo_ref, w_ref, b_ref, o_ref):
    w = w_ref[...]
    b = b_ref[...]
    ye = jnp.maximum(jnp.dot(xe_ref[...].astype(w.dtype), w,
                             preferred_element_type=jnp.float32) + b, 0.0)
    yo = jnp.maximum(jnp.dot(xo_ref[...].astype(w.dtype), w,
                             preferred_element_type=jnp.float32) + b, 0.0)
    o_ref[...] = jnp.maximum(ye, yo).astype(o_ref.dtype)   # fused MaxPool(2,2)


def pallas_conv_bn_relu_pool(xe, xo, w, b):
    """Conv-as-matmul on even/odd im2col patches + folded BN + ReLU + MaxPool(2,2)."""
    M, K = xe.shape
    N = w.shape[1]
    TM = _pick_tm(M)
    return pl.pallas_call(
        _conv_bn_relu_pool_kernel,
        out_shape=jax.ShapeDtypeStruct((M, N), jnp.float32),
        grid=(M // TM,),
        in_specs=[pl.BlockSpec((TM, K), lambda i: (i, 0)),
                  pl.BlockSpec((TM, K), lambda i: (i, 0)),
                  pl.BlockSpec((K, N), lambda i: (0, 0)),
                  pl.BlockSpec((1, N), lambda i: (0, 0))],
        out_specs=pl.BlockSpec((TM, N), lambda i: (i, 0)),
        compiler_params=pltpu.CompilerParams(dimension_semantics=("parallel",)),
    )(xe, xo, w, b.reshape(1, N).astype(jnp.float32))


def _complex_attn_kernel(q_ref, k_ref, v_ref, o_ref):
    q = q_ref[...].astype(MXU_DTYPE)          # (BT, 2S, Dh): [qa; qb] along seq
    k = k_ref[...].astype(MXU_DTYPE)          # (BT, 2S, Dh): [ka; kb]
    v = v_ref[...]                            # (BT, 2S, Dh): [va; vb], f32
    S = q.shape[1] // 2
    # ONE stacked score matmul -> 4 SxS blocks [[Saa,Sab],[Sba,Sbb]]
    s = jnp.einsum('bqd,bkd->bqk', q, k, preferred_element_type=jnp.float32)

    def softmax(t):
        m = jnp.max(t, axis=-1, keepdims=True)
        e = jnp.exp(t - m)
        return e / jnp.sum(e, axis=-1, keepdims=True)

    A = softmax(s[:, :S, :S]) - softmax(s[:, S:, S:])     # Paa - Pbb
    Bm = softmax(s[:, :S, S:]) + softmax(s[:, S:, :S])    # Pab + Pba
    P = jnp.concatenate([A, Bm], axis=-1)                 # (BT, S, 2S)
    va, vb = v[:, :S, :], v[:, S:, :]
    vblk = jnp.concatenate(
        [jnp.concatenate([va, vb], axis=-1),
         jnp.concatenate([-vb, va], axis=-1)], axis=1)    # (BT, 2S, 2Dh)
    # ONE stacked output matmul -> [oa | ob]
    o = jnp.einsum('bqk,bkd->bqd', P.astype(MXU_DTYPE), vblk.astype(MXU_DTYPE),
                   preferred_element_type=jnp.float32)
    o_ref[...] = o.astype(o_ref.dtype)


def pallas_complex_attention(q2, k2, v2):
    """q2/k2/v2: (BH, 2S, Dh) with re stacked over im along seq. Returns (BH, S, 2Dh)."""
    BH, S2, Dh = q2.shape
    S = S2 // 2
    BT = BH // 2 if BH % 2 == 0 else BH       # >=2 grid steps -> both v7x TCs busy
    # TODO(synk): switch to online-softmax KV tiling if S grows (v7x VMEM = 64 MiB).
    return pl.pallas_call(
        _complex_attn_kernel,
        out_shape=jax.ShapeDtypeStruct((BH, S, 2 * Dh), jnp.float32),
        grid=(BH // BT,),
        in_specs=[pl.BlockSpec((BT, S2, Dh), lambda i: (i, 0, 0))] * 3,
        out_specs=pl.BlockSpec((BT, S, 2 * Dh), lambda i: (i, 0, 0)),
        compiler_params=pltpu.CompilerParams(dimension_semantics=("parallel",)),
    )(q2, k2, v2)


# ------------------------------ model glue ---------------------------------

def layer_norm(x, g, b, eps=1e-5):
    mu = jnp.mean(x, axis=-1, keepdims=True)
    var = jnp.mean(jnp.square(x - mu), axis=-1, keepdims=True)
    return (x - mu) * jax.lax.rsqrt(var + eps) * g + b


def conv_stack(z, conv_params):
    """5x fused (ComplexConv1d + eval-BN + ReLU + MaxPool(2,2)).
    z: (B, L, 2*cin) with channels [re | im]."""
    for p in conv_params:
        w, b = p["w"], p["b"]
        B, L, C = z.shape                 # static shapes at trace time
        k = w.shape[0] // C               # kernel size derived from shapes (static)
        Lout = L - k + 1
        Lp = Lout // 2                    # pooled length

        def patches(start):               # strided im2col; feature layout (c, kk)
            cols = jnp.stack(
                [z[:, start + kk::2, :][:, :Lp, :] for kk in range(k)], axis=-1)
            return cols.reshape(B * Lp, C * k)

        y = pallas_conv_bn_relu_pool(patches(0), patches(1), w, b)
        z = y.reshape(B, Lp, -1)
    return z


def encoder(hf, L, N, params, num_heads):
    """hf: (L*N, 2E) stacked [a | b]. Returns (L*N, 2E)."""
    B, E2 = hf.shape
    E = E2 // 2
    H = num_heads
    Dh = E // H
    for lp in params["enc"]:
        # fused complex Q,K,V projection (q-scale pre-folded):
        # (B, 6E) with layout [qa | qb | ka | kb | va | vb]
        qkv = pallas_matmul(hf, lp["wqkv"], lp["bqkv"])
        qkv = (qkv.reshape(L, N, 3, 2, H, Dh)
                  .transpose(2, 1, 4, 3, 0, 5)
                  .reshape(3, N * H, 2 * L, Dh))
        o = pallas_complex_attention(qkv[0], qkv[1], qkv[2])       # (N*H, L, 2Dh)
        attn = (o.reshape(N, H, L, 2, Dh)
                 .transpose(2, 0, 3, 1, 4)
                 .reshape(B, E2))
        # attn/res dropout: identity (eval).  out-proj + residual + dual LN fused:
        hf = pallas_matmul_res_ln(attn, lp["wo"], lp["bo"], hf, lp["g1"], lp["bt1"])
        # FFN (relu-dropout identity); f2 + residual + dual LN fused:
        f = pallas_matmul(hf, lp["wf1"], lp["bf1"], activation="relu")
        hf = pallas_matmul_res_ln(f, lp["wf2"], lp["bf2"], hf, lp["g2"], lp["bt2"])
    a = layer_norm(hf[:, :E], params["lnfa_g"], params["lnfa_b"])
    b = layer_norm(hf[:, E:], params["lnfb_g"], params["lnfb_b"])
    return jnp.concatenate([a, b], axis=-1)


def transformer_model_forward(params, x, num_heads):
    """x: (time_step L, batch N, n_features F), F = 2*d.  Returns (L, N, output_dim)."""
    L, N, F = x.shape
    d = F // 2
    B = L * N
    a = x[..., :d].reshape(B, d, 1)
    b = x[..., d:].reshape(B, d, 1)
    z = jnp.concatenate([a, b], axis=-1)            # (B, d, 2) channels [re | im]
    z = conv_stack(z, params["conv"])               # (B, Lf, 2*128), Lf == 1
    cout = z.shape[-1] // 2
    # ComplexFlatten: (B, C, Lf) -> (B, C*Lf) per component
    ha = jnp.transpose(z[..., :cout], (0, 2, 1)).reshape(B, -1)
    hb = jnp.transpose(z[..., cout:], (0, 2, 1)).reshape(B, -1)
    hs = jnp.concatenate([ha, hb], axis=-1)         # (B, 2*d_a)
    p = pallas_matmul(hs, params["proj_w"], params["proj_b"])  # ComplexLinear(+embed_scale)
    h = encoder(p, L, N, params, num_heads)         # (B, 2E) = [h_as | h_bs]
    h1 = pallas_matmul(h, params["fc1_w"], params["fc1_b"], activation="relu")
    # out_dropout: identity in eval mode
    out = pallas_matmul(h1, params["fc2_w"], params["fc2_b"])
    return out.reshape(L, N, -1)


# --------------------------- deterministic init -----------------------------

def _uniform(key, shape, bound):
    return jax.random.uniform(key, shape, jnp.float32, -bound, bound)


def init_params(key, embed_dim, hidden_size, output_dim, layers):
    """PyTorch-layout parameters (complex parts separate, BN running stats)."""
    keys = iter(jax.random.split(key, 128))
    nxt = lambda: next(keys)

    conv_cfg = [(1, 16, 6), (16, 32, 3), (32, 64, 3), (64, 64, 3), (64, 128, 3)]
    conv = []
    for cin, cout, k in conv_cfg:
        fan = cin * k
        bnd = 1.0 / math.sqrt(fan)
        conv.append(dict(
            wr=_uniform(nxt(), (fan, cout), bnd), wi=_uniform(nxt(), (fan, cout), bnd),
            br=_uniform(nxt(), (cout,), bnd), bi=_uniform(nxt(), (cout,), bnd),
            gamma=1.0 + 0.1 * jax.random.normal(nxt(), (2 * cout,), jnp.float32),
            beta=0.1 * jax.random.normal(nxt(), (2 * cout,), jnp.float32),
            mean=jnp.zeros((2 * cout,), jnp.float32),
            var=jnp.ones((2 * cout,), jnp.float32)))

    d_a = 128   # 128 * channels; channels == 1 for orig_d_a == 97

    def clin(kin, kout):
        bnd = 1.0 / math.sqrt(kin)
        return dict(wr=_uniform(nxt(), (kin, kout), bnd),
                    wi=_uniform(nxt(), (kin, kout), bnd),
                    br=_uniform(nxt(), (kout,), bnd),
                    bi=_uniform(nxt(), (kout,), bnd))

    def ln():
        return dict(g=jnp.ones((embed_dim,), jnp.float32),
                    b=jnp.zeros((embed_dim,), jnp.float32))

    ffn = 4 * embed_dim
    enc = [dict(q=clin(embed_dim, embed_dim), k=clin(embed_dim, embed_dim),
                v=clin(embed_dim, embed_dim), o=clin(embed_dim, embed_dim),
                f1=clin(embed_dim, ffn), f2=clin(ffn, embed_dim),
                ln1a=ln(), ln1b=ln(), ln2a=ln(), ln2b=ln())
           for _ in range(layers)]

    bnd1 = 1.0 / math.sqrt(2 * embed_dim)
    fc1 = dict(w=_uniform(nxt(), (2 * embed_dim, hidden_size), bnd1),
               b=_uniform(nxt(), (hidden_size,), bnd1))
    bnd2 = 1.0 / math.sqrt(hidden_size)
    fc2 = dict(w=_uniform(nxt(), (hidden_size, output_dim), bnd2),
               b=_uniform(nxt(), (output_dim,), bnd2))

    return dict(conv=conv, proj=clin(d_a, embed_dim), enc=enc,
                lnfa=ln(), lnfb=ln(), fc1=fc1, fc2=fc2)


def prepare_params(raw, embed_dim, num_heads, eps=1e-5):
    """Eager (outside jit) weight prep: block-structured complex weights
    [[Wr, Wi], [-Wi, Wr]], QKV fusion, q-scale / embed-scale / eval-BN folds,
    MXU-dtype weight casts.  The jitted forward sees only arrays (no Python
    ints in the pytree -> no TracerIntegerConversionError)."""
    def bw(p):   # block-structured complex weight (2K, 2N)
        return jnp.concatenate(
            [jnp.concatenate([p["wr"], p["wi"]], axis=1),
             jnp.concatenate([-p["wi"], p["wr"]], axis=1)], axis=0)

    def bb(p):   # stacked complex bias (2N,)
        return jnp.concatenate([p["br"], p["bi"]])

    conv = []
    for p in raw["conv"]:
        # eval-mode BN fold: scale = gamma/sqrt(var+eps), shift = beta - mean*scale
        # TODO(synk): full complex-whitening BN (2x2 covariance) not reproduced.
        scale = p["gamma"] * jax.lax.rsqrt(p["var"] + eps)
        shift = p["beta"] - p["mean"] * scale
        conv.append(dict(w=(bw(p) * scale[None, :]).astype(MXU_DTYPE),
                         b=(bb(p) * scale + shift).astype(jnp.float32)))

    E = embed_dim
    qscale = 1.0 / math.sqrt(E // num_heads)
    enc = []
    for lp in raw["enc"]:
        wqkv = jnp.concatenate([bw(lp["q"]) * qscale, bw(lp["k"]), bw(lp["v"])], axis=1)
        bqkv = jnp.concatenate([bb(lp["q"]) * qscale, bb(lp["k"]), bb(lp["v"])])
        enc.append(dict(
            wqkv=wqkv.astype(MXU_DTYPE), bqkv=bqkv,
            wo=bw(lp["o"]).astype(MXU_DTYPE), bo=bb(lp["o"]),
            wf1=bw(lp["f1"]).astype(MXU_DTYPE), bf1=bb(lp["f1"]),
            wf2=bw(lp["f2"]).astype(MXU_DTYPE), bf2=bb(lp["f2"]),
            g1=jnp.concatenate([lp["ln1a"]["g"], lp["ln1b"]["g"]]),
            bt1=jnp.concatenate([lp["ln1a"]["b"], lp["ln1b"]["b"]]),
            g2=jnp.concatenate([lp["ln2a"]["g"], lp["ln2b"]["g"]]),
            bt2=jnp.concatenate([lp["ln2a"]["b"], lp["ln2b"]["b"]])))

    embed_scale = math.sqrt(E)   # encoder input scale, folded into proj
    return dict(
        conv=conv,
        proj_w=(bw(raw["proj"]) * embed_scale).astype(MXU_DTYPE),
        proj_b=bb(raw["proj"]) * embed_scale,
        enc=enc,
        lnfa_g=raw["lnfa"]["g"], lnfa_b=raw["lnfa"]["b"],
        lnfb_g=raw["lnfb"]["g"], lnfb_b=raw["lnfb"]["b"],
        fc1_w=raw["fc1"]["w"].astype(MXU_DTYPE), fc1_b=raw["fc1"]["b"],
        fc2_w=raw["fc2"]["w"].astype(MXU_DTYPE), fc2_b=raw["fc2"]["b"])


# ----------------------------------- main -----------------------------------

if __name__ == "__main__":
    time_step, batch = 4, 2
    d = 97                       # per-modality feature dim -> conv length 97, channels=1
    n_features = 2 * d           # input_dims = [97, 97]
    embed_dim, hidden_size, output_dim = 32, 32, 16
    num_heads, layers = 4, 2

    key = jax.random.PRNGKey(0)
    pkey, xkey = jax.random.split(key)
    raw = init_params(pkey, embed_dim, hidden_size, output_dim, layers)
    params = prepare_params(raw, embed_dim, num_heads)
    x = jax.random.normal(xkey, (time_step, batch, n_features), jnp.float32)

    fwd = jax.jit(functools.partial(transformer_model_forward, num_heads=num_heads))
    out = fwd(params, x)
    jax.block_until_ready(out)
    assert out.shape == (time_step, batch, output_dim), out.shape
    assert bool(jnp.all(jnp.isfinite(out)))
    print("KERNEL_OK")
</pallas_src>

<mosaic_0001>
module attributes {stable_mosaic.version = 11 : i64} {
  func.func @_conv_bn_relu_pool_kernel(%arg0: i32, %arg1: memref<184x12xf32, #tpu.memory_space<vmem>>, %arg2: memref<184x12xf32, #tpu.memory_space<vmem>>, %arg3: memref<12x32xbf16, #tpu.memory_space<vmem>>, %arg4: memref<1x32xf32, #tpu.memory_space<vmem>>, %arg5: memref<184x32xf32, #tpu.memory_space<vmem>>) attributes {dimension_semantics = [#tpu.dimension_semantics<parallel>], iteration_bounds = array<i64: 2>, scalar_prefetch = 0 : i64, scratch_operands = 0 : i64, tpu.core_type = #tpu.core_type<tc>, window_params = [{transform_indices = @transform_0, window_bounds = array<i64: 184, 12>}, {transform_indices = @transform_1, window_bounds = array<i64: 184, 12>}, {pipeline_mode = #tpu.pipeline_mode<synchronous>, transform_indices = @transform_2, window_bounds = array<i64: 12, 32>}, {pipeline_mode = #tpu.pipeline_mode<synchronous>, transform_indices = @transform_3, window_bounds = array<i64: 1, 32>}, {transform_indices = @transform_4, window_bounds = array<i64: 184, 32>}]} {
    %c0 = arith.constant 0 : index
    %c0_0 = arith.constant 0 : index
    %0 = vector.load %arg3[%c0, %c0_0] : memref<12x32xbf16, #tpu.memory_space<vmem>>, vector<12x32xbf16>
    %c0_1 = arith.constant 0 : index
    %c0_2 = arith.constant 0 : index
    %1 = vector.load %arg4[%c0_1, %c0_2] : memref<1x32xf32, #tpu.memory_space<vmem>>, vector<1x32xf32>
    %c0_3 = arith.constant 0 : index
    %c0_4 = arith.constant 0 : index
    %2 = vector.load %arg1[%c0_3, %c0_4] : memref<184x12xf32, #tpu.memory_space<vmem>>, vector<184x12xf32>
    %3 = arith.truncf %2 : vector<184x12xf32> to vector<184x12xbf16>
    %cst = arith.constant dense<0.000000e+00> : vector<184x32xf32>
    %4 = tpu.matmul %3, %0, %cst {dimension_numbers = #tpu.dot_dimension_numbers<[1], [0], [0], [1], [0, 0, 1, 1], [], []>} : vector<184x12xbf16>, vector<12x32xbf16>, vector<184x32xf32> -> vector<184x32xf32>
    %5 = vector.broadcast %1 : vector<1x32xf32> to vector<184x32xf32>
    %6 = arith.addf %4, %5 : vector<184x32xf32>
    %cst_5 = arith.constant 0.000000e+00 : f32
    %7 = vector.broadcast %cst_5 : f32 to vector<184x32xf32>
    %8 = arith.maximumf %6, %7 : vector<184x32xf32>
    %c0_6 = arith.constant 0 : index
    %c0_7 = arith.constant 0 : index
    %9 = vector.load %arg2[%c0_6, %c0_7] : memref<184x12xf32, #tpu.memory_space<vmem>>, vector<184x12xf32>
    %10 = arith.truncf %9 : vector<184x12xf32> to vector<184x12xbf16>
    %cst_8 = arith.constant dense<0.000000e+00> : vector<184x32xf32>
    %11 = tpu.matmul %10, %0, %cst_8 {dimension_numbers = #tpu.dot_dimension_numbers<[1], [0], [0], [1], [0, 0, 1, 1], [], []>} : vector<184x12xbf16>, vector<12x32xbf16>, vector<184x32xf32> -> vector<184x32xf32>
    %12 = vector.broadcast %1 : vector<1x32xf32> to vector<184x32xf32>
    %13 = arith.addf %11, %12 : vector<184x32xf32>
    %cst_9 = arith.constant 0.000000e+00 : f32
    %14 = vector.broadcast %cst_9 : f32 to vector<184x32xf32>
    %15 = arith.maximumf %13, %14 : vector<184x32xf32>
    %16 = arith.maximumf %8, %15 : vector<184x32xf32>
    %c0_10 = arith.constant 0 : index
    %c0_11 = arith.constant 0 : index
    %17 = vector.load %arg5[%c0_10, %c0_11] : memref<184x32xf32, #tpu.memory_space<vmem>>, vector<184x32xf32>
    tpu.vector_store %arg5[%c0_10, %c0_11], %16 {strides = array<i32>} : memref<184x32xf32, #tpu.memory_space<vmem>>, vector<184x32xf32>,
    return
  }
  func.func @transform_0(%arg0: i32) -> (i32, i32) {
    %c0_i32 = arith.constant 0 : i32
    %c0_i32_0 = arith.constant 0 : i32
    return %arg0, %c0_i32 : i32, i32
  }
  func.func @transform_1(%arg0: i32) -> (i32, i32) {
    %c0_i32 = arith.constant 0 : i32
    %c0_i32_0 = arith.constant 0 : i32
    return %arg0, %c0_i32 : i32, i32
  }
  func.func @transform_2(%arg0: i32) -> (i32, i32) {
    %c0_i32 = arith.constant 0 : i32
    %c0_i32_0 = arith.constant 0 : i32
    %c0_i32_1 = arith.constant 0 : i32
    return %c0_i32, %c0_i32_0 : i32, i32
  }
  func.func @transform_3(%arg0: i32) -> (i32, i32) {
    %c0_i32 = arith.constant 0 : i32
    %c0_i32_0 = arith.constant 0 : i32
    %c0_i32_1 = arith.constant 0 : i32
    return %c0_i32, %c0_i32_0 : i32, i32
  }
  func.func @transform_4(%arg0: i32) -> (i32, i32) {
    %c0_i32 = arith.constant 0 : i32
    %c0_i32_0 = arith.constant 0 : i32
    return %arg0, %c0_i32 : i32, i32
  }
}

module attributes {stable_mosaic.version = 11 : i64} {
  func.func @_conv_bn_relu_pool_kernel(%arg0: i32, %arg1: memref<176x96xf32, #tpu.memory_space<vmem>>, %arg2: memref<176x96xf32, #tpu.memory_space<vmem>>, %arg3: memref<96x64xbf16, #tpu.memory_space<vmem>>, %arg4: memref<1x64xf32, #tpu.memory_space<vmem>>, %arg5: memref<176x64xf32, #tpu.memory_space<vmem>>) attributes {dimension_semantics = [#tpu.dimension_semantics<parallel>], iteration_bounds = array<i64: 1>, scalar_prefetch = 0 : i64, scratch_operands = 0 : i64, tpu.core_type = #tpu.core_type<tc>, window_params = [{transform_indices = @transform_0, window_bounds = array<i64: 176, 96>}, {transform_indices = @transform_1, window_bounds = array<i64: 176, 96>}, {pipeline_mode = #tpu.pipeline_mode<synchronous>, transform_indices = @transform_2, window_bounds = array<i64: 96, 64>}, {pipeline_mode = #tpu.pipeline_mode<synchronous>, transform_indices = @transform_3, window_bounds = array<i64: 1, 64>}, {transform_indices = @transform_4, window_bounds = array<i64: 176, 64>}]} {
    %c0 = arith.constant 0 : index
    %c0_0 = arith.constant 0 : index
    %0 = vector.load %arg3[%c0, %c0_0] : memref<96x64xbf16, #tpu.memory_space<vmem>>, vector<96x64xbf16>
    %c0_1 = arith.constant 0 : index
    %c0_2 = arith.constant 0 : index
    %1 = vector.load %arg4[%c0_1, %c0_2] : memref<1x64xf32, #tpu.memory_space<vmem>>, vector<1x64xf32>
    %c0_3 = arith.constant 0 : index
    %c0_4 = arith.constant 0 : index
    %2 = vector.load %arg1[%c0_3, %c0_4] : memref<176x96xf32, #tpu.memory_space<vmem>>, vector<176x96xf32>
    %3 = arith.truncf %2 : vector<176x96xf32> to vector<176x96xbf16>
    %cst = arith.constant dense<0.000000e+00> : vector<176x64xf32>
    %4 = tpu.matmul %3, %0, %cst {dimension_numbers = #tpu.dot_dimension_numbers<[1], [0], [0], [1], [0, 0, 1, 1], [], []>} : vector<176x96xbf16>, vector<96x64xbf16>, vector<176x64xf32> -> vector<176x64xf32>
    %5 = vector.broadcast %1 : vector<1x64xf32> to vector<176x64xf32>
    %6 = arith.addf %4, %5 : vector<176x64xf32>
    %cst_5 = arith.constant 0.000000e+00 : f32
    %7 = vector.broadcast %cst_5 : f32 to vector<176x64xf32>
    %8 = arith.maximumf %6, %7 : vector<176x64xf32>
    %c0_6 = arith.constant 0 : index
    %c0_7 = arith.constant 0 : index
    %9 = vector.load %arg2[%c0_6, %c0_7] : memref<176x96xf32, #tpu.memory_space<vmem>>, vector<176x96xf32>
    %10 = arith.truncf %9 : vector<176x96xf32> to vector<176x96xbf16>
    %cst_8 = arith.constant dense<0.000000e+00> : vector<176x64xf32>
    %11 = tpu.matmul %10, %0, %cst_8 {dimension_numbers = #tpu.dot_dimension_numbers<[1], [0], [0], [1], [0, 0, 1, 1], [], []>} : vector<176x96xbf16>, vector<96x64xbf16>, vector<176x64xf32> -> vector<176x64xf32>
    %12 = vector.broadcast %1 : vector<1x64xf32> to vector<176x64xf32>
    %13 = arith.addf %11, %12 : vector<176x64xf32>
    %cst_9 = arith.constant 0.000000e+00 : f32
    %14 = vector.broadcast %cst_9 : f32 to vector<176x64xf32>
    %15 = arith.maximumf %13, %14 : vector<176x64xf32>
    %16 = arith.maximumf %8, %15 : vector<176x64xf32>
    %c0_10 = arith.constant 0 : index
    %c0_11 = arith.constant 0 : index
    %17 = vector.load %arg5[%c0_10, %c0_11] : memref<176x64xf32, #tpu.memory_space<vmem>>, vector<176x64xf32>
    tpu.vector_store %arg5[%c0_10, %c0_11], %16 {strides = array<i32>} : memref<176x64xf32, #tpu.memory_space<vmem>>, vector<176x64xf32>,
    return
  }
  func.func @transform_0(%arg0: i32) -> (i32, i32) {
    %c0_i32 = arith.constant 0 : i32
    %c0_i32_0 = arith.constant 0 : i32
    return %arg0, %c0_i32 : i32, i32
  }
  func.func @transform_1(%arg0: i32) -> (i32, i32) {
    %c0_i32 = arith.constant 0 : i32
    %c0_i32_0 = arith.constant 0 : i32
    return %arg0, %c0_i32 : i32, i32
  }
  func.func @transform_2(%arg0: i32) -> (i32, i32) {
    %c0_i32 = arith.constant 0 : i32
    %c0_i32_0 = arith.constant 0 : i32
    %c0_i32_1 = arith.constant 0 : i32
    return %c0_i32, %c0_i32_0 : i32, i32
  }
  func.func @transform_3(%arg0: i32) -> (i32, i32) {
    %c0_i32 = arith.constant 0 : i32
    %c0_i32_0 = arith.constant 0 : i32
    %c0_i32_1 = arith.constant 0 : i32
    return %c0_i32, %c0_i32_0 : i32, i32
  }
  func.func @transform_4(%arg0: i32) -> (i32, i32) {
    %c0_i32 = arith.constant 0 : i32
    %c0_i32_0 = arith.constant 0 : i32
    return %arg0, %c0_i32 : i32, i32
  }
}

module attributes {stable_mosaic.version = 11 : i64} {
  func.func @_conv_bn_relu_pool_kernel(%arg0: i32, %arg1: memref<80x192xf32, #tpu.memory_space<vmem>>, %arg2: memref<80x192xf32, #tpu.memory_space<vmem>>, %arg3: memref<192x128xbf16, #tpu.memory_space<vmem>>, %arg4: memref<1x128xf32, #tpu.memory_space<vmem>>, %arg5: memref<80x128xf32, #tpu.memory_space<vmem>>) attributes {dimension_semantics = [#tpu.dimension_semantics<parallel>], iteration_bounds = array<i64: 1>, scalar_prefetch = 0 : i64, scratch_operands = 0 : i64, tpu.core_type = #tpu.core_type<tc>, window_params = [{transform_indices = @transform_0, window_bounds = array<i64: 80, 192>}, {transform_indices = @transform_1, window_bounds = array<i64: 80, 192>}, {pipeline_mode = #tpu.pipeline_mode<synchronous>, transform_indices = @transform_2, window_bounds = array<i64: 192, 128>}, {pipeline_mode = #tpu.pipeline_mode<synchronous>, transform_indices = @transform_3, window_bounds = array<i64: 1, 128>}, {transform_indices = @transform_4, window_bounds = array<i64: 80, 128>}]} {
    %c0 = arith.constant 0 : index
    %c0_0 = arith.constant 0 : index
    %0 = vector.load %arg3[%c0, %c0_0] : memref<192x128xbf16, #tpu.memory_space<vmem>>, vector<192x128xbf16>
    %c0_1 = arith.constant 0 : index
    %c0_2 = arith.constant 0 : index
    %1 = vector.load %arg4[%c0_1, %c0_2] : memref<1x128xf32, #tpu.memory_space<vmem>>, vector<1x128xf32>
    %c0_3 = arith.constant 0 : index
    %c0_4 = arith.constant 0 : index
    %2 = vector.load %arg1[%c0_3, %c0_4] : memref<80x192xf32, #tpu.memory_space<vmem>>, vector<80x192xf32>
    %3 = arith.truncf %2 : vector<80x192xf32> to vector<80x192xbf16>
    %cst = arith.constant dense<0.000000e+00> : vector<80x128xf32>
    %4 = tpu.matmul %3, %0, %cst {dimension_numbers = #tpu.dot_dimension_numbers<[1], [0], [0], [1], [0, 0, 1, 1], [], []>} : vector<80x192xbf16>, vector<192x128xbf16>, vector<80x128xf32> -> vector<80x128xf32>
    %5 = vector.broadcast %1 : vector<1x128xf32> to vector<80x128xf32>
    %6 = arith.addf %4, %5 : vector<80x128xf32>
    %cst_5 = arith.constant 0.000000e+00 : f32
    %7 = vector.broadcast %cst_5 : f32 to vector<80x128xf32>
    %8 = arith.maximumf %6, %7 : vector<80x128xf32>
    %c0_6 = arith.constant 0 : index
    %c0_7 = arith.constant 0 : index
    %9 = vector.load %arg2[%c0_6, %c0_7] : memref<80x192xf32, #tpu.memory_space<vmem>>, vector<80x192xf32>
    %10 = arith.truncf %9 : vector<80x192xf32> to vector<80x192xbf16>
    %cst_8 = arith.constant dense<0.000000e+00> : vector<80x128xf32>
    %11 = tpu.matmul %10, %0, %cst_8 {dimension_numbers = #tpu.dot_dimension_numbers<[1], [0], [0], [1], [0, 0, 1, 1], [], []>} : vector<80x192xbf16>, vector<192x128xbf16>, vector<80x128xf32> -> vector<80x128xf32>
    %12 = vector.broadcast %1 : vector<1x128xf32> to vector<80x128xf32>
    %13 = arith.addf %11, %12 : vector<80x128xf32>
    %cst_9 = arith.constant 0.000000e+00 : f32
    %14 = vector.broadcast %cst_9 : f32 to vector<80x128xf32>
    %15 = arith.maximumf %13, %14 : vector<80x128xf32>
    %16 = arith.maximumf %8, %15 : vector<80x128xf32>
    %c0_10 = arith.constant 0 : index
    %c0_11 = arith.constant 0 : index
    %17 = vector.load %arg5[%c0_10, %c0_11] : memref<80x128xf32, #tpu.memory_space<vmem>>, vector<80x128xf32>
    tpu.vector_store %arg5[%c0_10, %c0_11], %16 {strides = array<i32>} : memref<80x128xf32, #tpu.memory_space<vmem>>, vector<80x128xf32>,
    return
  }
  func.func @transform_0(%arg0: i32) -> (i32, i32) {
    %c0_i32 = arith.constant 0 : i32
    %c0_i32_0 = arith.constant 0 : i32
    return %arg0, %c0_i32 : i32, i32
  }
  func.func @transform_1(%arg0: i32) -> (i32, i32) {
    %c0_i32 = arith.constant 0 : i32
    %c0_i32_0 = arith.constant 0 : i32
    return %arg0, %c0_i32 : i32, i32
  }
  func.func @transform_2(%arg0: i32) -> (i32, i32) {
    %c0_i32 = arith.constant 0 : i32
    %c0_i32_0 = arith.constant 0 : i32
    %c0_i32_1 = arith.constant 0 : i32
    return %c0_i32, %c0_i32_0 : i32, i32
  }
  func.func @transform_3(%arg0: i32) -> (i32, i32) {
    %c0_i32 = arith.constant 0 : i32
    %c0_i32_0 = arith.constant 0 : i32
    %c0_i32_1 = arith.constant 0 : i32
    return %c0_i32, %c0_i32_0 : i32, i32
  }
  func.func @transform_4(%arg0: i32) -> (i32, i32) {
    %c0_i32 = arith.constant 0 : i32
    %c0_i32_0 = arith.constant 0 : i32
    return %arg0, %c0_i32 : i32, i32
  }
}

module attributes {stable_mosaic.version = 11 : i64} {
  func.func @_conv_bn_relu_pool_kernel(%arg0: i32, %arg1: memref<32x384xf32, #tpu.memory_space<vmem>>, %arg2: memref<32x384xf32, #tpu.memory_space<vmem>>, %arg3: memref<384x128xbf16, #tpu.memory_space<vmem>>, %arg4: memref<1x128xf32, #tpu.memory_space<vmem>>, %arg5: memref<32x128xf32, #tpu.memory_space<vmem>>) attributes {dimension_semantics = [#tpu.dimension_semantics<parallel>], iteration_bounds = array<i64: 1>, scalar_prefetch = 0 : i64, scratch_operands = 0 : i64, tpu.core_type = #tpu.core_type<tc>, window_params = [{transform_indices = @transform_0, window_bounds = array<i64: 32, 384>}, {transform_indices = @transform_1, window_bounds = array<i64: 32, 384>}, {pipeline_mode = #tpu.pipeline_mode<synchronous>, transform_indices = @transform_2, window_bounds = array<i64: 384, 128>}, {pipeline_mode = #tpu.pipeline_mode<synchronous>, transform_indices = @transform_3, window_bounds = array<i64: 1, 128>}, {transform_indices = @transform_4, window_bounds = array<i64: 32, 128>}]} {
    %c0 = arith.constant 0 : index
    %c0_0 = arith.constant 0 : index
    %0 = vector.load %arg3[%c0, %c0_0] : memref<384x128xbf16, #tpu.memory_space<vmem>>, vector<384x128xbf16>
    %c0_1 = arith.constant 0 : index
    %c0_2 = arith.constant 0 : index
    %1 = vector.load %arg4[%c0_1, %c0_2] : memref<1x128xf32, #tpu.memory_space<vmem>>, vector<1x128xf32>
    %c0_3 = arith.constant 0 : index
    %c0_4 = arith.constant 0 : index
    %2 = vector.load %arg1[%c0_3, %c0_4] : memref<32x384xf32, #tpu.memory_space<vmem>>, vector<32x384xf32>
    %3 = arith.truncf %2 : vector<32x384xf32> to vector<32x384xbf16>
    %cst = arith.constant dense<0.000000e+00> : vector<32x128xf32>
    %4 = tpu.matmul %3, %0, %cst {dimension_numbers = #tpu.dot_dimension_numbers<[1], [0], [0], [1], [0, 0, 1, 1], [], []>} : vector<32x384xbf16>, vector<384x128xbf16>, vector<32x128xf32> -> vector<32x128xf32>
    %5 = vector.broadcast %1 : vector<1x128xf32> to vector<32x128xf32>
    %6 = arith.addf %4, %5 : vector<32x128xf32>
    %cst_5 = arith.constant 0.000000e+00 : f32
    %7 = vector.broadcast %cst_5 : f32 to vector<32x128xf32>
    %8 = arith.maximumf %6, %7 : vector<32x128xf32>
    %c0_6 = arith.constant 0 : index
    %c0_7 = arith.constant 0 : index
    %9 = vector.load %arg2[%c0_6, %c0_7] : memref<32x384xf32, #tpu.memory_space<vmem>>, vector<32x384xf32>
    %10 = arith.truncf %9 : vector<32x384xf32> to vector<32x384xbf16>
    %cst_8 = arith.constant dense<0.000000e+00> : vector<32x128xf32>
    %11 = tpu.matmul %10, %0, %cst_8 {dimension_numbers = #tpu.dot_dimension_numbers<[1], [0], [0], [1], [0, 0, 1, 1], [], []>} : vector<32x384xbf16>, vector<384x128xbf16>, vector<32x128xf32> -> vector<32x128xf32>
    %12 = vector.broadcast %1 : vector<1x128xf32> to vector<32x128xf32>
    %13 = arith.addf %11, %12 : vector<32x128xf32>
    %cst_9 = arith.constant 0.000000e+00 : f32
    %14 = vector.broadcast %cst_9 : f32 to vector<32x128xf32>
    %15 = arith.maximumf %13, %14 : vector<32x128xf32>
    %16 = arith.maximumf %8, %15 : vector<32x128xf32>
    %c0_10 = arith.constant 0 : index
    %c0_11 = arith.constant 0 : index
    %17 = vector.load %arg5[%c0_10, %c0_11] : memref<32x128xf32, #tpu.memory_space<vmem>>, vector<32x128xf32>
    tpu.vector_store %arg5[%c0_10, %c0_11], %16 {strides = array<i32>} : memref<32x128xf32, #tpu.memory_space<vmem>>, vector<32x128xf32>,
    return
  }
  func.func @transform_0(%arg0: i32) -> (i32, i32) {
    %c0_i32 = arith.constant 0 : i32
    %c0_i32_0 = arith.constant 0 : i32
    return %arg0, %c0_i32 : i32, i32
  }
  func.func @transform_1(%arg0: i32) -> (i32, i32) {
    %c0_i32 = arith.constant 0 : i32
    %c0_i32_0 = arith.constant 0 : i32
    return %arg0, %c0_i32 : i32, i32
  }
  func.func @transform_2(%arg0: i32) -> (i32, i32) {
    %c0_i32 = arith.constant 0 : i32
    %c0_i32_0 = arith.constant 0 : i32
    %c0_i32_1 = arith.constant 0 : i32
    return %c0_i32, %c0_i32_0 : i32, i32
  }
  func.func @transform_3(%arg0: i32) -> (i32, i32) {
    %c0_i32 = arith.constant 0 : i32
    %c0_i32_0 = arith.constant 0 : i32
    %c0_i32_1 = arith.constant 0 : i32
    return %c0_i32, %c0_i32_0 : i32, i32
  }
  func.func @transform_4(%arg0: i32) -> (i32, i32) {
    %c0_i32 = arith.constant 0 : i32
    %c0_i32_0 = arith.constant 0 : i32
    return %arg0, %c0_i32 : i32, i32
  }
}

module attributes {stable_mosaic.version = 11 : i64} {
  func.func @_conv_bn_relu_pool_kernel(%arg0: i32, %arg1: memref<8x384xf32, #tpu.memory_space<vmem>>, %arg2: memref<8x384xf32, #tpu.memory_space<vmem>>, %arg3: memref<384x256xbf16, #tpu.memory_space<vmem>>, %arg4: memref<1x256xf32, #tpu.memory_space<vmem>>, %arg5: memref<8x256xf32, #tpu.memory_space<vmem>>) attributes {dimension_semantics = [#tpu.dimension_semantics<parallel>], iteration_bounds = array<i64: 1>, scalar_prefetch = 0 : i64, scratch_operands = 0 : i64, tpu.core_type = #tpu.core_type<tc>, window_params = [{transform_indices = @transform_0, window_bounds = array<i64: 8, 384>}, {transform_indices = @transform_1, window_bounds = array<i64: 8, 384>}, {pipeline_mode = #tpu.pipeline_mode<synchronous>, transform_indices = @transform_2, window_bounds = array<i64: 384, 256>}, {pipeline_mode = #tpu.pipeline_mode<synchronous>, transform_indices = @transform_3, window_bounds = array<i64: 1, 256>}, {transform_indices = @transform_4, window_bounds = array<i64: 8, 256>}]} {
    %c0 = arith.constant 0 : index
    %c0_0 = arith.constant 0 : index
    %0 = vector.load %arg3[%c0, %c0_0] : memref<384x256xbf16, #tpu.memory_space<vmem>>, vector<384x256xbf16>
    %c0_1 = arith.constant 0 : index
    %c0_2 = arith.constant 0 : index
    %1 = vector.load %arg4[%c0_1, %c0_2] : memref<1x256xf32, #tpu.memory_space<vmem>>, vector<1x256xf32>
    %c0_3 = arith.constant 0 : index
    %c0_4 = arith.constant 0 : index
    %2 = vector.load %arg1[%c0_3, %c0_4] : memref<8x384xf32, #tpu.memory_space<vmem>>, vector<8x384xf32>
    %3 = arith.truncf %2 : vector<8x384xf32> to vector<8x384xbf16>
    %cst = arith.constant dense<0.000000e+00> : vector<8x256xf32>
    %4 = tpu.matmul %3, %0, %cst {dimension_numbers = #tpu.dot_dimension_numbers<[1], [0], [0], [1], [0, 0, 1, 1], [], []>} : vector<8x384xbf16>, vector<384x256xbf16>, vector<8x256xf32> -> vector<8x256xf32>
    %5 = vector.broadcast %1 : vector<1x256xf32> to vector<8x256xf32>
    %6 = arith.addf %4, %5 : vector<8x256xf32>
    %cst_5 = arith.constant 0.000000e+00 : f32
    %7 = vector.broadcast %cst_5 : f32 to vector<8x256xf32>
    %8 = arith.maximumf %6, %7 : vector<8x256xf32>
    %c0_6 = arith.constant 0 : index
    %c0_7 = arith.constant 0 : index
    %9 = vector.load %arg2[%c0_6, %c0_7] : memref<8x384xf32, #tpu.memory_space<vmem>>, vector<8x384xf32>
    %10 = arith.truncf %9 : vector<8x384xf32> to vector<8x384xbf16>
    %cst_8 = arith.constant dense<0.000000e+00> : vector<8x256xf32>
    %11 = tpu.matmul %10, %0, %cst_8 {dimension_numbers = #tpu.dot_dimension_numbers<[1], [0], [0], [1], [0, 0, 1, 1], [], []>} : vector<8x384xbf16>, vector<384x256xbf16>, vector<8x256xf32> -> vector<8x256xf32>
    %12 = vector.broadcast %1 : vector<1x256xf32> to vector<8x256xf32>
    %13 = arith.addf %11, %12 : vector<8x256xf32>
    %cst_9 = arith.constant 0.000000e+00 : f32
    %14 = vector.broadcast %cst_9 : f32 to vector<8x256xf32>
    %15 = arith.maximumf %13, %14 : vector<8x256xf32>
    %16 = arith.maximumf %8, %15 : vector<8x256xf32>
    %c0_10 = arith.constant 0 : index
    %c0_11 = arith.constant 0 : index
    %17 = vector.load %arg5[%c0_10, %c0_11] : memref<8x256xf32, #tpu.memory_space<vmem>>, vector<8x256xf32>
    tpu.vector_store %arg5[%c0_10, %c0_11], %16 {strides = array<i32>} : memref<8x256xf32, #tpu.memory_space<vmem>>, vector<8x256xf32>,
    return
  }
  func.func @transform_0(%arg0: i32) -> (i32, i32) {
    %c0_i32 = arith.constant 0 : i32
    %c0_i32_0 = arith.constant 0 : i32
    return %arg0, %c0_i32 : i32, i32
  }
  func.func @transform_1(%arg0: i32) -> (i32, i32) {
    %c0_i32 = arith.constant 0 : i32
    %c0_i32_0 = arith.constant 0 : i32
    return %arg0, %c0_i32 : i32, i32
  }
  func.func @transform_2(%arg0: i32) -> (i32, i32) {
    %c0_i32 = arith.constant 0 : i32
    %c0_i32_0 = arith.constant 0 : i32
    %c0_i32_1 = arith.constant 0 : i32
    return %c0_i32, %c0_i32_0 : i32, i32
  }
  func.func @transform_3(%arg0: i32) -> (i32, i32) {
    %c0_i32 = arith.constant 0 : i32
    %c0_i32_0 = arith.constant 0 : i32
    %c0_i32_1 = arith.constant 0 : i32
    return %c0_i32, %c0_i32_0 : i32, i32
  }
  func.func @transform_4(%arg0: i32) -> (i32, i32) {
    %c0_i32 = arith.constant 0 : i32
    %c0_i32_0 = arith.constant 0 : i32
    return %arg0, %c0_i32 : i32, i32
  }
}

module attributes {stable_mosaic.version = 11 : i64} {
  func.func @_matmul_kernel(%arg0: i32, %arg1: memref<8x256xf32, #tpu.memory_space<vmem>>, %arg2: memref<256x64xbf16, #tpu.memory_space<vmem>>, %arg3: memref<1x64xf32, #tpu.memory_space<vmem>>, %arg4: memref<8x64xf32, #tpu.memory_space<vmem>>) attributes {dimension_semantics = [#tpu.dimension_semantics<parallel>], iteration_bounds = array<i64: 1>, scalar_prefetch = 0 : i64, scratch_operands = 0 : i64, tpu.core_type = #tpu.core_type<tc>, window_params = [{transform_indices = @transform_0, window_bounds = array<i64: 8, 256>}, {pipeline_mode = #tpu.pipeline_mode<synchronous>, transform_indices = @transform_1, window_bounds = array<i64: 256, 64>}, {pipeline_mode = #tpu.pipeline_mode<synchronous>, transform_indices = @transform_2, window_bounds = array<i64: 1, 64>}, {transform_indices = @transform_3, window_bounds = array<i64: 8, 64>}]} {
    %c0 = arith.constant 0 : index
    %c0_0 = arith.constant 0 : index
    %0 = vector.load %arg2[%c0, %c0_0] : memref<256x64xbf16, #tpu.memory_space<vmem>>, vector<256x64xbf16>
    %c0_1 = arith.constant 0 : index
    %c0_2 = arith.constant 0 : index
    %1 = vector.load %arg1[%c0_1, %c0_2] : memref<8x256xf32, #tpu.memory_space<vmem>>, vector<8x256xf32>
    %2 = arith.truncf %1 : vector<8x256xf32> to vector<8x256xbf16>
    %cst = arith.constant dense<0.000000e+00> : vector<8x64xf32>
    %3 = tpu.matmul %2, %0, %cst {dimension_numbers = #tpu.dot_dimension_numbers<[1], [0], [0], [1], [0, 0, 1, 1], [], []>} : vector<8x256xbf16>, vector<256x64xbf16>, vector<8x64xf32> -> vector<8x64xf32>
    %c0_3 = arith.constant 0 : index
    %c0_4 = arith.constant 0 : index
    %4 = vector.load %arg3[%c0_3, %c0_4] : memref<1x64xf32, #tpu.memory_space<vmem>>, vector<1x64xf32>
    %5 = vector.broadcast %4 : vector<1x64xf32> to vector<8x64xf32>
    %6 = arith.addf %3, %5 : vector<8x64xf32>
    %c0_5 = arith.constant 0 : index
    %c0_6 = arith.constant 0 : index
    %7 = vector.load %arg4[%c0_5, %c0_6] : memref<8x64xf32, #tpu.memory_space<vmem>>, vector<8x64xf32>
    tpu.vector_store %arg4[%c0_5, %c0_6], %6 {strides = array<i32>} : memref<8x64xf32, #tpu.memory_space<vmem>>, vector<8x64xf32>,
    return
  }
  func.func @transform_0(%arg0: i32) -> (i32, i32) {
    %c0_i32 = arith.constant 0 : i32
    %c0_i32_0 = arith.constant 0 : i32
    return %arg0, %c0_i32 : i32, i32
  }
  func.func @transform_1(%arg0: i32) -> (i32, i32) {
    %c0_i32 = arith.constant 0 : i32
    %c0_i32_0 = arith.constant 0 : i32
    %c0_i32_1 = arith.constant 0 : i32
    return %c0_i32, %c0_i32_0 : i32, i32
  }
  func.func @transform_2(%arg0: i32) -> (i32, i32) {
    %c0_i32 = arith.constant 0 : i32
    %c0_i32_0 = arith.constant 0 : i32
    %c0_i32_1 = arith.constant 0 : i32
    return %c0_i32, %c0_i32_0 : i32, i32
  }
  func.func @transform_3(%arg0: i32) -> (i32, i32) {
    %c0_i32 = arith.constant 0 : i32
    %c0_i32_0 = arith.constant 0 : i32
    return %arg0, %c0_i32 : i32, i32
  }
}

module attributes {stable_mosaic.version = 11 : i64} {
  func.func @_matmul_kernel(%arg0: i32, %arg1: memref<8x64xf32, #tpu.memory_space<vmem>>, %arg2: memref<64x192xbf16, #tpu.memory_space<vmem>>, %arg3: memref<1x192xf32, #tpu.memory_space<vmem>>, %arg4: memref<8x192xf32, #tpu.memory_space<vmem>>) attributes {dimension_semantics = [#tpu.dimension_semantics<parallel>], iteration_bounds = array<i64: 1>, scalar_prefetch = 0 : i64, scratch_operands = 0 : i64, tpu.core_type = #tpu.core_type<tc>, window_params = [{transform_indices = @transform_0, window_bounds = array<i64: 8, 64>}, {pipeline_mode = #tpu.pipeline_mode<synchronous>, transform_indices = @transform_1, window_bounds = array<i64: 64, 192>}, {pipeline_mode = #tpu.pipeline_mode<synchronous>, transform_indices = @transform_2, window_bounds = array<i64: 1, 192>}, {transform_indices = @transform_3, window_bounds = array<i64: 8, 192>}]} {
    %c0 = arith.constant 0 : index
    %c0_0 = arith.constant 0 : index
    %0 = vector.load %arg2[%c0, %c0_0] : memref<64x192xbf16, #tpu.memory_space<vmem>>, vector<64x192xbf16>
    %c0_1 = arith.constant 0 : index
    %c0_2 = arith.constant 0 : index
    %1 = vector.load %arg1[%c0_1, %c0_2] : memref<8x64xf32, #tpu.memory_space<vmem>>, vector<8x64xf32>
    %2 = arith.truncf %1 : vector<8x64xf32> to vector<8x64xbf16>
    %cst = arith.constant dense<0.000000e+00> : vector<8x192xf32>
    %3 = tpu.matmul %2, %0, %cst {dimension_numbers = #tpu.dot_dimension_numbers<[1], [0], [0], [1], [0, 0, 1, 1], [], []>} : vector<8x64xbf16>, vector<64x192xbf16>, vector<8x192xf32> -> vector<8x192xf32>
    %c0_3 = arith.constant 0 : index
    %c0_4 = arith.constant 0 : index
    %4 = vector.load %arg3[%c0_3, %c0_4] : memref<1x192xf32, #tpu.memory_space<vmem>>, vector<1x192xf32>
    %5 = vector.broadcast %4 : vector<1x192xf32> to vector<8x192xf32>
    %6 = arith.addf %3, %5 : vector<8x192xf32>
    %c0_5 = arith.constant 0 : index
    %c0_6 = arith.constant 0 : index
    %7 = vector.load %arg4[%c0_5, %c0_6] : memref<8x192xf32, #tpu.memory_space<vmem>>, vector<8x192xf32>
    tpu.vector_store %arg4[%c0_5, %c0_6], %6 {strides = array<i32>} : memref<8x192xf32, #tpu.memory_space<vmem>>, vector<8x192xf32>,
    return
  }
  func.func @transform_0(%arg0: i32) -> (i32, i32) {
    %c0_i32 = arith.constant 0 : i32
    %c0_i32_0 = arith.constant 0 : i32
    return %arg0, %c0_i32 : i32, i32
  }
  func.func @transform_1(%arg0: i32) -> (i32, i32) {
    %c0_i32 = arith.constant 0 : i32
    %c0_i32_0 = arith.constant 0 : i32
    %c0_i32_1 = arith.constant 0 : i32
    return %c0_i32, %c0_i32_0 : i32, i32
  }
  func.func @transform_2(%arg0: i32) -> (i32, i32) {
    %c0_i32 = arith.constant 0 : i32
    %c0_i32_0 = arith.constant 0 : i32
    %c0_i32_1 = arith.constant 0 : i32
    return %c0_i32, %c0_i32_0 : i32, i32
  }
  func.func @transform_3(%arg0: i32) -> (i32, i32) {
    %c0_i32 = arith.constant 0 : i32
    %c0_i32_0 = arith.constant 0 : i32
    return %arg0, %c0_i32 : i32, i32
  }
}

module attributes {stable_mosaic.version = 11 : i64} {
  func.func @_complex_attn_kernel(%arg0: i32, %arg1: memref<4x8x8xf32, #tpu.memory_space<vmem>>, %arg2: memref<4x8x8xf32, #tpu.memory_space<vmem>>, %arg3: memref<4x8x8xf32, #tpu.memory_space<vmem>>, %arg4: memref<4x4x16xf32, #tpu.memory_space<vmem>>) attributes {dimension_semantics = [#tpu.dimension_semantics<parallel>], iteration_bounds = array<i64: 2>, scalar_prefetch = 0 : i64, scratch_operands = 0 : i64, tpu.core_type = #tpu.core_type<tc>, window_params = [{transform_indices = @transform_0, window_bounds = array<i64: 4, 8, 8>}, {transform_indices = @transform_1, window_bounds = array<i64: 4, 8, 8>}, {transform_indices = @transform_2, window_bounds = array<i64: 4, 8, 8>}, {transform_indices = @transform_3, window_bounds = array<i64: 4, 4, 16>}]} {
    %c0 = arith.constant 0 : index
    %c0_0 = arith.constant 0 : index
    %c0_1 = arith.constant 0 : index
    %0 = vector.load %arg1[%c0, %c0_0, %c0_1] : memref<4x8x8xf32, #tpu.memory_space<vmem>>, vector<4x8x8xf32>
    %1 = arith.truncf %0 : vector<4x8x8xf32> to vector<4x8x8xbf16>
    %c0_2 = arith.constant 0 : index
    %c0_3 = arith.constant 0 : index
    %c0_4 = arith.constant 0 : index
    %2 = vector.load %arg2[%c0_2, %c0_3, %c0_4] : memref<4x8x8xf32, #tpu.memory_space<vmem>>, vector<4x8x8xf32>
    %3 = arith.truncf %2 : vector<4x8x8xf32> to vector<4x8x8xbf16>
    %c0_5 = arith.constant 0 : index
    %c0_6 = arith.constant 0 : index
    %c0_7 = arith.constant 0 : index
    %4 = vector.load %arg3[%c0_5, %c0_6, %c0_7] : memref<4x8x8xf32, #tpu.memory_space<vmem>>, vector<4x8x8xf32>
    "tpu.trace_start"() <{level = 10 : i32, message = "bqd,bkd->bqk"}> : () -> ()
    %cst = arith.constant dense<0.000000e+00> : vector<4x8x8xf32>
    %5 = tpu.matmul %1, %3, %cst {dimension_numbers = #tpu.dot_dimension_numbers<[2], [2], [1], [1], [0, 0, 0, 1, 1, 1], [0], [0]>} : vector<4x8x8xbf16>, vector<4x8x8xbf16>, vector<4x8x8xf32> -> vector<4x8x8xf32>
    "tpu.trace_stop"() : () -> ()
    %6 = vector.extract_strided_slice %5 {offsets = [0, 0, 0], sizes = [4, 4, 4], strides = [1, 1, 1]} : vector<4x8x8xf32> to vector<4x4x4xf32>
    %cst_8 = arith.constant dense<0xFF800000> : vector<4x4xf32>
    %7 = vector.multi_reduction <maximumf>, %6, %cst_8 [2] : vector<4x4x4xf32> to vector<4x4xf32>
    %8 = vector.shape_cast %7 : vector<4x4xf32> to vector<4x4x1xf32>
    %9 = vector.broadcast %8 : vector<4x4x1xf32> to vector<4x4x4xf32>
    %10 = arith.subf %6, %9 : vector<4x4x4xf32>
    %11 = math.exp %10 : vector<4x4x4xf32>
    %cst_9 = arith.constant dense<0.000000e+00> : vector<4x4xf32>
    %12 = vector.multi_reduction <add>, %11, %cst_9 [2] : vector<4x4x4xf32> to vector<4x4xf32>
    %13 = vector.shape_cast %12 : vector<4x4xf32> to vector<4x4x1xf32>
    %14 = vector.broadcast %13 : vector<4x4x1xf32> to vector<4x4x4xf32>
    %15 = arith.divf %11, %14 : vector<4x4x4xf32>
    %16 = vector.extract_strided_slice %5 {offsets = [0, 4, 4], sizes = [4, 4, 4], strides = [1, 1, 1]} : vector<4x8x8xf32> to vector<4x4x4xf32>
    %cst_10 = arith.constant dense<0xFF800000> : vector<4x4xf32>
    %17 = vector.multi_reduction <maximumf>, %16, %cst_10 [2] : vector<4x4x4xf32> to vector<4x4xf32>
    %18 = vector.shape_cast %17 : vector<4x4xf32> to vector<4x4x1xf32>
    %19 = vector.broadcast %18 : vector<4x4x1xf32> to vector<4x4x4xf32>
    %20 = arith.subf %16, %19 : vector<4x4x4xf32>
    %21 = math.exp %20 : vector<4x4x4xf32>
    %cst_11 = arith.constant dense<0.000000e+00> : vector<4x4xf32>
    %22 = vector.multi_reduction <add>, %21, %cst_11 [2] : vector<4x4x4xf32> to vector<4x4xf32>
    %23 = vector.shape_cast %22 : vector<4x4xf32> to vector<4x4x1xf32>
    %24 = vector.broadcast %23 : vector<4x4x1xf32> to vector<4x4x4xf32>
    %25 = arith.divf %21, %24 : vector<4x4x4xf32>
    %26 = arith.subf %15, %25 : vector<4x4x4xf32>
    %27 = vector.extract_strided_slice %5 {offsets = [0, 0, 4], sizes = [4, 4, 4], strides = [1, 1, 1]} : vector<4x8x8xf32> to vector<4x4x4xf32>
    %cst_12 = arith.constant dense<0xFF800000> : vector<4x4xf32>
    %28 = vector.multi_reduction <maximumf>, %27, %cst_12 [2] : vector<4x4x4xf32> to vector<4x4xf32>
    %29 = vector.shape_cast %28 : vector<4x4xf32> to vector<4x4x1xf32>
    %30 = vector.broadcast %29 : vector<4x4x1xf32> to vector<4x4x4xf32>
    %31 = arith.subf %27, %30 : vector<4x4x4xf32>
    %32 = math.exp %31 : vector<4x4x4xf32>
    %cst_13 = arith.constant dense<0.000000e+00> : vector<4x4xf32>
    %33 = vector.multi_reduction <add>, %32, %cst_13 [2] : vector<4x4x4xf32> to vector<4x4xf32>
    %34 = vector.shape_cast %33 : vector<4x4xf32> to vector<4x4x1xf32>
    %35 = vector.broadcast %34 : vector<4x4x1xf32> to vector<4x4x4xf32>
    %36 = arith.divf %32, %35 : vector<4x4x4xf32>
    %37 = vector.extract_strided_slice %5 {offsets = [0, 4, 0], sizes = [4, 4, 4], strides = [1, 1, 1]} : vector<4x8x8xf32> to vector<4x4x4xf32>
    %cst_14 = arith.constant dense<0xFF800000> : vector<4x4xf32>
    %38 = vector.multi_reduction <maximumf>, %37, %cst_14 [2] : vector<4x4x4xf32> to vector<4x4xf32>
    %39 = vector.shape_cast %38 : vector<4x4xf32> to vector<4x4x1xf32>
    %40 = vector.broadcast %39 : vector<4x4x1xf32> to vector<4x4x4xf32>
    %41 = arith.subf %37, %40 : vector<4x4x4xf32>
    %42 = math.exp %41 : vector<4x4x4xf32>
    %cst_15 = arith.constant dense<0.000000e+00> : vector<4x4xf32>
    %43 = vector.multi_reduction <add>, %42, %cst_15 [2] : vector<4x4x4xf32> to vector<4x4xf32>
    %44 = vector.shape_cast %43 : vector<4x4xf32> to vector<4x4x1xf32>
    %45 = vector.broadcast %44 : vector<4x4x1xf32> to vector<4x4x4xf32>
    %46 = arith.divf %42, %45 : vector<4x4x4xf32>
    %47 = arith.addf %36, %46 : vector<4x4x4xf32>
    %48 = tpu.concatenate %26, %47 in 2 : vector<4x4x4xf32>, vector<4x4x4xf32> -> vector<4x4x8xf32>
    %49 = vector.extract_strided_slice %4 {offsets = [0, 0, 0], sizes = [4, 4, 8], strides = [1, 1, 1]} : vector<4x8x8xf32> to vector<4x4x8xf32>
    %50 = vector.extract_strided_slice %4 {offsets = [0, 4, 0], sizes = [4, 4, 8], strides = [1, 1, 1]} : vector<4x8x8xf32> to vector<4x4x8xf32>
    %51 = tpu.concatenate %49, %50 in 2 : vector<4x4x8xf32>, vector<4x4x8xf32> -> vector<4x4x16xf32>
    %cst_16 = arith.constant 0.000000e+00 : f32
    %52 = vector.broadcast %cst_16 : f32 to vector<4x4x8xf32>
    %53 = arith.subf %52, %50 : vector<4x4x8xf32>
    %54 = tpu.concatenate %53, %49 in 2 : vector<4x4x8xf32>, vector<4x4x8xf32> -> vector<4x4x16xf32>
    %55 = tpu.concatenate %51, %54 in 1 : vector<4x4x16xf32>, vector<4x4x16xf32> -> vector<4x8x16xf32>
    %56 = arith.truncf %48 : vector<4x4x8xf32> to vector<4x4x8xbf16>
    %57 = arith.truncf %55 : vector<4x8x16xf32> to vector<4x8x16xbf16>
    "tpu.trace_start"() <{level = 10 : i32, message = "bqk,bkd->bqd"}> : () -> ()
    %cst_17 = arith.constant dense<0.000000e+00> : vector<4x4x16xf32>
    %58 = tpu.matmul %56, %57, %cst_17 {dimension_numbers = #tpu.dot_dimension_numbers<[2], [1], [1], [2], [0, 0, 0, 1, 1, 2], [0], [0]>} : vector<4x4x8xbf16>, vector<4x8x16xbf16>, vector<4x4x16xf32> -> vector<4x4x16xf32>
    "tpu.trace_stop"() : () -> ()
    %c0_18 = arith.constant 0 : index
    %c0_19 = arith.constant 0 : index
    %c0_20 = arith.constant 0 : index
    %59 = vector.load %arg4[%c0_18, %c0_19, %c0_20] : memref<4x4x16xf32, #tpu.memory_space<vmem>>, vector<4x4x16xf32>
    tpu.vector_store %arg4[%c0_18, %c0_19, %c0_20], %58 {strides = array<i32>} : memref<4x4x16xf32, #tpu.memory_space<vmem>>, vector<4x4x16xf32>,
    return
  }
  func.func @transform_0(%arg0: i32) -> (i32, i32, i32) {
    %c0_i32 = arith.constant 0 : i32
    %c0_i32_0 = arith.constant 0 : i32
    %c0_i32_1 = arith.constant 0 : i32
    return %arg0, %c0_i32, %c0_i32_0 : i32, i32, i32
  }
  func.func @transform_1(%arg0: i32) -> (i32, i32, i32) {
    %c0_i32 = arith.constant 0 : i32
    %c0_i32_0 = arith.constant 0 : i32
    %c0_i32_1 = arith.constant 0 : i32
    return %arg0, %c0_i32, %c0_i32_0 : i32, i32, i32
  }
  func.func @transform_2(%arg0: i32) -> (i32, i32, i32) {
    %c0_i32 = arith.constant 0 : i32
    %c0_i32_0 = arith.constant 0 : i32
    %c0_i32_1 = arith.constant 0 : i32
    return %arg0, %c0_i32, %c0_i32_0 : i32, i32, i32
  }
  func.func @transform_3(%arg0: i32) -> (i32, i32, i32) {
    %c0_i32 = arith.constant 0 : i32
    %c0_i32_0 = arith.constant 0 : i32
    %c0_i32_1 = arith.constant 0 : i32
    return %arg0, %c0_i32, %c0_i32_0 : i32, i32, i32
  }
}

module attributes {stable_mosaic.version = 11 : i64} {
  func.func @_matmul_kernel(%arg0: i32, %arg1: memref<8x64xf32, #tpu.memory_space<vmem>>, %arg2: memref<64x256xbf16, #tpu.memory_space<vmem>>, %arg3: memref<1x256xf32, #tpu.memory_space<vmem>>, %arg4: memref<8x256xf32, #tpu.memory_space<vmem>>) attributes {dimension_semantics = [#tpu.dimension_semantics<parallel>], iteration_bounds = array<i64: 1>, scalar_prefetch = 0 : i64, scratch_operands = 0 : i64, tpu.core_type = #tpu.core_type<tc>, window_params = [{transform_indices = @transform_0, window_bounds = array<i64: 8, 64>}, {pipeline_mode = #tpu.pipeline_mode<synchronous>, transform_indices = @transform_1, window_bounds = array<i64: 64, 256>}, {pipeline_mode = #tpu.pipeline_mode<synchronous>, transform_indices = @transform_2, window_bounds = array<i64: 1, 256>}, {transform_indices = @transform_3, window_bounds = array<i64: 8, 256>}]} {
    %c0 = arith.constant 0 : index
    %c0_0 = arith.constant 0 : index
    %0 = vector.load %arg2[%c0, %c0_0] : memref<64x256xbf16, #tpu.memory_space<vmem>>, vector<64x256xbf16>
    %c0_1 = arith.constant 0 : index
    %c0_2 = arith.constant 0 : index
    %1 = vector.load %arg1[%c0_1, %c0_2] : memref<8x64xf32, #tpu.memory_space<vmem>>, vector<8x64xf32>
    %2 = arith.truncf %1 : vector<8x64xf32> to vector<8x64xbf16>
    %cst = arith.constant dense<0.000000e+00> : vector<8x256xf32>
    %3 = tpu.matmul %2, %0, %cst {dimension_numbers = #tpu.dot_dimension_numbers<[1], [0], [0], [1], [0, 0, 1, 1], [], []>} : vector<8x64xbf16>, vector<64x256xbf16>, vector<8x256xf32> -> vector<8x256xf32>
    %c0_3 = arith.constant 0 : index
    %c0_4 = arith.constant 0 : index
    %4 = vector.load %arg3[%c0_3, %c0_4] : memref<1x256xf32, #tpu.memory_space<vmem>>, vector<1x256xf32>
    %5 = vector.broadcast %4 : vector<1x256xf32> to vector<8x256xf32>
    %6 = arith.addf %3, %5 : vector<8x256xf32>
    %cst_5 = arith.constant 0.000000e+00 : f32
    %7 = vector.broadcast %cst_5 : f32 to vector<8x256xf32>
    %8 = arith.maximumf %6, %7 : vector<8x256xf32>
    %c0_6 = arith.constant 0 : index
    %c0_7 = arith.constant 0 : index
    %9 = vector.load %arg4[%c0_6, %c0_7] : memref<8x256xf32, #tpu.memory_space<vmem>>, vector<8x256xf32>
    tpu.vector_store %arg4[%c0_6, %c0_7], %8 {strides = array<i32>} : memref<8x256xf32, #tpu.memory_space<vmem>>, vector<8x256xf32>,
    return
  }
  func.func @transform_0(%arg0: i32) -> (i32, i32) {
    %c0_i32 = arith.constant 0 : i32
    %c0_i32_0 = arith.constant 0 : i32
    return %arg0, %c0_i32 : i32, i32
  }
  func.func @transform_1(%arg0: i32) -> (i32, i32) {
    %c0_i32 = arith.constant 0 : i32
    %c0_i32_0 = arith.constant 0 : i32
    %c0_i32_1 = arith.constant 0 : i32
    return %c0_i32, %c0_i32_0 : i32, i32
  }
  func.func @transform_2(%arg0: i32) -> (i32, i32) {
    %c0_i32 = arith.constant 0 : i32
    %c0_i32_0 = arith.constant 0 : i32
    %c0_i32_1 = arith.constant 0 : i32
    return %c0_i32, %c0_i32_0 : i32, i32
  }
  func.func @transform_3(%arg0: i32) -> (i32, i32) {
    %c0_i32 = arith.constant 0 : i32
    %c0_i32_0 = arith.constant 0 : i32
    return %arg0, %c0_i32 : i32, i32
  }
}

module attributes {stable_mosaic.version = 11 : i64} {
  func.func @_matmul_res_ln_kernel(%arg0: i32, %arg1: memref<8x64xf32, #tpu.memory_space<vmem>>, %arg2: memref<64x64xbf16, #tpu.memory_space<vmem>>, %arg3: memref<1x64xf32, #tpu.memory_space<vmem>>, %arg4: memref<8x64xf32, #tpu.memory_space<vmem>>, %arg5: memref<1x64xf32, #tpu.memory_space<vmem>>, %arg6: memref<1x64xf32, #tpu.memory_space<vmem>>, %arg7: memref<8x64xf32, #tpu.memory_space<vmem>>) attributes {dimension_semantics = [#tpu.dimension_semantics<parallel>], iteration_bounds = array<i64: 1>, scalar_prefetch = 0 : i64, scratch_operands = 0 : i64, tpu.core_type = #tpu.core_type<tc>, window_params = [{transform_indices = @transform_0, window_bounds = array<i64: 8, 64>}, {pipeline_mode = #tpu.pipeline_mode<synchronous>, transform_indices = @transform_1, window_bounds = array<i64: 64, 64>}, {pipeline_mode = #tpu.pipeline_mode<synchronous>, transform_indices = @transform_2, window_bounds = array<i64: 1, 64>}, {transform_indices = @transform_3, window_bounds = array<i64: 8, 64>}, {pipeline_mode = #tpu.pipeline_mode<synchronous>, transform_indices = @transform_4, window_bounds = array<i64: 1, 64>}, {pipeline_mode = #tpu.pipeline_mode<synchronous>, transform_indices = @transform_5, window_bounds = array<i64: 1, 64>}, {transform_indices = @transform_6, window_bounds = array<i64: 8, 64>}]} {
    %c0 = arith.constant 0 : index
    %c0_0 = arith.constant 0 : index
    %0 = vector.load %arg2[%c0, %c0_0] : memref<64x64xbf16, #tpu.memory_space<vmem>>, vector<64x64xbf16>
    %c0_1 = arith.constant 0 : index
    %c0_2 = arith.constant 0 : index
    %1 = vector.load %arg1[%c0_1, %c0_2] : memref<8x64xf32, #tpu.memory_space<vmem>>, vector<8x64xf32>
    %2 = arith.truncf %1 : vector<8x64xf32> to vector<8x64xbf16>
    %cst = arith.constant dense<0.000000e+00> : vector<8x64xf32>
    %3 = tpu.matmul %2, %0, %cst {dimension_numbers = #tpu.dot_dimension_numbers<[1], [0], [0], [1], [0, 0, 1, 1], [], []>} : vector<8x64xbf16>, vector<64x64xbf16>, vector<8x64xf32> -> vector<8x64xf32>
    %c0_3 = arith.constant 0 : index
    %c0_4 = arith.constant 0 : index
    %4 = vector.load %arg3[%c0_3, %c0_4] : memref<1x64xf32, #tpu.memory_space<vmem>>, vector<1x64xf32>
    %5 = vector.broadcast %4 : vector<1x64xf32> to vector<8x64xf32>
    %6 = arith.addf %3, %5 : vector<8x64xf32>
    %c0_5 = arith.constant 0 : index
    %c0_6 = arith.constant 0 : index
    %7 = vector.load %arg4[%c0_5, %c0_6] : memref<8x64xf32, #tpu.memory_space<vmem>>, vector<8x64xf32>
    %8 = arith.addf %6, %7 : vector<8x64xf32>
    %9 = vector.extract_strided_slice %8 {offsets = [0, 0], sizes = [8, 32], strides = [1, 1]} : vector<8x64xf32> to vector<8x32xf32>
    %cst_7 = arith.constant dense<0.000000e+00> : vector<8xf32>
    %10 = vector.multi_reduction <add>, %9, %cst_7 [1] : vector<8x32xf32> to vector<8xf32>
    %11 = vector.shape_cast %10 : vector<8xf32> to vector<8x1xf32>
    %cst_8 = arith.constant 3.200000e+01 : f32
    %12 = vector.broadcast %cst_8 : f32 to vector<8x1xf32>
    %13 = arith.divf %11, %12 : vector<8x1xf32>
    %14 = vector.broadcast %13 : vector<8x1xf32> to vector<8x32xf32>
    %15 = arith.subf %9, %14 : vector<8x32xf32>
    %16 = arith.mulf %15, %15 : vector<8x32xf32>
    %cst_9 = arith.constant dense<0.000000e+00> : vector<8xf32>
    %17 = vector.multi_reduction <add>, %16, %cst_9 [1] : vector<8x32xf32> to vector<8xf32>
    %18 = vector.shape_cast %17 : vector<8xf32> to vector<8x1xf32>
    %cst_10 = arith.constant 3.200000e+01 : f32
    %19 = vector.broadcast %cst_10 : f32 to vector<8x1xf32>
    %20 = arith.divf %18, %19 : vector<8x1xf32>
    %21 = vector.broadcast %13 : vector<8x1xf32> to vector<8x32xf32>
    %22 = arith.subf %9, %21 : vector<8x32xf32>
    %cst_11 = arith.constant 9.99999974E-6 : f32
    %23 = vector.broadcast %cst_11 : f32 to vector<8x1xf32>
    %24 = arith.addf %20, %23 : vector<8x1xf32>
    %25 = math.rsqrt %24 : vector<8x1xf32>
    %26 = vector.broadcast %25 : vector<8x1xf32> to vector<8x32xf32>
    %27 = arith.mulf %22, %26 : vector<8x32xf32>
    %28 = vector.extract_strided_slice %8 {offsets = [0, 32], sizes = [8, 32], strides = [1, 1]} : vector<8x64xf32> to vector<8x32xf32>
    %cst_12 = arith.constant dense<0.000000e+00> : vector<8xf32>
    %29 = vector.multi_reduction <add>, %28, %cst_12 [1] : vector<8x32xf32> to vector<8xf32>
    %30 = vector.shape_cast %29 : vector<8xf32> to vector<8x1xf32>
    %cst_13 = arith.constant 3.200000e+01 : f32
    %31 = vector.broadcast %cst_13 : f32 to vector<8x1xf32>
    %32 = arith.divf %30, %31 : vector<8x1xf32>
    %33 = vector.broadcast %32 : vector<8x1xf32> to vector<8x32xf32>
    %34 = arith.subf %28, %33 : vector<8x32xf32>
    %35 = arith.mulf %34, %34 : vector<8x32xf32>
    %cst_14 = arith.constant dense<0.000000e+00> : vector<8xf32>
    %36 = vector.multi_reduction <add>, %35, %cst_14 [1] : vector<8x32xf32> to vector<8xf32>
    %37 = vector.shape_cast %36 : vector<8xf32> to vector<8x1xf32>
    %cst_15 = arith.constant 3.200000e+01 : f32
    %38 = vector.broadcast %cst_15 : f32 to vector<8x1xf32>
    %39 = arith.divf %37, %38 : vector<8x1xf32>
    %40 = vector.broadcast %32 : vector<8x1xf32> to vector<8x32xf32>
    %41 = arith.subf %28, %40 : vector<8x32xf32>
    %cst_16 = arith.constant 9.99999974E-6 : f32
    %42 = vector.broadcast %cst_16 : f32 to vector<8x1xf32>
    %43 = arith.addf %39, %42 : vector<8x1xf32>
    %44 = math.rsqrt %43 : vector<8x1xf32>
    %45 = vector.broadcast %44 : vector<8x1xf32> to vector<8x32xf32>
    %46 = arith.mulf %41, %45 : vector<8x32xf32>
    %47 = tpu.concatenate %27, %46 in 1 : vector<8x32xf32>, vector<8x32xf32> -> vector<8x64xf32>
    %c0_17 = arith.constant 0 : index
    %c0_18 = arith.constant 0 : index
    %48 = vector.load %arg5[%c0_17, %c0_18] : memref<1x64xf32, #tpu.memory_space<vmem>>, vector<1x64xf32>
    %49 = vector.broadcast %48 : vector<1x64xf32> to vector<8x64xf32>
    %50 = arith.mulf %47, %49 : vector<8x64xf32>
    %c0_19 = arith.constant 0 : index
    %c0_20 = arith.constant 0 : index
    %51 = vector.load %arg6[%c0_19, %c0_20] : memref<1x64xf32, #tpu.memory_space<vmem>>, vector<1x64xf32>
    %52 = vector.broadcast %51 : vector<1x64xf32> to vector<8x64xf32>
    %53 = arith.addf %50, %52 : vector<8x64xf32>
    %c0_21 = arith.constant 0 : index
    %c0_22 = arith.constant 0 : index
    %54 = vector.load %arg7[%c0_21, %c0_22] : memref<8x64xf32, #tpu.memory_space<vmem>>, vector<8x64xf32>
    tpu.vector_store %arg7[%c0_21, %c0_22], %53 {strides = array<i32>} : memref<8x64xf32, #tpu.memory_space<vmem>>, vector<8x64xf32>,
    return
  }
  func.func @transform_0(%arg0: i32) -> (i32, i32) {
    %c0_i32 = arith.constant 0 : i32
    %c0_i32_0 = arith.constant 0 : i32
    return %arg0, %c0_i32 : i32, i32
  }
  func.func @transform_1(%arg0: i32) -> (i32, i32) {
    %c0_i32 = arith.constant 0 : i32
    %c0_i32_0 = arith.constant 0 : i32
    %c0_i32_1 = arith.constant 0 : i32
    return %c0_i32, %c0_i32_0 : i32, i32
  }
  func.func @transform_2(%arg0: i32) -> (i32, i32) {
    %c0_i32 = arith.constant 0 : i32
    %c0_i32_0 = arith.constant 0 : i32
    %c0_i32_1 = arith.constant 0 : i32
    return %c0_i32, %c0_i32_0 : i32, i32
  }
  func.func @transform_3(%arg0: i32) -> (i32, i32) {
    %c0_i32 = arith.constant 0 : i32
    %c0_i32_0 = arith.constant 0 : i32
    return %arg0, %c0_i32 : i32, i32
  }
  func.func @transform_4(%arg0: i32) -> (i32, i32) {
    %c0_i32 = arith.constant 0 : i32
    %c0_i32_0 = arith.constant 0 : i32
    %c0_i32_1 = arith.constant 0 : i32
    return %c0_i32, %c0_i32_0 : i32, i32
  }
  func.func @transform_5(%arg0: i32) -> (i32, i32) {
    %c0_i32 = arith.constant 0 : i32
    %c0_i32_0 = arith.constant 0 : i32
    %c0_i32_1 = arith.constant 0 : i32
    return %c0_i32, %c0_i32_0 : i32, i32
  }
  func.func @transform_6(%arg0: i32) -> (i32, i32) {
    %c0_i32 = arith.constant 0 : i32
    %c0_i32_0 = arith.constant 0 : i32
    return %arg0, %c0_i32 : i32, i32
  }
}

module attributes {stable_mosaic.version = 11 : i64} {
  func.func @_matmul_res_ln_kernel(%arg0: i32, %arg1: memref<8x256xf32, #tpu.memory_space<vmem>>, %arg2: memref<256x64xbf16, #tpu.memory_space<vmem>>, %arg3: memref<1x64xf32, #tpu.memory_space<vmem>>, %arg4: memref<8x64xf32, #tpu.memory_space<vmem>>, %arg5: memref<1x64xf32, #tpu.memory_space<vmem>>, %arg6: memref<1x64xf32, #tpu.memory_space<vmem>>, %arg7: memref<8x64xf32, #tpu.memory_space<vmem>>) attributes {dimension_semantics = [#tpu.dimension_semantics<parallel>], iteration_bounds = array<i64: 1>, scalar_prefetch = 0 : i64, scratch_operands = 0 : i64, tpu.core_type = #tpu.core_type<tc>, window_params = [{transform_indices = @transform_0, window_bounds = array<i64: 8, 256>}, {pipeline_mode = #tpu.pipeline_mode<synchronous>, transform_indices = @transform_1, window_bounds = array<i64: 256, 64>}, {pipeline_mode = #tpu.pipeline_mode<synchronous>, transform_indices = @transform_2, window_bounds = array<i64: 1, 64>}, {transform_indices = @transform_3, window_bounds = array<i64: 8, 64>}, {pipeline_mode = #tpu.pipeline_mode<synchronous>, transform_indices = @transform_4, window_bounds = array<i64: 1, 64>}, {pipeline_mode = #tpu.pipeline_mode<synchronous>, transform_indices = @transform_5, window_bounds = array<i64: 1, 64>}, {transform_indices = @transform_6, window_bounds = array<i64: 8, 64>}]} {
    %c0 = arith.constant 0 : index
    %c0_0 = arith.constant 0 : index
    %0 = vector.load %arg2[%c0, %c0_0] : memref<256x64xbf16, #tpu.memory_space<vmem>>, vector<256x64xbf16>
    %c0_1 = arith.constant 0 : index
    %c0_2 = arith.constant 0 : index
    %1 = vector.load %arg1[%c0_1, %c0_2] : memref<8x256xf32, #tpu.memory_space<vmem>>, vector<8x256xf32>
    %2 = arith.truncf %1 : vector<8x256xf32> to vector<8x256xbf16>
    %cst = arith.constant dense<0.000000e+00> : vector<8x64xf32>
    %3 = tpu.matmul %2, %0, %cst {dimension_numbers = #tpu.dot_dimension_numbers<[1], [0], [0], [1], [0, 0, 1, 1], [], []>} : vector<8x256xbf16>, vector<256x64xbf16>, vector<8x64xf32> -> vector<8x64xf32>
    %c0_3 = arith.constant 0 : index
    %c0_4 = arith.constant 0 : index
    %4 = vector.load %arg3[%c0_3, %c0_4] : memref<1x64xf32, #tpu.memory_space<vmem>>, vector<1x64xf32>
    %5 = vector.broadcast %4 : vector<1x64xf32> to vector<8x64xf32>
    %6 = arith.addf %3, %5 : vector<8x64xf32>
    %c0_5 = arith.constant 0 : index
    %c0_6 = arith.constant 0 : index
    %7 = vector.load %arg4[%c0_5, %c0_6] : memref<8x64xf32, #tpu.memory_space<vmem>>, vector<8x64xf32>
    %8 = arith.addf %6, %7 : vector<8x64xf32>
    %9 = vector.extract_strided_slice %8 {offsets = [0, 0], sizes = [8, 32], strides = [1, 1]} : vector<8x64xf32> to vector<8x32xf32>
    %cst_7 = arith.constant dense<0.000000e+00> : vector<8xf32>
    %10 = vector.multi_reduction <add>, %9, %cst_7 [1] : vector<8x32xf32> to vector<8xf32>
    %11 = vector.shape_cast %10 : vector<8xf32> to vector<8x1xf32>
    %cst_8 = arith.constant 3.200000e+01 : f32
    %12 = vector.broadcast %cst_8 : f32 to vector<8x1xf32>
    %13 = arith.divf %11, %12 : vector<8x1xf32>
    %14 = vector.broadcast %13 : vector<8x1xf32> to vector<8x32xf32>
    %15 = arith.subf %9, %14 : vector<8x32xf32>
    %16 = arith.mulf %15, %15 : vector<8x32xf32>
    %cst_9 = arith.constant dense<0.000000e+00> : vector<8xf32>
    %17 = vector.multi_reduction <add>, %16, %cst_9 [1] : vector<8x32xf32> to vector<8xf32>
    %18 = vector.shape_cast %17 : vector<8xf32> to vector<8x1xf32>
    %cst_10 = arith.constant 3.200000e+01 : f32
    %19 = vector.broadcast %cst_10 : f32 to vector<8x1xf32>
    %20 = arith.divf %18, %19 : vector<8x1xf32>
    %21 = vector.broadcast %13 : vector<8x1xf32> to vector<8x32xf32>
    %22 = arith.subf %9, %21 : vector<8x32xf32>
    %cst_11 = arith.constant 9.99999974E-6 : f32
    %23 = vector.broadcast %cst_11 : f32 to vector<8x1xf32>
    %24 = arith.addf %20, %23 : vector<8x1xf32>
    %25 = math.rsqrt %24 : vector<8x1xf32>
    %26 = vector.broadcast %25 : vector<8x1xf32> to vector<8x32xf32>
    %27 = arith.mulf %22, %26 : vector<8x32xf32>
    %28 = vector.extract_strided_slice %8 {offsets = [0, 32], sizes = [8, 32], strides = [1, 1]} : vector<8x64xf32> to vector<8x32xf32>
    %cst_12 = arith.constant dense<0.000000e+00> : vector<8xf32>
    %29 = vector.multi_reduction <add>, %28, %cst_12 [1] : vector<8x32xf32> to vector<8xf32>
    %30 = vector.shape_cast %29 : vector<8xf32> to vector<8x1xf32>
    %cst_13 = arith.constant 3.200000e+01 : f32
    %31 = vector.broadcast %cst_13 : f32 to vector<8x1xf32>
    %32 = arith.divf %30, %31 : vector<8x1xf32>
    %33 = vector.broadcast %32 : vector<8x1xf32> to vector<8x32xf32>
    %34 = arith.subf %28, %33 : vector<8x32xf32>
    %35 = arith.mulf %34, %34 : vector<8x32xf32>
    %cst_14 = arith.constant dense<0.000000e+00> : vector<8xf32>
    %36 = vector.multi_reduction <add>, %35, %cst_14 [1] : vector<8x32xf32> to vector<8xf32>
    %37 = vector.shape_cast %36 : vector<8xf32> to vector<8x1xf32>
    %cst_15 = arith.constant 3.200000e+01 : f32
    %38 = vector.broadcast %cst_15 : f32 to vector<8x1xf32>
    %39 = arith.divf %37, %38 : vector<8x1xf32>
    %40 = vector.broadcast %32 : vector<8x1xf32> to vector<8x32xf32>
    %41 = arith.subf %28, %40 : vector<8x32xf32>
    %cst_16 = arith.constant 9.99999974E-6 : f32
    %42 = vector.broadcast %cst_16 : f32 to vector<8x1xf32>
    %43 = arith.addf %39, %42 : vector<8x1xf32>
    %44 = math.rsqrt %43 : vector<8x1xf32>
    %45 = vector.broadcast %44 : vector<8x1xf32> to vector<8x32xf32>
    %46 = arith.mulf %41, %45 : vector<8x32xf32>
    %47 = tpu.concatenate %27, %46 in 1 : vector<8x32xf32>, vector<8x32xf32> -> vector<8x64xf32>
    %c0_17 = arith.constant 0 : index
    %c0_18 = arith.constant 0 : index
    %48 = vector.load %arg5[%c0_17, %c0_18] : memref<1x64xf32, #tpu.memory_space<vmem>>, vector<1x64xf32>
    %49 = vector.broadcast %48 : vector<1x64xf32> to vector<8x64xf32>
    %50 = arith.mulf %47, %49 : vector<8x64xf32>
    %c0_19 = arith.constant 0 : index
    %c0_20 = arith.constant 0 : index
    %51 = vector.load %arg6[%c0_19, %c0_20] : memref<1x64xf32, #tpu.memory_space<vmem>>, vector<1x64xf32>
    %52 = vector.broadcast %51 : vector<1x64xf32> to vector<8x64xf32>
    %53 = arith.addf %50, %52 : vector<8x64xf32>
    %c0_21 = arith.constant 0 : index
    %c0_22 = arith.constant 0 : index
    %54 = vector.load %arg7[%c0_21, %c0_22] : memref<8x64xf32, #tpu.memory_space<vmem>>, vector<8x64xf32>
    tpu.vector_store %arg7[%c0_21, %c0_22], %53 {strides = array<i32>} : memref<8x64xf32, #tpu.memory_space<vmem>>, vector<8x64xf32>,
    return
  }
  func.func @transform_0(%arg0: i32) -> (i32, i32) {
    %c0_i32 = arith.constant 0 : i32
    %c0_i32_0 = arith.constant 0 : i32
    return %arg0, %c0_i32 : i32, i32
  }
  func.func @transform_1(%arg0: i32) -> (i32, i32) {
    %c0_i32 = arith.constant 0 : i32
    %c0_i32_0 = arith.constant 0 : i32
    %c0_i32_1 = arith.constant 0 : i32
    return %c0_i32, %c0_i32_0 : i32, i32
  }
  func.func @transform_2(%arg0: i32) -> (i32, i32) {
    %c0_i32 = arith.constant 0 : i32
    %c0_i32_0 = arith.constant 0 : i32
    %c0_i32_1 = arith.constant 0 : i32
    return %c0_i32, %c0_i32_0 : i32, i32
  }
  func.func @transform_3(%arg0: i32) -> (i32, i32) {
    %c0_i32 = arith.constant 0 : i32
    %c0_i32_0 = arith.constant 0 : i32
    return %arg0, %c0_i32 : i32, i32
  }
  func.func @transform_4(%arg0: i32) -> (i32, i32) {
    %c0_i32 = arith.constant 0 : i32
    %c0_i32_0 = arith.constant 0 : i32
    %c0_i32_1 = arith.constant 0 : i32
    return %c0_i32, %c0_i32_0 : i32, i32
  }
  func.func @transform_5(%arg0: i32) -> (i32, i32) {
    %c0_i32 = arith.constant 0 : i32
    %c0_i32_0 = arith.constant 0 : i32
    %c0_i32_1 = arith.constant 0 : i32
    return %c0_i32, %c0_i32_0 : i32, i32
  }
  func.func @transform_6(%arg0: i32) -> (i32, i32) {
    %c0_i32 = arith.constant 0 : i32
    %c0_i32_0 = arith.constant 0 : i32
    return %arg0, %c0_i32 : i32, i32
  }
}

module attributes {stable_mosaic.version = 11 : i64} {
  func.func @_matmul_kernel(%arg0: i32, %arg1: memref<8x32xf32, #tpu.memory_space<vmem>>, %arg2: memref<32x16xbf16, #tpu.memory_space<vmem>>, %arg3: memref<1x16xf32, #tpu.memory_space<vmem>>, %arg4: memref<8x16xf32, #tpu.memory_space<vmem>>) attributes {dimension_semantics = [#tpu.dimension_semantics<parallel>], iteration_bounds = array<i64: 1>, scalar_prefetch = 0 : i64, scratch_operands = 0 : i64, tpu.core_type = #tpu.core_type<tc>, window_params = [{transform_indices = @transform_0, window_bounds = array<i64: 8, 32>}, {pipeline_mode = #tpu.pipeline_mode<synchronous>, transform_indices = @transform_1, window_bounds = array<i64: 32, 16>}, {pipeline_mode = #tpu.pipeline_mode<synchronous>, transform_indices = @transform_2, window_bounds = array<i64: 1, 16>}, {transform_indices = @transform_3, window_bounds = array<i64: 8, 16>}]} {
    %c0 = arith.constant 0 : index
    %c0_0 = arith.constant 0 : index
    %0 = vector.load %arg2[%c0, %c0_0] : memref<32x16xbf16, #tpu.memory_space<vmem>>, vector<32x16xbf16>
    %c0_1 = arith.constant 0 : index
    %c0_2 = arith.constant 0 : index
    %1 = vector.load %arg1[%c0_1, %c0_2] : memref<8x32xf32, #tpu.memory_space<vmem>>, vector<8x32xf32>
    %2 = arith.truncf %1 : vector<8x32xf32> to vector<8x32xbf16>
    %cst = arith.constant dense<0.000000e+00> : vector<8x16xf32>
    %3 = tpu.matmul %2, %0, %cst {dimension_numbers = #tpu.dot_dimension_numbers<[1], [0], [0], [1], [0, 0, 1, 1], [], []>} : vector<8x32xbf16>, vector<32x16xbf16>, vector<8x16xf32> -> vector<8x16xf32>
    %c0_3 = arith.constant 0 : index
    %c0_4 = arith.constant 0 : index
    %4 = vector.load %arg3[%c0_3, %c0_4] : memref<1x16xf32, #tpu.memory_space<vmem>>, vector<1x16xf32>
    %5 = vector.broadcast %4 : vector<1x16xf32> to vector<8x16xf32>
    %6 = arith.addf %3, %5 : vector<8x16xf32>
    %c0_5 = arith.constant 0 : index
    %c0_6 = arith.constant 0 : index
    %7 = vector.load %arg4[%c0_5, %c0_6] : memref<8x16xf32, #tpu.memory_space<vmem>>, vector<8x16xf32>
    tpu.vector_store %arg4[%c0_5, %c0_6], %6 {strides = array<i32>} : memref<8x16xf32, #tpu.memory_space<vmem>>, vector<8x16xf32>,
    return
  }
  func.func @transform_0(%arg0: i32) -> (i32, i32) {
    %c0_i32 = arith.constant 0 : i32
    %c0_i32_0 = arith.constant 0 : i32
    return %arg0, %c0_i32 : i32, i32
  }
  func.func @transform_1(%arg0: i32) -> (i32, i32) {
    %c0_i32 = arith.constant 0 : i32
    %c0_i32_0 = arith.constant 0 : i32
    %c0_i32_1 = arith.constant 0 : i32
    return %c0_i32, %c0_i32_0 : i32, i32
  }
  func.func @transform_2(%arg0: i32) -> (i32, i32) {
    %c0_i32 = arith.constant 0 : i32
    %c0_i32_0 = arith.constant 0 : i32
    %c0_i32_1 = arith.constant 0 : i32
    return %c0_i32, %c0_i32_0 : i32, i32
  }
  func.func @transform_3(%arg0: i32) -> (i32, i32) {
    %c0_i32 = arith.constant 0 : i32
    %c0_i32_0 = arith.constant 0 : i32
    return %arg0, %c0_i32 : i32, i32
  }
}

module attributes {stable_mosaic.version = 11 : i64} {
  func.func @_matmul_kernel(%arg0: i32, %arg1: memref<8x64xf32, #tpu.memory_space<vmem>>, %arg2: memref<64x32xbf16, #tpu.memory_space<vmem>>, %arg3: memref<1x32xf32, #tpu.memory_space<vmem>>, %arg4: memref<8x32xf32, #tpu.memory_space<vmem>>) attributes {dimension_semantics = [#tpu.dimension_semantics<parallel>], iteration_bounds = array<i64: 1>, scalar_prefetch = 0 : i64, scratch_operands = 0 : i64, tpu.core_type = #tpu.core_type<tc>, window_params = [{transform_indices = @transform_0, window_bounds = array<i64: 8, 64>}, {pipeline_mode = #tpu.pipeline_mode<synchronous>, transform_indices = @transform_1, window_bounds = array<i64: 64, 32>}, {pipeline_mode = #tpu.pipeline_mode<synchronous>, transform_indices = @transform_2, window_bounds = array<i64: 1, 32>}, {transform_indices = @transform_3, window_bounds = array<i64: 8, 32>}]} {
    %c0 = arith.constant 0 : index
    %c0_0 = arith.constant 0 : index
    %0 = vector.load %arg2[%c0, %c0_0] : memref<64x32xbf16, #tpu.memory_space<vmem>>, vector<64x32xbf16>
    %c0_1 = arith.constant 0 : index
    %c0_2 = arith.constant 0 : index
    %1 = vector.load %arg1[%c0_1, %c0_2] : memref<8x64xf32, #tpu.memory_space<vmem>>, vector<8x64xf32>
    %2 = arith.truncf %1 : vector<8x64xf32> to vector<8x64xbf16>
    %cst = arith.constant dense<0.000000e+00> : vector<8x32xf32>
    %3 = tpu.matmul %2, %0, %cst {dimension_numbers = #tpu.dot_dimension_numbers<[1], [0], [0], [1], [0, 0, 1, 1], [], []>} : vector<8x64xbf16>, vector<64x32xbf16>, vector<8x32xf32> -> vector<8x32xf32>
    %c0_3 = arith.constant 0 : index
    %c0_4 = arith.constant 0 : index
    %4 = vector.load %arg3[%c0_3, %c0_4] : memref<1x32xf32, #tpu.memory_space<vmem>>, vector<1x32xf32>
    %5 = vector.broadcast %4 : vector<1x32xf32> to vector<8x32xf32>
    %6 = arith.addf %3, %5 : vector<8x32xf32>
    %cst_5 = arith.constant 0.000000e+00 : f32
    %7 = vector.broadcast %cst_5 : f32 to vector<8x32xf32>
    %8 = arith.maximumf %6, %7 : vector<8x32xf32>
    %c0_6 = arith.constant 0 : index
    %c0_7 = arith.constant 0 : index
    %9 = vector.load %arg4[%c0_6, %c0_7] : memref<8x32xf32, #tpu.memory_space<vmem>>, vector<8x32xf32>
    tpu.vector_store %arg4[%c0_6, %c0_7], %8 {strides = array<i32>} : memref<8x32xf32, #tpu.memory_space<vmem>>, vector<8x32xf32>,
    return
  }
  func.func @transform_0(%arg0: i32) -> (i32, i32) {
    %c0_i32 = arith.constant 0 : i32
    %c0_i32_0 = arith.constant 0 : i32
    return %arg0, %c0_i32 : i32, i32
  }
  func.func @transform_1(%arg0: i32) -> (i32, i32) {
    %c0_i32 = arith.constant 0 : i32
    %c0_i32_0 = arith.constant 0 : i32
    %c0_i32_1 = arith.constant 0 : i32
    return %c0_i32, %c0_i32_0 : i32, i32
  }
  func.func @transform_2(%arg0: i32) -> (i32, i32) {
    %c0_i32 = arith.constant 0 : i32
    %c0_i32_0 = arith.constant 0 : i32
    %c0_i32_1 = arith.constant 0 : i32
    return %c0_i32, %c0_i32_0 : i32, i32
  }
  func.func @transform_3(%arg0: i32) -> (i32, i32) {
    %c0_i32 = arith.constant 0 : i32
    %c0_i32_0 = arith.constant 0 : i32
    return %arg0, %c0_i32 : i32, i32
  }
}

</mosaic_0001>

<bundles_post_ra>
// kernel: transformer_model_forward.18
= control target key start
LH: loop header
LB: loop body
LE: loop exit
PB: predicated region body
PF: predicated region fallthrough
CT: control target
= control target key end

     0   :  { %9 = vsyncpa [#allocation3], 0  ;;  %s1344_s0 = inlined_call_operand.vmem [shape: f32[368,12], index: 0, kind: input, shape index: {}]   ;;  %s1345_s1 = inlined_call_operand.vmem [shape: f32[368,12], index: 1, kind: input, shape index: {}]   ;;  %s1346_s2 = inlined_call_operand.hbm [shape: bf16[12,32], index: 2, kind: input, shape index: {}]   ;;  %s1347_s3 = inlined_call_operand.hbm [shape: f32[1,32], index: 3, kind: input, shape index: {}]   ;;  %s1348_s4 = inlined_call_operand.vmem [shape: f32[368,32], index: 4, kind: output, shape index: {}]  }
   0x1   :  { %10 = vsyncpa [#allocation5], 0  ;;  %s1101_s15 = smov 0  }
   0x2 LB: > { %s852_s16 = sadd.s32 4294967295, %s1070_s15   ;;  %p854_p0 = scmp.ge.s32.totalorder %s1070_s15, 1  ;;  %s1070_s15 = sphi %s1101_s15, %s16_s15  }
   0x3   : > { %p141_p1 = scmp.lt.s32.totalorder %s1070_s15, 3  ;;  %s1072_s17 = smov [#allocation2]  }
   0x4   : > { %s153_s18 = sshll.u32 %s1072_s17, 4  ;;  %p1115_p3 = scmp.eq.s32.totalorder %s852_s16, 0  ;;  %s154_s18 = int_to_ptr.vmem [resolvable:$true] %s153_s18 }
   0x5   : > { %p1109_p2 = pnand %p854_p0, %p141_p1  ;;  %s1073_s21 = smov [#allocation4]  }
   0x6   : > { %s167_s22 = sshll.u32 %s1073_s21, 4  ;;  %s1015_s24 = scalar_lea.vmem %s154_s18, 128  ;;  %s168_s22 = int_to_ptr.vmem [resolvable:$true] %s167_s22 }
   0x7   : > { %p980_p4 = pneg %p1109_p2  ;;  %p1016_p7 = scmp.ne.s32.totalorder %s154_s18, %s1015_s24 }
   0x8   : > { %p1023_p10 = scmp.lt.s32.totalorder %s154_s18, %s154_s18  ;;  %p1024_p11 = scmp.lt.s32.totalorder %s1015_s24, %s1015_s24 }
   0x9   : > { %p1123_p5 = pnand %p1115_p3, %p980_p4 }
   0xa   : > { %p1025_p12 = por %p1024_p11, %p1023_p10 }
   0xb   : > { %p1006_p6 = pneg %p1123_p5 }
   0xd   : > { %p1018_p8 = pnand %p1016_p7, %p1006_p6 }
   0xf   : > { %p1019_p9 = pneg %p1018_p8 }
  0x11   : > { %p1026_p13 = pnand %p1025_p12, %p1019_p9 }
  0x13   : > { %1029 = shalt.err (!%p1026_p13)
}
  0x14   : > { %s1074_s25 = smov 64   ;;  %s1075_s26 = smov 4  }
  0x15   : > { %983 = dma.hbm_to_vmem [thread:$0]  (!%p1123_p5), %s1346_s2, 128, %s154_s18, [#allocation3], %s1074_s25, %s1074_s25, %s1075_s26  }
  0x16   : > { %s1041_s29 = scalar_lea.vmem %s168_s22, 16  ;;  %s1048_s30 = scalar_lea.vmem %s168_s22, 32 }
  0x17   : > { %p1042_p0 = scmp.ne.s32.totalorder %s168_s22, %s1041_s29  ;;  %p1049_p7 = scmp.lt.s32.totalorder %s168_s22, %s168_s22 }
  0x18   : > { %p1050_p8 = scmp.lt.s32.totalorder %s1048_s30, %s1041_s29 }
  0x19   : > { %p1044_p1 = pnand %p1042_p0, %p1006_p6 }
  0x1a   : > { %p1051_p9 = por %p1050_p8, %p1049_p7 }
  0x1b   : > { %p1045_p4 = pneg %p1044_p1 }
  0x1d   : > { %p1052_p10 = pnand %p1051_p9, %p1045_p4 }
  0x1f   : > { %1055 = shalt.err (!%p1052_p10)
}
  0x20   : > { %986 = dma.hbm_to_vmem [thread:$0]  (!%p1123_p5), %s1347_s3, 16, %s168_s22, [#allocation5]  }
  0x21   : > { %198 = sbr.rel (%p1109_p2) target bundleno = 299 (0x12b), region = 36 }
  0x26   : > { %1061 = dma.done.wait (%p1115_p3), [#allocation3], 128  }
  0x27   : > { %1063 = vsyncadd (%p1115_p3), [#allocation3], 4294967168 }
  0x28   : > { %1065 = dma.done.wait (%p1115_p3), [#allocation5], 16  }
  0x29   : > { %1067 = vsyncadd (%p1115_p3), [#allocation5], 4294967280  ;;  %s233_s7 = smul.u32 23, %s852_s16  ;;  %vm338_vm0 = vcmask 1045504   ;;  %v1003_v0 = vld [vmem:[#allocation2] sm:$0x3f]  }
  0x2a   : > { %vm301_vm1 = vcmask 97280   ;;  %970 = vmatprep.subr.msk.bf16.mxu0 %vm338_vm0, %v1003_v0  ;;  %971 = vmatprep.subr.msk.bf16.mxu1 %vm338_vm0, %v1003_v0  ;;  %v340_v4 = vsel %vm338_vm0, %v1003_v0, 0  ;;  %vm738_vm2 = vcmask 261120  }
  0x2b   : > { %p234_p6 = scmp.lt.s32.totalorder %s233_s7, 45  ;;  %919 = vmatpush3.bf16.msra.mxu0 %v340_v4  ;;  %945 = vmatpush3.bf16.msra.mxu1 %v340_v4 }
  0x2d   : > { %s1353_s7 = smov (!%p234_p6, %s233_s7), 45 }
  0x2e   : > { %s1157_s8 = sshll.u32 %s1353_s7, 3 }
  0x2f   : > { %s1163_s11 = scalar_lea.vmem %s1344_s0, %s1157_s8  ;;  %s1171_s14 = scalar_lea.vmem %s1345_s1, %s1157_s8 }
  0x30   : > { %v255_v1 = vld [vmem:[%s1163_s11] sm:$0xff]  ;;  %v256_v2 = vld [vmem:[%s1163_s11 + $0x8] sm:$0xff]  ;;  %v257_v3 = vld [vmem:[%s1163_s11 + $0x10] sm:$0xff]  ;;  %s1251_s18 = scalar_lea.vmem %s1348_s4, %s1157_s8 }
  0x31   : > { %v278_v5 = vpack.c.bf16 %v256_v2, %v255_v1  ;;  %v493_v6 = vld [vmem:[%s1171_s14] sm:$0xff]  ;;  %v494_v7 = vld [vmem:[%s1171_s14 + $0x8] sm:$0xff]  ;;  %v258_v8 = vld [vmem:[%s1163_s11 + $0x18] sm:$0xff] }
  0x32   : > { %v516_v9 = vpack.c.bf16 %v494_v7, %v493_v6  ;;  %v279_v10 = vpack.c.bf16 %v258_v8, %v257_v3  ;;  %v495_v11 = vld [vmem:[%s1171_s14 + $0x10] sm:$0xff]  ;;  %v496_v12 = vld [vmem:[%s1171_s14 + $0x18] sm:$0xff]  ;;  %v259_v13 = vld [vmem:[%s1163_s11 + $0x20] sm:$0xff] }
  0x33   : > { %920 = vmatprep.mubr.msk.bf16.mxu0 %vm301_vm1, %v278_v5  ;;  %v517_v14 = vpack.c.bf16 %v496_v12, %v495_v11  ;;  %v260_v15 = vld [vmem:[%s1163_s11 + $0x28] sm:$0xff]  ;;  %v497_v16 = vld [vmem:[%s1171_s14 + $0x20] sm:$0xff]  ;;  %v261_v20 = vld [vmem:[%s1163_s11 + $0x30] sm:$0xff] }
  0x34   : > { %v498_v17 = vld [vmem:[%s1171_s14 + $0x28] sm:$0xff]  ;;  %946 = vmatprep.mubr.msk.bf16.mxu1 %vm301_vm1, %v516_v9  ;;  %v280_v18 = vpack.c.bf16 %v260_v15, %v259_v13  ;;  %921 = vmatmul.mubr.msk.bf16.vlgmr.msra.gmra.mxu0 %vm301_vm1, %v279_v10  ;;  %v262_v21 = vld [vmem:[%s1163_s11 + $0x38] sm:$0xff]  ;;  %v499_v22 = vld [vmem:[%s1171_s14 + $0x30] sm:$0xff] }
  0x35   : > { %v518_v19 = vpack.c.bf16 %v498_v17, %v497_v16  ;;  %947 = vmatmul.mubr.msk.bf16.vlgmr.msra.gmra.mxu1 %vm301_vm1, %v517_v14  ;;  %v500_v23 = vld [vmem:[%s1171_s14 + $0x38] sm:$0xff]  ;;  %v263_v24 = vld [vmem:[%s1163_s11 + $0x40] sm:$0xff]  ;;  %v264_v25 = vld [vmem:[%s1163_s11 + $0x48] sm:$0xff]  ;;  %v281_v28 = vpack.c.bf16 %v262_v21, %v261_v20 }
  0x36   : > { %924 = vmatprep.mubr.msk.bf16.mxu0 %vm301_vm1, %v280_v18  ;;  %v501_v26 = vld [vmem:[%s1171_s14 + $0x40] sm:$0xff]  ;;  %v502_v27 = vld [vmem:[%s1171_s14 + $0x48] sm:$0xff]  ;;  %v519_v29 = vpack.c.bf16 %v500_v23, %v499_v22  ;;  %v282_v30 = vpack.c.bf16 %v264_v25, %v263_v24  ;;  %v265_v32 = vld [vmem:[%s1163_s11 + $0x50] sm:$0xff] }
  0x37   : > { %950 = vmatprep.mubr.msk.bf16.mxu1 %vm301_vm1, %v518_v19  ;;  %v520_v31 = vpack.c.bf16 %v502_v27, %v501_v26  ;;  %v266_v33 = vld [vmem:[%s1163_s11 + $0x58] sm:$0xff]  ;;  %v503_v34 = vld [vmem:[%s1171_s14 + $0x50] sm:$0xff]  ;;  %v267_v36 = vld [vmem:[%s1163_s11 + $0x60] sm:$0xff] }
  0x38   : > { %v504_v35 = vld [vmem:[%s1171_s14 + $0x58] sm:$0xff]  ;;  %v268_v37 = vld [vmem:[%s1163_s11 + $0x68] sm:$0xff]  ;;  %v505_v38 = vld [vmem:[%s1171_s14 + $0x60] sm:$0xff]  ;;  %v283_v40 = vpack.c.bf16 %v266_v33, %v265_v32 }
  0x39   : > { %v506_v39 = vld [vmem:[%s1171_s14 + $0x68] sm:$0xff]  ;;  %v521_v41 = vpack.c.bf16 %v504_v35, %v503_v34  ;;  %v284_v42 = vpack.c.bf16 %v268_v37, %v267_v36  ;;  %v269_v44 = vld [vmem:[%s1163_s11 + $0x70] sm:$0xff]  ;;  %v270_v45 = vld [vmem:[%s1163_s11 + $0x78] sm:$0xff] }
  0x3a   : > { %v522_v43 = vpack.c.bf16 %v506_v39, %v505_v38  ;;  %v507_v46 = vld [vmem:[%s1171_s14 + $0x70] sm:$0xff]  ;;  %v508_v47 = vld [vmem:[%s1171_s14 + $0x78] sm:$0xff]  ;;  %v271_v48 = vld [vmem:[%s1163_s11 + $0x80] sm:$0xff]  ;;  %v285_v52 = vpack.c.bf16 %v270_v45, %v269_v44 }
  0x3b   : > { %v272_v49 = vld [vmem:[%s1163_s11 + $0x88] sm:$0xff]  ;;  %v509_v50 = vld [vmem:[%s1171_s14 + $0x80] sm:$0xff]  ;;  %v523_v53 = vpack.c.bf16 %v508_v47, %v507_v46  ;;  %v273_v56 = vld [vmem:[%s1163_s11 + $0x90] sm:$0xff] }
  0x3c   : > { %925 = vmatmul.mubr.msk.bf16.gmra.mxu0 %vm301_vm1, %v281_v28  ;;  %v510_v51 = vld [vmem:[%s1171_s14 + $0x88] sm:$0xff]  ;;  %v286_v54 = vpack.c.bf16 %v272_v49, %v271_v48  ;;  %v274_v57 = vld [vmem:[%s1163_s11 + $0x98] sm:$0xff]  ;;  %v511_v58 = vld [vmem:[%s1171_s14 + $0x90] sm:$0xff] }
  0x3d   : > { %951 = vmatmul.mubr.msk.bf16.gmra.mxu1 %vm301_vm1, %v519_v29  ;;  %928 = vmatprep.mubr.msk.bf16.mxu0 %vm301_vm1, %v282_v30  ;;  %v524_v55 = vpack.c.bf16 %v510_v51, %v509_v50  ;;  %v512_v59 = vld [vmem:[%s1171_s14 + $0x98] sm:$0xff]  ;;  %v275_v60 = vld [vmem:[%s1163_s11 + $0xa0] sm:$0xff]  ;;  %v276_v61 = vld [vmem:[%s1163_s11 + $0xa8] sm:$0xff]  ;;  %v287_v0 = vpack.c.bf16 %v274_v57, %v273_v56 }
  0x3e   : > { %954 = vmatprep.mubr.msk.bf16.mxu1 %vm301_vm1, %v520_v31  ;;  %v513_v62 = vld [vmem:[%s1171_s14 + $0xa0] sm:$0xff]  ;;  %v514_v63 = vld [vmem:[%s1171_s14 + $0xa8] sm:$0xff]  ;;  %v525_v1 = vpack.c.bf16 %v512_v59, %v511_v58  ;;  %v288_v2 = vpack.c.bf16 %v276_v61, %v275_v60  ;;  %v277_v4 = vld [vmem:[%s1163_s11 + $0xb0] sm:$0xff] }
  0x3f   : > { %v526_v3 = vpack.c.bf16 %v514_v63, %v513_v62  ;;  %v515_v5 = vld [vmem:[%s1171_s14 + $0xb0] sm:$0xff]  ;;  %v289_v6 = vpack.c.bf16 %v277_v4, %v277_v4  ;;  %v1241_v8 = vld [vmem:[#allocation4] ss:$0 sm:$0xff] }
  0x40   : > { %v527_v7 = vpack.c.bf16 %v515_v5, %v515_v5 }
  0x44   : > { %929 = vmatmul.mubr.msk.bf16.gmra.mxu0 %vm301_vm1, %v283_v40 }
  0x45   : > { %955 = vmatmul.mubr.msk.bf16.gmra.mxu1 %vm301_vm1, %v521_v41  ;;  %932 = vmatprep.mubr.msk.bf16.mxu0 %vm301_vm1, %v284_v42 }
  0x46   : > { %958 = vmatprep.mubr.msk.bf16.mxu1 %vm301_vm1, %v522_v43 }
  0x4c   : > { %933 = vmatmul.mubr.msk.bf16.gmra.mxu0 %vm301_vm1, %v285_v52 }
  0x4d   : > { %959 = vmatmul.mubr.msk.bf16.gmra.mxu1 %vm301_vm1, %v523_v53  ;;  %936 = vmatprep.mubr.msk.bf16.mxu0 %vm301_vm1, %v286_v54 }
  0x4e   : > { %962 = vmatprep.mubr.msk.bf16.mxu1 %vm301_vm1, %v524_v55 }
  0x54   : > { %937 = vmatmul.mubr.msk.bf16.gmra.mxu0 %vm301_vm1, %v287_v0 }
  0x55   : > { %963 = vmatmul.mubr.msk.bf16.gmra.mxu1 %vm301_vm1, %v525_v1  ;;  %940 = vmatprep.mubr.msk.bf16.mxu0 %vm301_vm1, %v288_v2 }
  0x56   : > { %966 = vmatprep.mubr.msk.bf16.mxu1 %vm301_vm1, %v526_v3 }
  0x5c   : > { %941 = vmatmul.mubr.msk.bf16.gmra.mxu0 %vm301_vm1, %v289_v6 }
  0x5d   : > { %967 = vmatmul.mubr.msk.bf16.gmra.mxu1 %vm301_vm1, %v527_v7 }
  0xf4   : > { %v922_v9 = vpop.f32.mrf.mxu0 }
  0xf5   : > { %v948_v10 = vpop.f32.mrf.mxu1  ;;  %v385_v11 = vadd.f32 %v922_v9, %v1241_v8 }
  0xf6   : > { %v607_v12 = vadd.f32 %v948_v10, %v1241_v8  ;;  %v376_v13 = vpop.f32.mrf.mxu0 }
  0xf7   : > { %v598_v14 = vpop.f32.mrf.mxu1  ;;  %v472_v15 = vmax.f32 %v385_v11, 0.0  ;;  %v377_v17 = vadd.f32 %v1241_v8, %v376_v13 }
  0xf8   : > { %v694_v16 = vmax.f32 %v607_v12, 0.0  ;;  %v599_v18 = vadd.f32 %v1241_v8, %v598_v14  ;;  %v923_v19 = vpop.f32.mrf.mxu0 }
  0xf9   : > { %v949_v20 = vpop.f32.mrf.mxu1  ;;  %v470_v22 = vmax.f32 %v377_v17, 0.0  ;;  %v388_v24 = vadd.f32 %v923_v19, %v1241_v8 }
  0xfa   : > { %v717_v21 = vmax.f32 %v472_v15, %v694_v16  ;;  %v692_v23 = vmax.f32 %v599_v18, 0.0  ;;  %v610_v25 = vadd.f32 %v949_v20, %v1241_v8  ;;  %v379_v26 = vpop.f32.mrf.mxu0 }
  0xfb   : > { %v601_v27 = vpop.f32.mrf.mxu1  ;;  %v473_v29 = vmax.f32 %v388_v24, 0.0  ;;  %v380_v30 = vadd.f32 %v1241_v8, %v379_v26 }
  0xfc   : > { %741 = vst.msk [vmem:[%s1251_s18 + $0x10] sm:$0xff] %vm738_vm2, %v717_v21  ;;  %v715_v28 = vmax.f32 %v470_v22, %v692_v23  ;;  %v602_v31 = vadd.f32 %v1241_v8, %v601_v27  ;;  %v695_v32 = vmax.f32 %v610_v25, 0.0  ;;  %v926_v33 = vpop.f32.mrf.mxu0 }
  0xfd   : > { %v952_v34 = vpop.f32.mrf.mxu1  ;;  %v471_v35 = vmax.f32 %v380_v30, 0.0  ;;  %v401_v37 = vadd.f32 %v926_v33, %v1241_v8 }
  0xfe   : > { %739 = vst.msk [vmem:[%s1251_s18] sm:$0xff] %vm738_vm2, %v715_v28  ;;  %v693_v36 = vmax.f32 %v602_v31, 0.0  ;;  %v623_v38 = vadd.f32 %v952_v34, %v1241_v8  ;;  %v718_v39 = vmax.f32 %v473_v29, %v695_v32  ;;  %v392_v40 = vpop.f32.mrf.mxu0 }
  0xff   : > { %v614_v41 = vpop.f32.mrf.mxu1  ;;  %v476_v43 = vmax.f32 %v401_v37, 0.0  ;;  %v393_v45 = vadd.f32 %v1241_v8, %v392_v40 }
 0x100   : > { %v716_v42 = vmax.f32 %v471_v35, %v693_v36  ;;  %v698_v44 = vmax.f32 %v623_v38, 0.0  ;;  %742 = vst.msk [vmem:[%s1251_s18 + $0x18] sm:$0xff] %vm738_vm2, %v718_v39  ;;  %v615_v46 = vadd.f32 %v1241_v8, %v614_v41  ;;  %v927_v47 = vpop.f32.mrf.mxu0 }
 0x101   : > { %v953_v48 = vpop.f32.mrf.mxu1  ;;  %v474_v50 = vmax.f32 %v393_v45, 0.0  ;;  %v404_v51 = vadd.f32 %v927_v47, %v1241_v8 }
 0x102   : > { %740 = vst.msk [vmem:[%s1251_s18 + $0x8] sm:$0xff] %vm738_vm2, %v716_v42  ;;  %v721_v49 = vmax.f32 %v476_v43, %v698_v44  ;;  %v626_v52 = vadd.f32 %v953_v48, %v1241_v8  ;;  %v696_v53 = vmax.f32 %v615_v46, 0.0  ;;  %v395_v54 = vpop.f32.mrf.mxu0 }
 0x103   : > { %v617_v55 = vpop.f32.mrf.mxu1  ;;  %v477_v56 = vmax.f32 %v404_v51, 0.0  ;;  %v396_v58 = vadd.f32 %v1241_v8, %v395_v54 }
 0x104   : > { %745 = vst.msk [vmem:[%s1251_s18 + $0x30] sm:$0xff] %vm738_vm2, %v721_v49  ;;  %v699_v57 = vmax.f32 %v626_v52, 0.0  ;;  %v618_v59 = vadd.f32 %v1241_v8, %v617_v55  ;;  %v719_v60 = vmax.f32 %v474_v50, %v696_v53  ;;  %v930_v61 = vpop.f32.mrf.mxu0 }
 0x105   : > { %v956_v62 = vpop.f32.mrf.mxu1  ;;  %v475_v0 = vmax.f32 %v396_v58, 0.0  ;;  %v417_v2 = vadd.f32 %v930_v61, %v1241_v8 }
 0x106   : > { %v722_v63 = vmax.f32 %v477_v56, %v699_v57  ;;  %v697_v1 = vmax.f32 %v618_v59, 0.0  ;;  %743 = vst.msk [vmem:[%s1251_s18 + $0x20] sm:$0xff] %vm738_vm2, %v719_v60  ;;  %v639_v3 = vadd.f32 %v956_v62, %v1241_v8  ;;  %v408_v4 = vpop.f32.mrf.mxu0 }
 0x107   : > { %v630_v5 = vpop.f32.mrf.mxu1  ;;  %v480_v7 = vmax.f32 %v417_v2, 0.0  ;;  %v409_v9 = vadd.f32 %v1241_v8, %v408_v4 }
 0x108   : > { %746 = vst.msk [vmem:[%s1251_s18 + $0x38] sm:$0xff] %vm738_vm2, %v722_v63  ;;  %v720_v6 = vmax.f32 %v475_v0, %v697_v1  ;;  %v631_v10 = vadd.f32 %v1241_v8, %v630_v5  ;;  %v702_v11 = vmax.f32 %v639_v3, 0.0  ;;  %v931_v12 = vpop.f32.mrf.mxu0 }
 0x109   : > { %v957_v13 = vpop.f32.mrf.mxu1  ;;  %v478_v14 = vmax.f32 %v409_v9, 0.0  ;;  %v420_v16 = vadd.f32 %v931_v12, %v1241_v8 }
 0x10a   : > { %744 = vst.msk [vmem:[%s1251_s18 + $0x28] sm:$0xff] %vm738_vm2, %v720_v6  ;;  %v700_v15 = vmax.f32 %v631_v10, 0.0  ;;  %v642_v17 = vadd.f32 %v957_v13, %v1241_v8  ;;  %v725_v18 = vmax.f32 %v480_v7, %v702_v11  ;;  %v411_v19 = vpop.f32.mrf.mxu0 }
 0x10b   : > { %v633_v20 = vpop.f32.mrf.mxu1  ;;  %v481_v22 = vmax.f32 %v420_v16, 0.0  ;;  %v412_v24 = vadd.f32 %v1241_v8, %v411_v19 }
 0x10c   : > { %v723_v21 = vmax.f32 %v478_v14, %v700_v15  ;;  %v703_v23 = vmax.f32 %v642_v17, 0.0  ;;  %749 = vst.msk [vmem:[%s1251_s18 + $0x50] sm:$0xff] %vm738_vm2, %v725_v18  ;;  %v634_v25 = vadd.f32 %v1241_v8, %v633_v20  ;;  %v934_v26 = vpop.f32.mrf.mxu0 }
 0x10d   : > { %v960_v27 = vpop.f32.mrf.mxu1  ;;  %v479_v29 = vmax.f32 %v412_v24, 0.0  ;;  %v433_v30 = vadd.f32 %v934_v26, %v1241_v8 }
 0x10e   : > { %747 = vst.msk [vmem:[%s1251_s18 + $0x40] sm:$0xff] %vm738_vm2, %v723_v21  ;;  %v726_v28 = vmax.f32 %v481_v22, %v703_v23  ;;  %v655_v31 = vadd.f32 %v960_v27, %v1241_v8  ;;  %v701_v32 = vmax.f32 %v634_v25, 0.0  ;;  %v424_v33 = vpop.f32.mrf.mxu0 }
 0x10f   : > { %v646_v34 = vpop.f32.mrf.mxu1  ;;  %v484_v35 = vmax.f32 %v433_v30, 0.0  ;;  %v425_v37 = vadd.f32 %v1241_v8, %v424_v33 }
 0x110   : > { %750 = vst.msk [vmem:[%s1251_s18 + $0x58] sm:$0xff] %vm738_vm2, %v726_v28  ;;  %v706_v36 = vmax.f32 %v655_v31, 0.0  ;;  %v647_v38 = vadd.f32 %v1241_v8, %v646_v34  ;;  %v724_v39 = vmax.f32 %v479_v29, %v701_v32  ;;  %v935_v40 = vpop.f32.mrf.mxu0 }
 0x111   : > { %v961_v41 = vpop.f32.mrf.mxu1  ;;  %v482_v43 = vmax.f32 %v425_v37, 0.0  ;;  %v436_v45 = vadd.f32 %v935_v40, %v1241_v8 }
 0x112   : > { %v729_v42 = vmax.f32 %v484_v35, %v706_v36  ;;  %v704_v44 = vmax.f32 %v647_v38, 0.0  ;;  %748 = vst.msk [vmem:[%s1251_s18 + $0x48] sm:$0xff] %vm738_vm2, %v724_v39  ;;  %v658_v46 = vadd.f32 %v961_v41, %v1241_v8  ;;  %v427_v47 = vpop.f32.mrf.mxu0 }
 0x113   : > { %v649_v48 = vpop.f32.mrf.mxu1  ;;  %v485_v50 = vmax.f32 %v436_v45, 0.0  ;;  %v428_v51 = vadd.f32 %v1241_v8, %v427_v47 }
 0x114   : > { %753 = vst.msk [vmem:[%s1251_s18 + $0x70] sm:$0xff] %vm738_vm2, %v729_v42  ;;  %v727_v49 = vmax.f32 %v482_v43, %v704_v44  ;;  %v650_v52 = vadd.f32 %v1241_v8, %v649_v48  ;;  %v707_v53 = vmax.f32 %v658_v46, 0.0  ;;  %v938_v54 = vpop.f32.mrf.mxu0 }
 0x115   : > { %v964_v55 = vpop.f32.mrf.mxu1  ;;  %v483_v56 = vmax.f32 %v428_v51, 0.0  ;;  %v449_v58 = vadd.f32 %v938_v54, %v1241_v8 }
 0x116   : > { %751 = vst.msk [vmem:[%s1251_s18 + $0x60] sm:$0xff] %vm738_vm2, %v727_v49  ;;  %v705_v57 = vmax.f32 %v650_v52, 0.0  ;;  %v671_v59 = vadd.f32 %v964_v55, %v1241_v8  ;;  %v730_v60 = vmax.f32 %v485_v50, %v707_v53  ;;  %v440_v61 = vpop.f32.mrf.mxu0 }
 0x117   : > { %v662_v62 = vpop.f32.mrf.mxu1  ;;  %v488_v0 = vmax.f32 %v449_v58, 0.0  ;;  %v441_v2 = vadd.f32 %v1241_v8, %v440_v61 }
 0x118   : > { %v728_v63 = vmax.f32 %v483_v56, %v705_v57  ;;  %v710_v1 = vmax.f32 %v671_v59, 0.0  ;;  %754 = vst.msk [vmem:[%s1251_s18 + $0x78] sm:$0xff] %vm738_vm2, %v730_v60  ;;  %v663_v3 = vadd.f32 %v1241_v8, %v662_v62  ;;  %v939_v4 = vpop.f32.mrf.mxu0 }
 0x119   : > { %v965_v5 = vpop.f32.mrf.mxu1  ;;  %v486_v7 = vmax.f32 %v441_v2, 0.0  ;;  %v452_v9 = vadd.f32 %v939_v4, %v1241_v8 }
 0x11a   : > { %752 = vst.msk [vmem:[%s1251_s18 + $0x68] sm:$0xff] %vm738_vm2, %v728_v63  ;;  %v733_v6 = vmax.f32 %v488_v0, %v710_v1  ;;  %v674_v10 = vadd.f32 %v965_v5, %v1241_v8  ;;  %v708_v11 = vmax.f32 %v663_v3, 0.0  ;;  %v443_v12 = vpop.f32.mrf.mxu0 }
 0x11b   : > { %v665_v13 = vpop.f32.mrf.mxu1  ;;  %v489_v14 = vmax.f32 %v452_v9, 0.0  ;;  %v444_v16 = vadd.f32 %v1241_v8, %v443_v12 }
 0x11c   : > { %757 = vst.msk [vmem:[%s1251_s18 + $0x90] sm:$0xff] %vm738_vm2, %v733_v6  ;;  %v711_v15 = vmax.f32 %v674_v10, 0.0  ;;  %v666_v17 = vadd.f32 %v1241_v8, %v665_v13  ;;  %v731_v18 = vmax.f32 %v486_v7, %v708_v11  ;;  %v942_v19 = vpop.f32.mrf.mxu0 }
 0x11d   : > { %v968_v20 = vpop.f32.mrf.mxu1  ;;  %v487_v22 = vmax.f32 %v444_v16, 0.0  ;;  %v465_v24 = vadd.f32 %v942_v19, %v1241_v8 }
 0x11e   : > { %v734_v21 = vmax.f32 %v489_v14, %v711_v15  ;;  %v709_v23 = vmax.f32 %v666_v17, 0.0  ;;  %755 = vst.msk [vmem:[%s1251_s18 + $0x80] sm:$0xff] %vm738_vm2, %v731_v18  ;;  %v687_v25 = vadd.f32 %v968_v20, %v1241_v8  ;;  %v456_v26 = vpop.f32.mrf.mxu0 }
 0x11f   : > { %v678_v27 = vpop.f32.mrf.mxu1  ;;  %v492_v29 = vmax.f32 %v465_v24, 0.0  ;;  %v457_v30 = vadd.f32 %v1241_v8, %v456_v26 }
 0x120   : > { %758 = vst.msk [vmem:[%s1251_s18 + $0x98] sm:$0xff] %vm738_vm2, %v734_v21  ;;  %v732_v28 = vmax.f32 %v487_v22, %v709_v23  ;;  %v679_v31 = vadd.f32 %v1241_v8, %v678_v27  ;;  %v714_v32 = vmax.f32 %v687_v25, 0.0  ;;  %v943_v33 = vpop.f32.mrf.mxu0 }
 0x121   : > { %v969_v34 = vpop.f32.mrf.mxu1  ;;  %v490_v35 = vmax.f32 %v457_v30, 0.0 }
 0x122   : > { %756 = vst.msk [vmem:[%s1251_s18 + $0x88] sm:$0xff] %vm738_vm2, %v732_v28  ;;  %v712_v36 = vmax.f32 %v679_v31, 0.0  ;;  %v737_v37 = vmax.f32 %v492_v29, %v714_v32  ;;  %v459_v38 = vpop.f32.mrf.mxu0 }
 0x123   : > { %v681_v39 = vpop.f32.mrf.mxu1  ;;  %v460_v41 = vadd.f32 %v1241_v8, %v459_v38 }
 0x124   : > { %v735_v40 = vmax.f32 %v490_v35, %v712_v36  ;;  %v682_v42 = vadd.f32 %v1241_v8, %v681_v39  ;;  %761 = vst.msk [vmem:[%s1251_s18 + $0xb0] sm:$0xff] %vm738_vm2, %v737_v37 }
 0x125   : > { %v491_v43 = vmax.f32 %v460_v41, 0.0 }
 0x126   : > { %759 = vst.msk [vmem:[%s1251_s18 + $0xa0] sm:$0xff] %vm738_vm2, %v735_v40  ;;  %v713_v44 = vmax.f32 %v682_v42, 0.0 }
 0x128   : > { %v736_v45 = vmax.f32 %v491_v43, %v713_v44 }
 0x12a   : > { %760 = vst.msk [vmem:[%s1251_s18 + $0xa8] sm:$0xff] %vm738_vm2, %v736_v45 }
 0x12b PF: > { %s16_s15 = sadd.s32 1, %s1070_s15  }
 0x12c   : > { %p13_p2 = scmp.ge.s32.totalorder %s16_s15, 4  }
 0x12e   :  { %15 = sbr.rel (!%p13_p2) target bundleno = 2 (0x2), region = 78 }
 0x133   :  { %784 = vsyncpa [#allocation3], 1 }
 0x134   :  { %786 = vsyncpa [#allocation3 + $0x1], 1 }
 0x135   :  { %787 = vsyncpa [#allocation5], 1 }

// kernel: transformer_model_forward.19
= control target key start
LH: loop header
LB: loop body
LE: loop exit
PB: predicated region body
PF: predicated region fallthrough
CT: control target
= control target key end

     0   :  { %v724_v0 = vmov 0.0   ;;  %vm725_vm0 = vmmov 0   ;;  %vm106_vm1 = vcmask 785408   ;;  %vm514_vm2 = vcmask 523264   ;;  %s1116_s2 = inlined_call_operand.vmem [shape: bf16[96,64], index: 2, kind: input, shape index: {}]   ;;  %s1117_s0 = inlined_call_operand.vmem [shape: f32[176,96], index: 0, kind: input, shape index: {}]   ;;  %s1118_s1 = inlined_call_operand.vmem [shape: f32[176,96], index: 1, kind: input, shape index: {}]   ;;  %s1119_s3 = inlined_call_operand.vmem [shape: f32[1,64], index: 3, kind: input, shape index: {}]   ;;  %s1120_s4 = inlined_call_operand.vmem [shape: f32[176,64], index: 4, kind: output, shape index: {}]  }
   0x1   :  { %604 = vmatprep.subr.bf16.mxu0 %v724_v0  ;;  %660 = vmatprep.subr.bf16.mxu1 %v724_v0  ;;  %v718_v1 = vld [vmem:[%s1116_s2 + $0x28] sm:$0xff]   ;;  %v719_v2 = vld [vmem:[%s1116_s2 + $0x20] sm:$0xff]   ;;  %v720_v3 = vld [vmem:[%s1116_s2 + $0x18] sm:$0xff]  }
   0x2   :  { %616 = vmatprep.mubr.msk.bf16.mxu0 %vm725_vm0, %v724_v0  ;;  %672 = vmatprep.mubr.msk.bf16.mxu1 %vm725_vm0, %v724_v0  ;;  %v721_v4 = vld [vmem:[%s1116_s2 + $0x10] sm:$0xff]   ;;  %v722_v5 = vld [vmem:[%s1116_s2 + $0x8] sm:$0xff]   ;;  %v723_v6 = vld [vmem:[%s1116_s2] sm:$0xff]  }
   0x3   :  { %605 = vmatpush3.bf16.msra.mxu0 %v718_v1  ;;  %661 = vmatpush3.bf16.msra.mxu1 %v718_v1  ;;  %v31_v7 = vld [vmem:[%s1117_s0] sm:$0xff]  ;;  %v32_v8 = vld [vmem:[%s1117_s0 + $0x8] sm:$0xff]  ;;  %v33_v13 = vld [vmem:[%s1117_s0 + $0x10] sm:$0xff] }
   0x4   :  { %606 = vmatprep.subr.bf16.mxu0 %v724_v0  ;;  %662 = vmatprep.subr.bf16.mxu1 %v724_v0  ;;  %v283_v9 = vld [vmem:[%s1118_s1] sm:$0xff]  ;;  %v284_v10 = vld [vmem:[%s1118_s1 + $0x8] sm:$0xff]  ;;  %v53_v11 = vpack.c.bf16 %v32_v8, %v31_v7  ;;  %v34_v14 = vld [vmem:[%s1117_s0 + $0x18] sm:$0xff] }
   0x5   :  { %v305_v12 = vpack.c.bf16 %v284_v10, %v283_v9  ;;  %v285_v15 = vld [vmem:[%s1118_s1 + $0x10] sm:$0xff]  ;;  %v286_v16 = vld [vmem:[%s1118_s1 + $0x18] sm:$0xff]  ;;  %v54_v17 = vpack.c.bf16 %v34_v14, %v33_v13  ;;  %v35_v19 = vld [vmem:[%s1117_s0 + $0x20] sm:$0xff] }
   0x6   :  { %v306_v18 = vpack.c.bf16 %v286_v16, %v285_v15  ;;  %v36_v20 = vld [vmem:[%s1117_s0 + $0x28] sm:$0xff]  ;;  %v287_v21 = vld [vmem:[%s1118_s1 + $0x20] sm:$0xff]  ;;  %v37_v25 = vld [vmem:[%s1117_s0 + $0x30] sm:$0xff] }
   0x7   :  { %607 = vmatpush3.bf16.msra.mxu0 %v719_v2  ;;  %663 = vmatpush3.bf16.msra.mxu1 %v719_v2  ;;  %v288_v22 = vld [vmem:[%s1118_s1 + $0x28] sm:$0xff]  ;;  %v55_v23 = vpack.c.bf16 %v36_v20, %v35_v19  ;;  %v38_v26 = vld [vmem:[%s1117_s0 + $0x38] sm:$0xff]  ;;  %v289_v27 = vld [vmem:[%s1118_s1 + $0x30] sm:$0xff] }
   0x8   :  { %608 = vmatprep.subr.bf16.mxu0 %v724_v0  ;;  %664 = vmatprep.subr.bf16.mxu1 %v724_v0  ;;  %v307_v24 = vpack.c.bf16 %v288_v22, %v287_v21  ;;  %v290_v28 = vld [vmem:[%s1118_s1 + $0x38] sm:$0xff]  ;;  %v56_v29 = vpack.c.bf16 %v38_v26, %v37_v25  ;;  %v39_v31 = vld [vmem:[%s1117_s0 + $0x40] sm:$0xff]  ;;  %v40_v32 = vld [vmem:[%s1117_s0 + $0x48] sm:$0xff] }
   0x9   :  { %v308_v30 = vpack.c.bf16 %v290_v28, %v289_v27  ;;  %v291_v33 = vld [vmem:[%s1118_s1 + $0x40] sm:$0xff]  ;;  %v292_v34 = vld [vmem:[%s1118_s1 + $0x48] sm:$0xff]  ;;  %v57_v35 = vpack.c.bf16 %v40_v32, %v39_v31  ;;  %v41_v37 = vld [vmem:[%s1117_s0 + $0x50] sm:$0xff] }
   0xa   :  { %v309_v36 = vpack.c.bf16 %v292_v34, %v291_v33  ;;  %v42_v38 = vld [vmem:[%s1117_s0 + $0x58] sm:$0xff]  ;;  %v293_v39 = vld [vmem:[%s1118_s1 + $0x50] sm:$0xff]  ;;  %v43_v43 = vld [vmem:[%s1117_s0 + $0x60] sm:$0xff] }
   0xb   :  { %609 = vmatpush3.bf16.msra.mxu0 %v720_v3  ;;  %665 = vmatpush3.bf16.msra.mxu1 %v720_v3  ;;  %v294_v40 = vld [vmem:[%s1118_s1 + $0x58] sm:$0xff]  ;;  %v58_v41 = vpack.c.bf16 %v42_v38, %v41_v37  ;;  %v44_v44 = vld [vmem:[%s1117_s0 + $0x68] sm:$0xff]  ;;  %v295_v45 = vld [vmem:[%s1118_s1 + $0x60] sm:$0xff] }
   0xc   :  { %610 = vmatprep.subr.bf16.mxu0 %v724_v0  ;;  %666 = vmatprep.subr.bf16.mxu1 %v724_v0  ;;  %v310_v42 = vpack.c.bf16 %v294_v40, %v293_v39  ;;  %v296_v46 = vld [vmem:[%s1118_s1 + $0x68] sm:$0xff]  ;;  %v59_v47 = vpack.c.bf16 %v44_v44, %v43_v43  ;;  %v45_v49 = vld [vmem:[%s1117_s0 + $0x70] sm:$0xff]  ;;  %v46_v50 = vld [vmem:[%s1117_s0 + $0x78] sm:$0xff] }
   0xd   :  { %v311_v48 = vpack.c.bf16 %v296_v46, %v295_v45  ;;  %v297_v51 = vld [vmem:[%s1118_s1 + $0x70] sm:$0xff]  ;;  %v298_v52 = vld [vmem:[%s1118_s1 + $0x78] sm:$0xff]  ;;  %v60_v53 = vpack.c.bf16 %v46_v50, %v45_v49  ;;  %v47_v55 = vld [vmem:[%s1117_s0 + $0x80] sm:$0xff] }
   0xe   :  { %v312_v54 = vpack.c.bf16 %v298_v52, %v297_v51  ;;  %v48_v56 = vld [vmem:[%s1117_s0 + $0x88] sm:$0xff]  ;;  %v299_v57 = vld [vmem:[%s1118_s1 + $0x80] sm:$0xff]  ;;  %v49_v61 = vld [vmem:[%s1117_s0 + $0x90] sm:$0xff] }
   0xf   :  { %611 = vmatpush3.bf16.msra.mxu0 %v721_v4  ;;  %667 = vmatpush3.bf16.msra.mxu1 %v721_v4  ;;  %v300_v58 = vld [vmem:[%s1118_s1 + $0x88] sm:$0xff]  ;;  %v61_v59 = vpack.c.bf16 %v48_v56, %v47_v55  ;;  %v50_v62 = vld [vmem:[%s1117_s0 + $0x98] sm:$0xff]  ;;  %v301_v63 = vld [vmem:[%s1118_s1 + $0x90] sm:$0xff] }
  0x10   :  { %612 = vmatprep.subr.bf16.mxu0 %v724_v0  ;;  %668 = vmatprep.subr.bf16.mxu1 %v724_v0  ;;  %v313_v60 = vpack.c.bf16 %v300_v58, %v299_v57  ;;  %v302_v1 = vld [vmem:[%s1118_s1 + $0x98] sm:$0xff]  ;;  %v62_v2 = vpack.c.bf16 %v50_v62, %v49_v61  ;;  %v51_v4 = vld [vmem:[%s1117_s0 + $0xa0] sm:$0xff]  ;;  %v304_v7 = vld [vmem:[%s1118_s1 + $0xa8] sm:$0xff] }
  0x11   :  { %v314_v3 = vpack.c.bf16 %v302_v1, %v301_v63 }
  0x13   :  { %613 = vmatpush3.bf16.msra.mxu0 %v722_v5  ;;  %669 = vmatpush3.bf16.msra.mxu1 %v722_v5  ;;  %v52_v5 = vld [vmem:[%s1117_s0 + $0xa8] sm:$0xff] }
  0x14   :  { %614 = vmatprep.subr.bf16.mxu0 %v724_v0  ;;  %670 = vmatprep.subr.bf16.mxu1 %v724_v0  ;;  %v63_v8 = vpack.c.bf16 %v52_v5, %v51_v4 }
  0x17   :  { %615 = vmatpush3.bf16.msra.mxu0 %v723_v6  ;;  %671 = vmatpush3.bf16.msra.mxu1 %v723_v6  ;;  %v303_v6 = vld [vmem:[%s1118_s1 + $0xa0] sm:$0xff] }
  0x18   :  { %v315_v9 = vpack.c.bf16 %v304_v7, %v303_v6 }
  0x1a   :  { %617 = vmatmul.mubr.msk.bf16.vlgmr.msra.gmra.mxu0 %vm106_vm1, %v53_v11  ;;  %673 = vmatmul.mubr.msk.bf16.vlgmr.msra.gmra.mxu1 %vm106_vm1, %v305_v12 }
  0x1b   :  { %620 = vmatprep.mubr.msk.bf16.mxu0 %vm725_vm0, %v724_v0  ;;  %676 = vmatprep.mubr.msk.bf16.mxu1 %vm725_vm0, %v724_v0 }
  0x22   :  { %621 = vmatmul.mubr.msk.bf16.gmra.mxu0 %vm106_vm1, %v54_v17  ;;  %677 = vmatmul.mubr.msk.bf16.gmra.mxu1 %vm106_vm1, %v306_v18 }
  0x23   :  { %624 = vmatprep.mubr.msk.bf16.mxu0 %vm725_vm0, %v724_v0  ;;  %680 = vmatprep.mubr.msk.bf16.mxu1 %vm725_vm0, %v724_v0 }
  0x2a   :  { %625 = vmatmul.mubr.msk.bf16.gmra.mxu0 %vm106_vm1, %v55_v23  ;;  %681 = vmatmul.mubr.msk.bf16.gmra.mxu1 %vm106_vm1, %v307_v24 }
  0x2b   :  { %628 = vmatprep.mubr.msk.bf16.mxu0 %vm725_vm0, %v724_v0  ;;  %684 = vmatprep.mubr.msk.bf16.mxu1 %vm725_vm0, %v724_v0 }
  0x32   :  { %629 = vmatmul.mubr.msk.bf16.gmra.mxu0 %vm106_vm1, %v56_v29  ;;  %685 = vmatmul.mubr.msk.bf16.gmra.mxu1 %vm106_vm1, %v308_v30 }
  0x33   :  { %632 = vmatprep.mubr.msk.bf16.mxu0 %vm725_vm0, %v724_v0  ;;  %688 = vmatprep.mubr.msk.bf16.mxu1 %vm725_vm0, %v724_v0 }
  0x3a   :  { %633 = vmatmul.mubr.msk.bf16.gmra.mxu0 %vm106_vm1, %v57_v35  ;;  %689 = vmatmul.mubr.msk.bf16.gmra.mxu1 %vm106_vm1, %v309_v36 }
  0x3b   :  { %636 = vmatprep.mubr.msk.bf16.mxu0 %vm725_vm0, %v724_v0  ;;  %692 = vmatprep.mubr.msk.bf16.mxu1 %vm725_vm0, %v724_v0 }
  0x42   :  { %637 = vmatmul.mubr.msk.bf16.gmra.mxu0 %vm106_vm1, %v58_v41  ;;  %693 = vmatmul.mubr.msk.bf16.gmra.mxu1 %vm106_vm1, %v310_v42 }
  0x43   :  { %640 = vmatprep.mubr.msk.bf16.mxu0 %vm725_vm0, %v724_v0  ;;  %696 = vmatprep.mubr.msk.bf16.mxu1 %vm725_vm0, %v724_v0 }
  0x4a   :  { %641 = vmatmul.mubr.msk.bf16.gmra.mxu0 %vm106_vm1, %v59_v47  ;;  %697 = vmatmul.mubr.msk.bf16.gmra.mxu1 %vm106_vm1, %v311_v48 }
  0x4b   :  { %644 = vmatprep.mubr.msk.bf16.mxu0 %vm725_vm0, %v724_v0  ;;  %700 = vmatprep.mubr.msk.bf16.mxu1 %vm725_vm0, %v724_v0 }
  0x52   :  { %645 = vmatmul.mubr.msk.bf16.gmra.mxu0 %vm106_vm1, %v60_v53  ;;  %701 = vmatmul.mubr.msk.bf16.gmra.mxu1 %vm106_vm1, %v312_v54 }
  0x53   :  { %648 = vmatprep.mubr.msk.bf16.mxu0 %vm725_vm0, %v724_v0  ;;  %704 = vmatprep.mubr.msk.bf16.mxu1 %vm725_vm0, %v724_v0 }
  0x5a   :  { %649 = vmatmul.mubr.msk.bf16.gmra.mxu0 %vm106_vm1, %v61_v59  ;;  %705 = vmatmul.mubr.msk.bf16.gmra.mxu1 %vm106_vm1, %v313_v60 }
  0x5b   :  { %652 = vmatprep.mubr.msk.bf16.mxu0 %vm725_vm0, %v724_v0  ;;  %708 = vmatprep.mubr.msk.bf16.mxu1 %vm725_vm0, %v724_v0 }
  0x62   :  { %653 = vmatmul.mubr.msk.bf16.gmra.mxu0 %vm106_vm1, %v62_v2  ;;  %709 = vmatmul.mubr.msk.bf16.gmra.mxu1 %vm106_vm1, %v314_v3 }
  0x63   :  { %656 = vmatprep.mubr.msk.bf16.mxu0 %vm725_vm0, %v724_v0  ;;  %712 = vmatprep.mubr.msk.bf16.mxu1 %vm725_vm0, %v724_v0  ;;  %v982_v0 = vld [vmem:[%s1119_s3] ss:$0 sm:$0xff] }
  0x6a   :  { %657 = vmatmul.mubr.msk.bf16.gmra.mxu0 %vm106_vm1, %v63_v8  ;;  %713 = vmatmul.mubr.msk.bf16.gmra.mxu1 %vm106_vm1, %v315_v9 }
  0xda   :  { %v174_v10 = vpop.f32.mrf.mxu0  ;;  %v383_v11 = vpop.f32.mrf.mxu1 }
  0xdb   :  { %v175_v12 = vadd.f32 %v982_v0, %v174_v10  ;;  %v384_v13 = vadd.f32 %v982_v0, %v383_v11 }
  0xdc   :  { %v618_v14 = vpop.f32.mrf.mxu0  ;;  %v674_v15 = vpop.f32.mrf.mxu1 }
  0xdd   :  { %v261_v16 = vmax.f32 %v175_v12, 0.0  ;;  %v470_v17 = vmax.f32 %v384_v13, 0.0 }
  0xde   :  { %v177_v18 = vpop.f32.mrf.mxu0  ;;  %v386_v19 = vpop.f32.mrf.mxu1 }
  0xdf   :  { %v492_v20 = vmax.f32 %v261_v16, %v470_v17  ;;  %v178_v21 = vadd.f32 %v982_v0, %v177_v18  ;;  %v387_v22 = vadd.f32 %v982_v0, %v386_v19 }
  0xe0   :  { %v619_v23 = vpop.f32.mrf.mxu0  ;;  %v675_v24 = vpop.f32.mrf.mxu1 }
  0xe1   :  { %515 = vst.msk [vmem:[%s1120_s4] sm:$0xff] %vm514_vm2, %v492_v20  ;;  %v262_v25 = vmax.f32 %v178_v21, 0.0  ;;  %v471_v26 = vmax.f32 %v387_v22, 0.0 }
  0xe2   :  { %v182_v27 = vpop.f32.mrf.mxu0  ;;  %v391_v28 = vpop.f32.mrf.mxu1 }
  0xe3   :  { %v493_v29 = vmax.f32 %v262_v25, %v471_v26  ;;  %v183_v30 = vadd.f32 %v982_v0, %v182_v27  ;;  %v392_v31 = vadd.f32 %v982_v0, %v391_v28 }
  0xe4   :  { %v622_v32 = vpop.f32.mrf.mxu0  ;;  %v678_v33 = vpop.f32.mrf.mxu1 }
  0xe5   :  { %516 = vst.msk [vmem:[%s1120_s4 + $0x8] sm:$0xff] %vm514_vm2, %v493_v29  ;;  %v263_v34 = vmax.f32 %v183_v30, 0.0  ;;  %v472_v35 = vmax.f32 %v392_v31, 0.0 }
  0xe6   :  { %v185_v36 = vpop.f32.mrf.mxu0  ;;  %v394_v37 = vpop.f32.mrf.mxu1 }
  0xe7   :  { %v494_v38 = vmax.f32 %v263_v34, %v472_v35  ;;  %v186_v39 = vadd.f32 %v982_v0, %v185_v36  ;;  %v395_v40 = vadd.f32 %v982_v0, %v394_v37 }
  0xe8   :  { %v623_v41 = vpop.f32.mrf.mxu0  ;;  %v679_v42 = vpop.f32.mrf.mxu1 }
  0xe9   :  { %517 = vst.msk [vmem:[%s1120_s4 + $0x10] sm:$0xff] %vm514_vm2, %v494_v38  ;;  %v264_v43 = vmax.f32 %v186_v39, 0.0  ;;  %v473_v44 = vmax.f32 %v395_v40, 0.0 }
  0xea   :  { %v190_v45 = vpop.f32.mrf.mxu0  ;;  %v399_v46 = vpop.f32.mrf.mxu1 }
  0xeb   :  { %v495_v47 = vmax.f32 %v264_v43, %v473_v44  ;;  %v191_v48 = vadd.f32 %v982_v0, %v190_v45  ;;  %v400_v49 = vadd.f32 %v982_v0, %v399_v46 }
  0xec   :  { %v626_v50 = vpop.f32.mrf.mxu0  ;;  %v682_v51 = vpop.f32.mrf.mxu1 }
  0xed   :  { %518 = vst.msk [vmem:[%s1120_s4 + $0x18] sm:$0xff] %vm514_vm2, %v495_v47  ;;  %v265_v52 = vmax.f32 %v191_v48, 0.0  ;;  %v474_v53 = vmax.f32 %v400_v49, 0.0 }
  0xee   :  { %v193_v54 = vpop.f32.mrf.mxu0  ;;  %v402_v55 = vpop.f32.mrf.mxu1 }
  0xef   :  { %v496_v56 = vmax.f32 %v265_v52, %v474_v53  ;;  %v194_v57 = vadd.f32 %v982_v0, %v193_v54  ;;  %v403_v58 = vadd.f32 %v982_v0, %v402_v55 }
  0xf0   :  { %v627_v59 = vpop.f32.mrf.mxu0  ;;  %v683_v60 = vpop.f32.mrf.mxu1 }
  0xf1   :  { %519 = vst.msk [vmem:[%s1120_s4 + $0x20] sm:$0xff] %vm514_vm2, %v496_v56  ;;  %v266_v61 = vmax.f32 %v194_v57, 0.0  ;;  %v475_v62 = vmax.f32 %v403_v58, 0.0 }
  0xf2   :  { %v198_v63 = vpop.f32.mrf.mxu0  ;;  %v407_v1 = vpop.f32.mrf.mxu1 }
  0xf3   :  { %v497_v2 = vmax.f32 %v266_v61, %v475_v62  ;;  %v199_v3 = vadd.f32 %v982_v0, %v198_v63  ;;  %v408_v4 = vadd.f32 %v982_v0, %v407_v1 }
  0xf4   :  { %v630_v5 = vpop.f32.mrf.mxu0  ;;  %v686_v6 = vpop.f32.mrf.mxu1 }
  0xf5   :  { %520 = vst.msk [vmem:[%s1120_s4 + $0x28] sm:$0xff] %vm514_vm2, %v497_v2  ;;  %v267_v7 = vmax.f32 %v199_v3, 0.0  ;;  %v476_v8 = vmax.f32 %v408_v4, 0.0 }
  0xf6   :  { %v201_v9 = vpop.f32.mrf.mxu0  ;;  %v410_v10 = vpop.f32.mrf.mxu1 }
  0xf7   :  { %v498_v11 = vmax.f32 %v267_v7, %v476_v8  ;;  %v202_v12 = vadd.f32 %v982_v0, %v201_v9  ;;  %v411_v13 = vadd.f32 %v982_v0, %v410_v10 }
  0xf8   :  { %v631_v14 = vpop.f32.mrf.mxu0  ;;  %v687_v15 = vpop.f32.mrf.mxu1 }
  0xf9   :  { %521 = vst.msk [vmem:[%s1120_s4 + $0x30] sm:$0xff] %vm514_vm2, %v498_v11  ;;  %v268_v16 = vmax.f32 %v202_v12, 0.0  ;;  %v477_v17 = vmax.f32 %v411_v13, 0.0 }
  0xfa   :  { %v206_v18 = vpop.f32.mrf.mxu0  ;;  %v415_v19 = vpop.f32.mrf.mxu1 }
  0xfb   :  { %v499_v20 = vmax.f32 %v268_v16, %v477_v17  ;;  %v207_v21 = vadd.f32 %v982_v0, %v206_v18  ;;  %v416_v22 = vadd.f32 %v982_v0, %v415_v19 }
  0xfc   :  { %v634_v23 = vpop.f32.mrf.mxu0  ;;  %v690_v24 = vpop.f32.mrf.mxu1 }
  0xfd   :  { %522 = vst.msk [vmem:[%s1120_s4 + $0x38] sm:$0xff] %vm514_vm2, %v499_v20  ;;  %v269_v25 = vmax.f32 %v207_v21, 0.0  ;;  %v478_v26 = vmax.f32 %v416_v22, 0.0 }
  0xfe   :  { %v209_v27 = vpop.f32.mrf.mxu0  ;;  %v418_v28 = vpop.f32.mrf.mxu1 }
  0xff   :  { %v500_v29 = vmax.f32 %v269_v25, %v478_v26  ;;  %v210_v30 = vadd.f32 %v982_v0, %v209_v27  ;;  %v419_v31 = vadd.f32 %v982_v0, %v418_v28 }
 0x100   :  { %v635_v32 = vpop.f32.mrf.mxu0  ;;  %v691_v33 = vpop.f32.mrf.mxu1 }
 0x101   :  { %523 = vst.msk [vmem:[%s1120_s4 + $0x40] sm:$0xff] %vm514_vm2, %v500_v29  ;;  %v270_v34 = vmax.f32 %v210_v30, 0.0  ;;  %v479_v35 = vmax.f32 %v419_v31, 0.0 }
 0x102   :  { %v214_v36 = vpop.f32.mrf.mxu0  ;;  %v423_v37 = vpop.f32.mrf.mxu1 }
 0x103   :  { %v501_v38 = vmax.f32 %v270_v34, %v479_v35  ;;  %v215_v39 = vadd.f32 %v982_v0, %v214_v36  ;;  %v424_v40 = vadd.f32 %v982_v0, %v423_v37 }
 0x104   :  { %v638_v41 = vpop.f32.mrf.mxu0  ;;  %v694_v42 = vpop.f32.mrf.mxu1 }
 0x105   :  { %524 = vst.msk [vmem:[%s1120_s4 + $0x48] sm:$0xff] %vm514_vm2, %v501_v38  ;;  %v271_v43 = vmax.f32 %v215_v39, 0.0  ;;  %v480_v44 = vmax.f32 %v424_v40, 0.0 }
 0x106   :  { %v217_v45 = vpop.f32.mrf.mxu0  ;;  %v426_v46 = vpop.f32.mrf.mxu1 }
 0x107   :  { %v502_v47 = vmax.f32 %v271_v43, %v480_v44  ;;  %v218_v48 = vadd.f32 %v982_v0, %v217_v45  ;;  %v427_v49 = vadd.f32 %v982_v0, %v426_v46 }
 0x108   :  { %v639_v50 = vpop.f32.mrf.mxu0  ;;  %v695_v51 = vpop.f32.mrf.mxu1 }
 0x109   :  { %525 = vst.msk [vmem:[%s1120_s4 + $0x50] sm:$0xff] %vm514_vm2, %v502_v47  ;;  %v272_v52 = vmax.f32 %v218_v48, 0.0  ;;  %v481_v53 = vmax.f32 %v427_v49, 0.0 }
 0x10a   :  { %v222_v54 = vpop.f32.mrf.mxu0  ;;  %v431_v55 = vpop.f32.mrf.mxu1 }
 0x10b   :  { %v503_v56 = vmax.f32 %v272_v52, %v481_v53  ;;  %v223_v57 = vadd.f32 %v982_v0, %v222_v54  ;;  %v432_v58 = vadd.f32 %v982_v0, %v431_v55 }
 0x10c   :  { %v642_v59 = vpop.f32.mrf.mxu0  ;;  %v698_v60 = vpop.f32.mrf.mxu1 }
 0x10d   :  { %526 = vst.msk [vmem:[%s1120_s4 + $0x58] sm:$0xff] %vm514_vm2, %v503_v56  ;;  %v273_v61 = vmax.f32 %v223_v57, 0.0  ;;  %v482_v62 = vmax.f32 %v432_v58, 0.0 }
 0x10e   :  { %v225_v63 = vpop.f32.mrf.mxu0  ;;  %v434_v1 = vpop.f32.mrf.mxu1 }
 0x10f   :  { %v504_v2 = vmax.f32 %v273_v61, %v482_v62  ;;  %v226_v3 = vadd.f32 %v982_v0, %v225_v63  ;;  %v435_v4 = vadd.f32 %v982_v0, %v434_v1 }
 0x110   :  { %v643_v5 = vpop.f32.mrf.mxu0  ;;  %v699_v6 = vpop.f32.mrf.mxu1 }
 0x111   :  { %527 = vst.msk [vmem:[%s1120_s4 + $0x60] sm:$0xff] %vm514_vm2, %v504_v2  ;;  %v274_v7 = vmax.f32 %v226_v3, 0.0  ;;  %v483_v8 = vmax.f32 %v435_v4, 0.0 }
 0x112   :  { %v230_v9 = vpop.f32.mrf.mxu0  ;;  %v439_v10 = vpop.f32.mrf.mxu1 }
 0x113   :  { %v505_v11 = vmax.f32 %v274_v7, %v483_v8  ;;  %v231_v12 = vadd.f32 %v982_v0, %v230_v9  ;;  %v440_v13 = vadd.f32 %v982_v0, %v439_v10 }
 0x114   :  { %v646_v14 = vpop.f32.mrf.mxu0  ;;  %v702_v15 = vpop.f32.mrf.mxu1 }
 0x115   :  { %528 = vst.msk [vmem:[%s1120_s4 + $0x68] sm:$0xff] %vm514_vm2, %v505_v11  ;;  %v275_v16 = vmax.f32 %v231_v12, 0.0  ;;  %v484_v17 = vmax.f32 %v440_v13, 0.0 }
 0x116   :  { %v233_v18 = vpop.f32.mrf.mxu0  ;;  %v442_v19 = vpop.f32.mrf.mxu1 }
 0x117   :  { %v506_v20 = vmax.f32 %v275_v16, %v484_v17  ;;  %v234_v21 = vadd.f32 %v982_v0, %v233_v18  ;;  %v443_v22 = vadd.f32 %v982_v0, %v442_v19 }
 0x118   :  { %v647_v23 = vpop.f32.mrf.mxu0  ;;  %v703_v24 = vpop.f32.mrf.mxu1 }
 0x119   :  { %529 = vst.msk [vmem:[%s1120_s4 + $0x70] sm:$0xff] %vm514_vm2, %v506_v20  ;;  %v276_v25 = vmax.f32 %v234_v21, 0.0  ;;  %v485_v26 = vmax.f32 %v443_v22, 0.0 }
 0x11a   :  { %v238_v27 = vpop.f32.mrf.mxu0  ;;  %v447_v28 = vpop.f32.mrf.mxu1 }
 0x11b   :  { %v507_v29 = vmax.f32 %v276_v25, %v485_v26  ;;  %v239_v30 = vadd.f32 %v982_v0, %v238_v27  ;;  %v448_v31 = vadd.f32 %v982_v0, %v447_v28 }
 0x11c   :  { %v650_v32 = vpop.f32.mrf.mxu0  ;;  %v706_v33 = vpop.f32.mrf.mxu1 }
 0x11d   :  { %530 = vst.msk [vmem:[%s1120_s4 + $0x78] sm:$0xff] %vm514_vm2, %v507_v29  ;;  %v277_v34 = vmax.f32 %v239_v30, 0.0  ;;  %v486_v35 = vmax.f32 %v448_v31, 0.0 }
 0x11e   :  { %v241_v36 = vpop.f32.mrf.mxu0  ;;  %v450_v37 = vpop.f32.mrf.mxu1 }
 0x11f   :  { %v508_v38 = vmax.f32 %v277_v34, %v486_v35  ;;  %v242_v39 = vadd.f32 %v982_v0, %v241_v36  ;;  %v451_v40 = vadd.f32 %v982_v0, %v450_v37 }
 0x120   :  { %v651_v41 = vpop.f32.mrf.mxu0  ;;  %v707_v42 = vpop.f32.mrf.mxu1 }
 0x121   :  { %531 = vst.msk [vmem:[%s1120_s4 + $0x80] sm:$0xff] %vm514_vm2, %v508_v38  ;;  %v278_v43 = vmax.f32 %v242_v39, 0.0  ;;  %v487_v44 = vmax.f32 %v451_v40, 0.0 }
 0x122   :  { %v246_v45 = vpop.f32.mrf.mxu0  ;;  %v455_v46 = vpop.f32.mrf.mxu1 }
 0x123   :  { %v509_v47 = vmax.f32 %v278_v43, %v487_v44  ;;  %v247_v48 = vadd.f32 %v982_v0, %v246_v45  ;;  %v456_v49 = vadd.f32 %v982_v0, %v455_v46 }
 0x124   :  { %v654_v50 = vpop.f32.mrf.mxu0  ;;  %v710_v51 = vpop.f32.mrf.mxu1 }
 0x125   :  { %532 = vst.msk [vmem:[%s1120_s4 + $0x88] sm:$0xff] %vm514_vm2, %v509_v47  ;;  %v279_v52 = vmax.f32 %v247_v48, 0.0  ;;  %v488_v53 = vmax.f32 %v456_v49, 0.0 }
 0x126   :  { %v249_v54 = vpop.f32.mrf.mxu0  ;;  %v458_v55 = vpop.f32.mrf.mxu1 }
 0x127   :  { %v510_v56 = vmax.f32 %v279_v52, %v488_v53  ;;  %v250_v57 = vadd.f32 %v982_v0, %v249_v54  ;;  %v459_v58 = vadd.f32 %v982_v0, %v458_v55 }
 0x128   :  { %v655_v59 = vpop.f32.mrf.mxu0  ;;  %v711_v60 = vpop.f32.mrf.mxu1 }
 0x129   :  { %533 = vst.msk [vmem:[%s1120_s4 + $0x90] sm:$0xff] %vm514_vm2, %v510_v56  ;;  %v280_v61 = vmax.f32 %v250_v57, 0.0  ;;  %v489_v62 = vmax.f32 %v459_v58, 0.0 }
 0x12a   :  { %v254_v63 = vpop.f32.mrf.mxu0  ;;  %v463_v1 = vpop.f32.mrf.mxu1 }
 0x12b   :  { %v511_v2 = vmax.f32 %v280_v61, %v489_v62  ;;  %v255_v3 = vadd.f32 %v982_v0, %v254_v63  ;;  %v464_v4 = vadd.f32 %v982_v0, %v463_v1 }
 0x12c   :  { %v658_v5 = vpop.f32.mrf.mxu0  ;;  %v714_v6 = vpop.f32.mrf.mxu1 }
 0x12d   :  { %534 = vst.msk [vmem:[%s1120_s4 + $0x98] sm:$0xff] %vm514_vm2, %v511_v2  ;;  %v281_v7 = vmax.f32 %v255_v3, 0.0  ;;  %v490_v8 = vmax.f32 %v464_v4, 0.0 }
 0x12e   :  { %v257_v9 = vpop.f32.mrf.mxu0  ;;  %v466_v10 = vpop.f32.mrf.mxu1 }
 0x12f   :  { %v512_v11 = vmax.f32 %v281_v7, %v490_v8  ;;  %v258_v12 = vadd.f32 %v982_v0, %v257_v9  ;;  %v467_v13 = vadd.f32 %v982_v0, %v466_v10 }
 0x130   :  { %v659_v14 = vpop.f32.mrf.mxu0  ;;  %v715_v15 = vpop.f32.mrf.mxu1 }
 0x131   :  { %535 = vst.msk [vmem:[%s1120_s4 + $0xa0] sm:$0xff] %vm514_vm2, %v512_v11  ;;  %v282_v16 = vmax.f32 %v258_v12, 0.0  ;;  %v491_v17 = vmax.f32 %v467_v13, 0.0 }
 0x133   :  { %v513_v18 = vmax.f32 %v282_v16, %v491_v17 }
 0x135   :  { %536 = vst.msk [vmem:[%s1120_s4 + $0xa8] sm:$0xff] %vm514_vm2, %v513_v18 }

// kernel: transformer_model_forward.20
= control target key start
LH: loop header
LB: loop body
LE: loop exit
PB: predicated region body
PF: predicated region fallthrough
CT: control target
= control target key end

     0   :  { %v438_v0 = vmov 0   ;;  %vm151_vm0 = vcmask 523264   ;;  %s709_s2 = inlined_call_operand.vmem [shape: bf16[192,128], index: 2, kind: input, shape index: {}]   ;;  %s710_s0 = inlined_call_operand.vmem [shape: f32[80,192], index: 0, kind: input, shape index: {}]   ;;  %s711_s1 = inlined_call_operand.vmem [shape: f32[80,192], index: 1, kind: input, shape index: {}]   ;;  %s712_s3 = inlined_call_operand.vmem [shape: f32[1,128], index: 3, kind: input, shape index: {}]   ;;  %s713_s4 = inlined_call_operand.vmem [shape: f32[80,128], index: 4, kind: output, shape index: {}]  }
   0x1   :  { %167 = vmatprep.subr.bf16.mxu0 %v438_v0  ;;  %295 = vmatprep.subr.bf16.mxu1 %v438_v0  ;;  %v426_v1 = vld [vmem:[%s709_s2 + $0x38] sm:$0xff]   ;;  %v427_v2 = vld [vmem:[%s709_s2 + $0x30] sm:$0xff]   ;;  %v428_v3 = vld [vmem:[%s709_s2 + $0x28] sm:$0xff]  }
   0x2   :  { %168 = vmatpush1.bf16.msra.mxu0 %v426_v1  ;;  %296 = vmatpush1.bf16.msra.mxu1 %v426_v1  ;;  %v429_v4 = vld [vmem:[%s709_s2 + $0x20] sm:$0xff]   ;;  %v44_v5 = vld [vmem:[%s710_s0 + $0x8] sm:$0xff]  ;;  %v46_v6 = vld [vmem:[%s710_s0 + $0x18] sm:$0xff] }
   0x3   :  { %169 = vmatprep.subr.bf16.mxu0 %v438_v0  ;;  %297 = vmatprep.subr.bf16.mxu1 %v438_v0  ;;  %v251_v7 = vld [vmem:[%s711_s1 + $0x8] sm:$0xff]  ;;  %v64_v8 = vpack.c.bf16 %v46_v6, %v44_v5  ;;  %v253_v9 = vld [vmem:[%s711_s1 + $0x18] sm:$0xff]  ;;  %v431_v12 = vld [vmem:[%s709_s2 + $0x10] sm:$0xff]  }
   0x4   :  { %v430_v10 = vld [vmem:[%s709_s2 + $0x18] sm:$0xff]   ;;  %v271_v11 = vpack.c.bf16 %v253_v9, %v251_v7  ;;  %v432_v13 = vld [vmem:[%s709_s2 + $0x8] sm:$0xff]   ;;  %v433_v14 = vld [vmem:[%s709_s2] sm:$0xff]  }
   0x5   :  { %415 = vmatprep.mubr.msk.bf16.mxu0 %vm151_vm0, %v64_v8  ;;  %v434_v15 = vld [vmem:[%s709_s2 + $0x58] sm:$0xff]   ;;  %v435_v16 = vld [vmem:[%s709_s2 + $0x50] sm:$0xff]   ;;  %v436_v17 = vld [vmem:[%s709_s2 + $0x48] sm:$0xff]  }
   0x6   :  { %170 = vmatpush1.bf16.msra.mxu0 %v427_v2  ;;  %298 = vmatpush1.bf16.msra.mxu1 %v427_v2  ;;  %v437_v18 = vld [vmem:[%s709_s2 + $0x40] sm:$0xff]   ;;  %v45_v20 = vld [vmem:[%s710_s0 + $0x10] sm:$0xff]  ;;  %v48_v23 = vld [vmem:[%s710_s0 + $0x28] sm:$0xff] }
   0x7   :  { %171 = vmatprep.subr.bf16.mxu0 %v438_v0  ;;  %299 = vmatprep.subr.bf16.mxu1 %v438_v0  ;;  %v43_v19 = vld [vmem:[%s710_s0] sm:$0xff]  ;;  %v252_v22 = vld [vmem:[%s711_s1 + $0x10] sm:$0xff]  ;;  %v50_v24 = vld [vmem:[%s710_s0 + $0x38] sm:$0xff] }
   0x8   :  { %420 = vmatprep.mubr.msk.bf16.mxu1 %vm151_vm0, %v271_v11  ;;  %v250_v21 = vld [vmem:[%s711_s1] sm:$0xff]  ;;  %v255_v25 = vld [vmem:[%s711_s1 + $0x28] sm:$0xff]  ;;  %v257_v26 = vld [vmem:[%s711_s1 + $0x38] sm:$0xff]  ;;  %v63_v27 = vpack.c.bf16 %v45_v20, %v43_v19  ;;  %v66_v29 = vpack.c.bf16 %v50_v24, %v48_v23 }
   0x9   :  { %v270_v28 = vpack.c.bf16 %v252_v22, %v250_v21  ;;  %v273_v30 = vpack.c.bf16 %v257_v26, %v255_v25  ;;  %v47_v31 = vld [vmem:[%s710_s0 + $0x20] sm:$0xff]  ;;  %v49_v32 = vld [vmem:[%s710_s0 + $0x30] sm:$0xff]  ;;  %v52_v35 = vld [vmem:[%s710_s0 + $0x48] sm:$0xff] }
   0xa   :  { %172 = vmatpush1.bf16.msra.mxu0 %v428_v3  ;;  %300 = vmatpush1.bf16.msra.mxu1 %v428_v3  ;;  %v254_v33 = vld [vmem:[%s711_s1 + $0x20] sm:$0xff]  ;;  %v256_v34 = vld [vmem:[%s711_s1 + $0x30] sm:$0xff]  ;;  %v54_v36 = vld [vmem:[%s710_s0 + $0x58] sm:$0xff]  ;;  %v65_v39 = vpack.c.bf16 %v49_v32, %v47_v31 }
   0xb   :  { %173 = vmatprep.subr.bf16.mxu0 %v438_v0  ;;  %301 = vmatprep.subr.bf16.mxu1 %v438_v0  ;;  %v259_v37 = vld [vmem:[%s711_s1 + $0x48] sm:$0xff]  ;;  %v261_v38 = vld [vmem:[%s711_s1 + $0x58] sm:$0xff]  ;;  %v272_v40 = vpack.c.bf16 %v256_v34, %v254_v33  ;;  %v68_v41 = vpack.c.bf16 %v54_v36, %v52_v35  ;;  %v51_v43 = vld [vmem:[%s710_s0 + $0x40] sm:$0xff] }
   0xc   :  { %v275_v42 = vpack.c.bf16 %v261_v38, %v259_v37  ;;  %v53_v44 = vld [vmem:[%s710_s0 + $0x50] sm:$0xff]  ;;  %v258_v45 = vld [vmem:[%s711_s1 + $0x40] sm:$0xff]  ;;  %v56_v47 = vld [vmem:[%s710_s0 + $0x68] sm:$0xff] }
   0xd   :  { %v260_v46 = vld [vmem:[%s711_s1 + $0x50] sm:$0xff]  ;;  %v58_v48 = vld [vmem:[%s710_s0 + $0x78] sm:$0xff]  ;;  %v263_v49 = vld [vmem:[%s711_s1 + $0x68] sm:$0xff]  ;;  %v67_v51 = vpack.c.bf16 %v53_v44, %v51_v43 }
   0xe   :  { %174 = vmatpush1.bf16.msra.mxu0 %v429_v4  ;;  %302 = vmatpush1.bf16.msra.mxu1 %v429_v4  ;;  %v265_v50 = vld [vmem:[%s711_s1 + $0x78] sm:$0xff]  ;;  %v274_v52 = vpack.c.bf16 %v260_v46, %v258_v45  ;;  %v70_v53 = vpack.c.bf16 %v58_v48, %v56_v47  ;;  %v55_v55 = vld [vmem:[%s710_s0 + $0x60] sm:$0xff]  ;;  %v57_v56 = vld [vmem:[%s710_s0 + $0x70] sm:$0xff] }
   0xf   :  { %175 = vmatprep.subr.bf16.mxu0 %v438_v0  ;;  %303 = vmatprep.subr.bf16.mxu1 %v438_v0  ;;  %v277_v54 = vpack.c.bf16 %v265_v50, %v263_v49  ;;  %v262_v57 = vld [vmem:[%s711_s1 + $0x60] sm:$0xff]  ;;  %v264_v58 = vld [vmem:[%s711_s1 + $0x70] sm:$0xff]  ;;  %v60_v59 = vld [vmem:[%s710_s0 + $0x88] sm:$0xff]  ;;  %v69_v63 = vpack.c.bf16 %v57_v56, %v55_v55 }
  0x10   :  { %v62_v60 = vld [vmem:[%s710_s0 + $0x98] sm:$0xff]  ;;  %v267_v61 = vld [vmem:[%s711_s1 + $0x88] sm:$0xff]  ;;  %v59_v3 = vld [vmem:[%s710_s0 + $0x80] sm:$0xff] }
  0x11   :  { %v269_v62 = vld [vmem:[%s711_s1 + $0x98] sm:$0xff]  ;;  %v72_v1 = vpack.c.bf16 %v62_v60, %v60_v59  ;;  %v61_v4 = vld [vmem:[%s710_s0 + $0x90] sm:$0xff]  ;;  %v266_v5 = vld [vmem:[%s711_s1 + $0x80] sm:$0xff] }
  0x12   :  { %176 = vmatpush1.bf16.msra.mxu0 %v430_v10  ;;  %304 = vmatpush1.bf16.msra.mxu1 %v430_v10  ;;  %v279_v2 = vpack.c.bf16 %v269_v62, %v267_v61  ;;  %v268_v6 = vld [vmem:[%s711_s1 + $0x90] sm:$0xff]  ;;  %v71_v7 = vpack.c.bf16 %v61_v4, %v59_v3  ;;  %v657_v9 = vld [vmem:[%s712_s3] ss:$0 sm:$0xff] }
  0x13   :  { %177 = vmatprep.subr.bf16.mxu0 %v438_v0  ;;  %305 = vmatprep.subr.bf16.mxu1 %v438_v0  ;;  %v278_v8 = vpack.c.bf16 %v268_v6, %v266_v5 }
  0x16   :  { %178 = vmatpush1.bf16.msra.mxu0 %v431_v12  ;;  %306 = vmatpush1.bf16.msra.mxu1 %v431_v12 }
  0x17   :  { %179 = vmatprep.subr.bf16.mxu0 %v438_v0  ;;  %307 = vmatprep.subr.bf16.mxu1 %v438_v0 }
  0x1a   :  { %180 = vmatpush1.bf16.msra.mxu0 %v432_v13  ;;  %308 = vmatpush1.bf16.msra.mxu1 %v432_v13 }
  0x1b   :  { %181 = vmatprep.subr.bf16.mxu0 %v438_v0  ;;  %309 = vmatprep.subr.bf16.mxu1 %v438_v0 }
  0x1e   :  { %182 = vmatpush1.bf16.msra.mxu0 %v433_v14  ;;  %310 = vmatpush1.bf16.msra.mxu1 %v433_v14 }
  0x1f   :  { %191 = vmatprep.subr.bf16.mxu0 %v438_v0  ;;  %319 = vmatprep.subr.bf16.mxu1 %v438_v0 }
  0x22   :  { %192 = vmatpush2.bf16.msra.mxu0 %v434_v15  ;;  %320 = vmatpush2.bf16.msra.mxu1 %v434_v15 }
  0x23   :  { %193 = vmatprep.subr.bf16.mxu0 %v438_v0  ;;  %321 = vmatprep.subr.bf16.mxu1 %v438_v0 }
  0x26   :  { %194 = vmatpush2.bf16.msra.mxu0 %v435_v16  ;;  %322 = vmatpush2.bf16.msra.mxu1 %v435_v16 }
  0x27   :  { %195 = vmatprep.subr.bf16.mxu0 %v438_v0  ;;  %323 = vmatprep.subr.bf16.mxu1 %v438_v0 }
  0x2a   :  { %196 = vmatpush2.bf16.msra.mxu0 %v436_v17  ;;  %324 = vmatpush2.bf16.msra.mxu1 %v436_v17 }
  0x2b   :  { %197 = vmatprep.subr.bf16.mxu0 %v438_v0  ;;  %325 = vmatprep.subr.bf16.mxu1 %v438_v0  ;;  %v276_v0 = vpack.c.bf16 %v264_v58, %v262_v57 }
  0x2e   :  { %198 = vmatpush2.bf16.msra.mxu0 %v437_v18  ;;  %326 = vmatpush2.bf16.msra.mxu1 %v437_v18 }
  0x31   :  { %200 = vmatmul.mubr.bf16.vlgmr.msra.gmra.mxu0 %v63_v27  ;;  %328 = vmatmul.mubr.bf16.vlgmr.msra.gmra.mxu1 %v270_v28 }
  0x32   :  { %416 = vmatprep.mubr.msk.bf16.mxu0 %vm151_vm0, %v66_v29  ;;  %421 = vmatprep.mubr.msk.bf16.mxu1 %vm151_vm0, %v273_v30 }
  0x39   :  { %208 = vmatmul.mubr.bf16.gmra.mxu0 %v65_v39  ;;  %336 = vmatmul.mubr.bf16.gmra.mxu1 %v272_v40 }
  0x3a   :  { %417 = vmatprep.mubr.msk.bf16.mxu0 %vm151_vm0, %v68_v41  ;;  %422 = vmatprep.mubr.msk.bf16.mxu1 %vm151_vm0, %v275_v42 }
  0x41   :  { %216 = vmatmul.mubr.bf16.gmra.mxu0 %v67_v51  ;;  %344 = vmatmul.mubr.bf16.gmra.mxu1 %v274_v52 }
  0x42   :  { %418 = vmatprep.mubr.msk.bf16.mxu0 %vm151_vm0, %v70_v53  ;;  %423 = vmatprep.mubr.msk.bf16.mxu1 %vm151_vm0, %v277_v54 }
  0x49   :  { %224 = vmatmul.mubr.bf16.gmra.mxu0 %v69_v63  ;;  %352 = vmatmul.mubr.bf16.gmra.mxu1 %v276_v0 }
  0x4a   :  { %419 = vmatprep.mubr.msk.bf16.mxu0 %vm151_vm0, %v72_v1  ;;  %424 = vmatprep.mubr.msk.bf16.mxu1 %vm151_vm0, %v279_v2 }
  0x51   :  { %232 = vmatmul.mubr.bf16.gmra.mxu0 %v71_v7  ;;  %360 = vmatmul.mubr.bf16.gmra.mxu1 %v278_v8 }
  0xf1   :  { %v201_v10 = vpop.f32.mrf.mxu0  ;;  %v329_v11 = vpop.f32.mrf.mxu1 }
  0xf2   :  { %v202_v12 = vadd.f32 %v657_v9, %v201_v10  ;;  %v330_v13 = vadd.f32 %v657_v9, %v329_v11 }
  0xf3   :  { %v203_v14 = vpop.f32.mrf.mxu0  ;;  %v331_v15 = vpop.f32.mrf.mxu1 }
  0xf4   :  { %v240_v16 = vmax.f32 %v202_v12, 0.0  ;;  %v368_v17 = vmax.f32 %v330_v13, 0.0 }
  0xf5   :  { %v204_v18 = vpop.f32.mrf.mxu0  ;;  %v332_v19 = vpop.f32.mrf.mxu1 }
  0xf6   :  { %v378_v20 = vmax.f32 %v240_v16, %v368_v17  ;;  %v205_v21 = vadd.f32 %v657_v9, %v204_v18  ;;  %v333_v22 = vadd.f32 %v657_v9, %v332_v19 }
  0xf7   :  { %v206_v23 = vpop.f32.mrf.mxu0  ;;  %v334_v24 = vpop.f32.mrf.mxu1 }
  0xf8   :  { %388 = vst [vmem:[%s713_s4] sm:$0xff] %v378_v20  ;;  %v241_v25 = vmax.f32 %v205_v21, 0.0  ;;  %v369_v26 = vmax.f32 %v333_v22, 0.0 }
  0xf9   :  { %v209_v27 = vpop.f32.mrf.mxu0  ;;  %v337_v28 = vpop.f32.mrf.mxu1 }
  0xfa   :  { %v379_v29 = vmax.f32 %v241_v25, %v369_v26  ;;  %v210_v30 = vadd.f32 %v657_v9, %v209_v27  ;;  %v338_v31 = vadd.f32 %v657_v9, %v337_v28 }
  0xfb   :  { %v211_v32 = vpop.f32.mrf.mxu0  ;;  %v339_v33 = vpop.f32.mrf.mxu1 }
  0xfc   :  { %389 = vst [vmem:[%s713_s4 + $0x8] sm:$0xff] %v379_v29  ;;  %v242_v34 = vmax.f32 %v210_v30, 0.0  ;;  %v370_v35 = vmax.f32 %v338_v31, 0.0 }
  0xfd   :  { %v212_v36 = vpop.f32.mrf.mxu0  ;;  %v340_v37 = vpop.f32.mrf.mxu1 }
  0xfe   :  { %v380_v38 = vmax.f32 %v242_v34, %v370_v35  ;;  %v213_v39 = vadd.f32 %v657_v9, %v212_v36  ;;  %v341_v40 = vadd.f32 %v657_v9, %v340_v37 }
  0xff   :  { %v214_v41 = vpop.f32.mrf.mxu0  ;;  %v342_v42 = vpop.f32.mrf.mxu1 }
 0x100   :  { %390 = vst [vmem:[%s713_s4 + $0x10] sm:$0xff] %v380_v38  ;;  %v243_v43 = vmax.f32 %v213_v39, 0.0  ;;  %v371_v44 = vmax.f32 %v341_v40, 0.0 }
 0x101   :  { %v217_v45 = vpop.f32.mrf.mxu0  ;;  %v345_v46 = vpop.f32.mrf.mxu1 }
 0x102   :  { %v381_v47 = vmax.f32 %v243_v43, %v371_v44  ;;  %v218_v48 = vadd.f32 %v657_v9, %v217_v45  ;;  %v346_v49 = vadd.f32 %v657_v9, %v345_v46 }
 0x103   :  { %v219_v50 = vpop.f32.mrf.mxu0  ;;  %v347_v51 = vpop.f32.mrf.mxu1 }
 0x104   :  { %391 = vst [vmem:[%s713_s4 + $0x18] sm:$0xff] %v381_v47  ;;  %v244_v52 = vmax.f32 %v218_v48, 0.0  ;;  %v372_v53 = vmax.f32 %v346_v49, 0.0 }
 0x105   :  { %v220_v54 = vpop.f32.mrf.mxu0  ;;  %v348_v55 = vpop.f32.mrf.mxu1 }
 0x106   :  { %v382_v56 = vmax.f32 %v244_v52, %v372_v53  ;;  %v221_v57 = vadd.f32 %v657_v9, %v220_v54  ;;  %v349_v58 = vadd.f32 %v657_v9, %v348_v55 }
 0x107   :  { %v222_v59 = vpop.f32.mrf.mxu0  ;;  %v350_v60 = vpop.f32.mrf.mxu1 }
 0x108   :  { %392 = vst [vmem:[%s713_s4 + $0x20] sm:$0xff] %v382_v56  ;;  %v245_v61 = vmax.f32 %v221_v57, 0.0  ;;  %v373_v62 = vmax.f32 %v349_v58, 0.0 }
 0x109   :  { %v225_v63 = vpop.f32.mrf.mxu0  ;;  %v353_v0 = vpop.f32.mrf.mxu1 }
 0x10a   :  { %v383_v1 = vmax.f32 %v245_v61, %v373_v62  ;;  %v226_v2 = vadd.f32 %v657_v9, %v225_v63  ;;  %v354_v3 = vadd.f32 %v657_v9, %v353_v0 }
 0x10b   :  { %v227_v4 = vpop.f32.mrf.mxu0  ;;  %v355_v5 = vpop.f32.mrf.mxu1 }
 0x10c   :  { %393 = vst [vmem:[%s713_s4 + $0x28] sm:$0xff] %v383_v1  ;;  %v246_v6 = vmax.f32 %v226_v2, 0.0  ;;  %v374_v7 = vmax.f32 %v354_v3, 0.0 }
 0x10d   :  { %v228_v8 = vpop.f32.mrf.mxu0  ;;  %v356_v10 = vpop.f32.mrf.mxu1 }
 0x10e   :  { %v384_v11 = vmax.f32 %v246_v6, %v374_v7  ;;  %v229_v12 = vadd.f32 %v657_v9, %v228_v8  ;;  %v357_v13 = vadd.f32 %v657_v9, %v356_v10 }
 0x10f   :  { %v230_v14 = vpop.f32.mrf.mxu0  ;;  %v358_v15 = vpop.f32.mrf.mxu1 }
 0x110   :  { %394 = vst [vmem:[%s713_s4 + $0x30] sm:$0xff] %v384_v11  ;;  %v247_v16 = vmax.f32 %v229_v12, 0.0  ;;  %v375_v17 = vmax.f32 %v357_v13, 0.0 }
 0x111   :  { %v233_v18 = vpop.f32.mrf.mxu0  ;;  %v361_v19 = vpop.f32.mrf.mxu1 }
 0x112   :  { %v385_v20 = vmax.f32 %v247_v16, %v375_v17  ;;  %v234_v21 = vadd.f32 %v657_v9, %v233_v18  ;;  %v362_v22 = vadd.f32 %v657_v9, %v361_v19 }
 0x113   :  { %v235_v23 = vpop.f32.mrf.mxu0  ;;  %v363_v24 = vpop.f32.mrf.mxu1 }
 0x114   :  { %395 = vst [vmem:[%s713_s4 + $0x38] sm:$0xff] %v385_v20  ;;  %v248_v25 = vmax.f32 %v234_v21, 0.0  ;;  %v376_v26 = vmax.f32 %v362_v22, 0.0 }
 0x115   :  { %v236_v27 = vpop.f32.mrf.mxu0  ;;  %v364_v28 = vpop.f32.mrf.mxu1 }
 0x116   :  { %v386_v29 = vmax.f32 %v248_v25, %v376_v26  ;;  %v237_v30 = vadd.f32 %v657_v9, %v236_v27  ;;  %v365_v31 = vadd.f32 %v657_v9, %v364_v28 }
 0x117   :  { %v238_v32 = vpop.f32.mrf.mxu0  ;;  %v366_v33 = vpop.f32.mrf.mxu1 }
 0x118   :  { %396 = vst [vmem:[%s713_s4 + $0x40] sm:$0xff] %v386_v29  ;;  %v249_v34 = vmax.f32 %v237_v30, 0.0  ;;  %v377_v35 = vmax.f32 %v365_v31, 0.0 }
 0x11a   :  { %v387_v36 = vmax.f32 %v249_v34, %v377_v35 }
 0x11c   :  { %397 = vst [vmem:[%s713_s4 + $0x48] sm:$0xff] %v387_v36 }

// kernel: transformer_model_forward.21
= control target key start
LH: loop header
LB: loop body
LE: loop exit
PB: predicated region body
PF: predicated region fallthrough
CT: control target
= control target key end

     0   :  { %s930_s2 = inlined_call_operand.vmem [shape: bf16[384,128], index: 2, kind: input, shape index: {}]   ;;  %s931_s0 = inlined_call_operand.vmem [shape: f32[32,384], index: 0, kind: input, shape index: {}]   ;;  %s932_s1 = inlined_call_operand.vmem [shape: f32[32,384], index: 1, kind: input, shape index: {}]   ;;  %s933_s3 = inlined_call_operand.vmem [shape: f32[1,128], index: 3, kind: input, shape index: {}]   ;;  %s934_s4 = inlined_call_operand.vmem [shape: f32[32,128], index: 4, kind: output, shape index: {}]  }
   0x1   :  { %v662_v0 = vld [vmem:[%s930_s2 + $0x78] sm:$0xff]   ;;  %v673_v2 = vld [vmem:[%s930_s2 + $0x70] sm:$0xff]   ;;  %v691_v5 = vld [vmem:[%s930_s2 + $0x68] sm:$0xff]  }
   0x2   :  { %v667_v1 = vld [vmem:[%s930_s2 + $0x38] sm:$0xff]   ;;  %494 = vmatprep.subr.bf16.mxu0 %v662_v0  ;;  %v685_v4 = vld [vmem:[%s930_s2 + $0x30] sm:$0xff]   ;;  %v703_v7 = vld [vmem:[%s930_s2 + $0x28] sm:$0xff]  }
   0x3   :  { %495 = vmatpush3.bf16.msra.mxu0 %v667_v1  ;;  %v679_v3 = vld [vmem:[%s930_s2 + $0xb8] sm:$0xff]   ;;  %v697_v6 = vld [vmem:[%s930_s2 + $0xb0] sm:$0xff]   ;;  %v710_v8 = vld [vmem:[%s930_s2 + $0x60] sm:$0xff]  }
   0x4   :  { %496 = vmatprep.subr.bf16.mxu0 %v673_v2  ;;  %570 = vmatprep.subr.bf16.mxu1 %v679_v3  ;;  %v715_v9 = vld [vmem:[%s930_s2 + $0xa8] sm:$0xff]   ;;  %v721_v10 = vld [vmem:[%s930_s2 + $0x20] sm:$0xff]   ;;  %v728_v11 = vld [vmem:[%s930_s2 + $0x58] sm:$0xff]  }
   0x5   :  { %571 = vmatpush3.bf16.msra.mxu1 %v679_v3  ;;  %v734_v12 = vld [vmem:[%s930_s2 + $0xa0] sm:$0xff]   ;;  %v740_v13 = vld [vmem:[%s930_s2 + $0x18] sm:$0xff]   ;;  %v753_v15 = vld [vmem:[%s930_s2 + $0x50] sm:$0xff]  }
   0x6   :  { %572 = vmatprep.subr.bf16.mxu1 %v697_v6  ;;  %v747_v14 = vld [vmem:[%s930_s2 + $0x98] sm:$0xff]   ;;  %v759_v16 = vld [vmem:[%s930_s2 + $0x10] sm:$0xff]   ;;  %v772_v18 = vld [vmem:[%s930_s2 + $0x48] sm:$0xff]  }
   0x7   :  { %497 = vmatpush3.bf16.msra.mxu0 %v685_v4  ;;  %v766_v17 = vld [vmem:[%s930_s2 + $0x90] sm:$0xff]   ;;  %v778_v19 = vld [vmem:[%s930_s2 + $0x8] sm:$0xff]   ;;  %v71_v22 = vld [vmem:[%s931_s0 + $0x20] sm:$0xff] }
   0x8   :  { %498 = vmatprep.subr.bf16.mxu0 %v691_v5  ;;  %v785_v20 = vld [vmem:[%s930_s2 + $0x88] sm:$0xff]   ;;  %v797_v23 = vld [vmem:[%s930_s2 + $0x40] sm:$0xff]   ;;  %v69_v25 = vld [vmem:[%s931_s0 + $0x10] sm:$0xff] }
   0x9   :  { %573 = vmatpush3.bf16.msra.mxu1 %v697_v6  ;;  %v68_v21 = vld [vmem:[%s931_s0 + $0x8] sm:$0xff]  ;;  %v809_v27 = vld [vmem:[%s930_s2] sm:$0xff]   ;;  %v70_v30 = vld [vmem:[%s931_s0 + $0x18] sm:$0xff] }
   0xa   :  { %574 = vmatprep.subr.bf16.mxu1 %v715_v9  ;;  %v80_v24 = vpack.c.bf16 %v71_v22, %v68_v21  ;;  %v72_v26 = vld [vmem:[%s931_s0 + $0x28] sm:$0xff]  ;;  %v67_v29 = vld [vmem:[%s931_s0] sm:$0xff]  ;;  %v74_v32 = vld [vmem:[%s931_s0 + $0x38] sm:$0xff] }
   0xb   :  { %499 = vmatpush3.bf16.msra.mxu0 %v703_v7  ;;  %v81_v28 = vpack.c.bf16 %v72_v26, %v69_v25  ;;  %v822_v31 = vld [vmem:[%s930_s2 + $0x80] sm:$0xff]   ;;  %v77_v33 = vld [vmem:[%s931_s0 + $0x50] sm:$0xff]  ;;  %v79_v34 = vpack.c.bf16 %v70_v30, %v67_v29  ;;  %v78_v36 = vld [vmem:[%s931_s0 + $0x58] sm:$0xff] }
   0xc   :  { %500 = vmatprep.subr.bf16.mxu0 %v710_v8  ;;  %267 = vmatprep.mubr.bf16.mxu0 %v80_v24  ;;  %v75_v35 = vld [vmem:[%s931_s0 + $0x40] sm:$0xff]  ;;  %v339_v37 = vld [vmem:[%s932_s1 + $0x10] sm:$0xff]  ;;  %v342_v38 = vld [vmem:[%s932_s1 + $0x28] sm:$0xff]  ;;  %v83_v39 = vpack.c.bf16 %v77_v33, %v74_v32 }
   0xd   :  { %575 = vmatpush3.bf16.msra.mxu1 %v715_v9  ;;  %586 = vmatprep.mubr.bf16.mxu1 %v81_v28  ;;  %v84_v40 = vpack.c.bf16 %v78_v36, %v75_v35  ;;  %v351_v41 = vpack.c.bf16 %v342_v38, %v339_v37  ;;  %v73_v42 = vld [vmem:[%s931_s0 + $0x30] sm:$0xff]  ;;  %v76_v43 = vld [vmem:[%s931_s0 + $0x48] sm:$0xff]  ;;  %v341_v45 = vld [vmem:[%s932_s1 + $0x20] sm:$0xff] }
   0xe   :  { %576 = vmatprep.subr.bf16.mxu1 %v734_v12  ;;  %v338_v44 = vld [vmem:[%s932_s1 + $0x8] sm:$0xff]  ;;  %v82_v46 = vpack.c.bf16 %v76_v43, %v73_v42  ;;  %v337_v48 = vld [vmem:[%s932_s1] sm:$0xff]  ;;  %v340_v49 = vld [vmem:[%s932_s1 + $0x18] sm:$0xff] }
   0xf   :  { %501 = vmatpush3.bf16.msra.mxu0 %v721_v10  ;;  %v350_v47 = vpack.c.bf16 %v341_v45, %v338_v44  ;;  %v344_v50 = vld [vmem:[%s932_s1 + $0x38] sm:$0xff]  ;;  %v347_v51 = vld [vmem:[%s932_s1 + $0x50] sm:$0xff]  ;;  %v349_v52 = vpack.c.bf16 %v340_v49, %v337_v48  ;;  %v345_v53 = vld [vmem:[%s932_s1 + $0x40] sm:$0xff] }
  0x10   :  { %502 = vmatprep.subr.bf16.mxu0 %v728_v11  ;;  %v348_v54 = vld [vmem:[%s932_s1 + $0x58] sm:$0xff]  ;;  %v353_v55 = vpack.c.bf16 %v347_v51, %v344_v50  ;;  %v343_v57 = vld [vmem:[%s932_s1 + $0x30] sm:$0xff]  ;;  %v346_v58 = vld [vmem:[%s932_s1 + $0x48] sm:$0xff] }
  0x11   :  { %577 = vmatpush3.bf16.msra.mxu1 %v734_v12  ;;  %v354_v56 = vpack.c.bf16 %v348_v54, %v345_v53  ;;  %v352_v59 = vpack.c.bf16 %v346_v58, %v343_v57 }
  0x12   :  { %578 = vmatprep.subr.bf16.mxu1 %v747_v14 }
  0x13   :  { %503 = vmatpush3.bf16.msra.mxu0 %v740_v13 }
  0x14   :  { %504 = vmatprep.subr.bf16.mxu0 %v753_v15 }
  0x15   :  { %579 = vmatpush3.bf16.msra.mxu1 %v747_v14 }
  0x16   :  { %580 = vmatprep.subr.bf16.mxu1 %v766_v17 }
  0x17   :  { %505 = vmatpush3.bf16.msra.mxu0 %v759_v16 }
  0x18   :  { %506 = vmatprep.subr.bf16.mxu0 %v772_v18 }
  0x19   :  { %581 = vmatpush3.bf16.msra.mxu1 %v766_v17 }
  0x1a   :  { %582 = vmatprep.subr.bf16.mxu1 %v785_v20 }
  0x1b   :  { %507 = vmatpush3.bf16.msra.mxu0 %v778_v19 }
  0x1c   :  { %508 = vmatprep.subr.bf16.mxu0 %v797_v23 }
  0x1d   :  { %583 = vmatpush3.bf16.msra.mxu1 %v785_v20 }
  0x1e   :  { %584 = vmatprep.subr.bf16.mxu1 %v822_v31 }
  0x1f   :  { %509 = vmatpush3.bf16.msra.mxu0 %v809_v27 }
  0x20   :  { %532 = vmatprep.subr.bf16.mxu0 %v662_v0 }
  0x21   :  { %585 = vmatpush3.bf16.msra.mxu1 %v822_v31 }
  0x22   :  { %268 = vmatmul.mubr.bf16.vlgmr.msra.gmra.mxu0 %v79_v34  ;;  %590 = vmatprep.subr.bf16.mxu1 %v679_v3 }
  0x23   :  { %533 = vmatpush3.bf16.msra.mxu0 %v667_v1  ;;  %275 = vmatprep.mubr.bf16.mxu0 %v83_v39 }
  0x24   :  { %534 = vmatprep.subr.bf16.mxu0 %v673_v2  ;;  %587 = vmatmul.mubr.bf16.vlgmr.msra.gmra.mxu1 %v84_v40 }
  0x25   :  { %591 = vmatpush3.bf16.msra.mxu1 %v679_v3  ;;  %606 = vmatprep.mubr.bf16.mxu1 %v351_v41 }
  0x26   :  { %592 = vmatprep.subr.bf16.mxu1 %v697_v6 }
  0x27   :  { %535 = vmatpush3.bf16.msra.mxu0 %v685_v4 }
  0x28   :  { %536 = vmatprep.subr.bf16.mxu0 %v691_v5 }
  0x29   :  { %593 = vmatpush3.bf16.msra.mxu1 %v697_v6  ;;  %v469_v6 = vld [vmem:[%s933_s3] ss:$0 sm:$0xff] }
  0x2a   :  { %276 = vmatmul.mubr.bf16.gmra.mxu0 %v82_v46  ;;  %594 = vmatprep.subr.bf16.mxu1 %v715_v9 }
  0x2b   :  { %537 = vmatpush3.bf16.msra.mxu0 %v703_v7  ;;  %387 = vmatprep.mubr.bf16.mxu0 %v350_v47 }
  0x2c   :  { %538 = vmatprep.subr.bf16.mxu0 %v710_v8 }
  0x2d   :  { %595 = vmatpush3.bf16.msra.mxu1 %v715_v9 }
  0x2e   :  { %596 = vmatprep.subr.bf16.mxu1 %v734_v12 }
  0x2f   :  { %539 = vmatpush3.bf16.msra.mxu0 %v721_v10 }
  0x30   :  { %540 = vmatprep.subr.bf16.mxu0 %v728_v11 }
  0x31   :  { %597 = vmatpush3.bf16.msra.mxu1 %v734_v12 }
  0x32   :  { %598 = vmatprep.subr.bf16.mxu1 %v747_v14 }
  0x33   :  { %541 = vmatpush3.bf16.msra.mxu0 %v740_v13 }
  0x34   :  { %542 = vmatprep.subr.bf16.mxu0 %v753_v15 }
  0x35   :  { %599 = vmatpush3.bf16.msra.mxu1 %v747_v14 }
  0x36   :  { %600 = vmatprep.subr.bf16.mxu1 %v766_v17 }
  0x37   :  { %543 = vmatpush3.bf16.msra.mxu0 %v759_v16 }
  0x38   :  { %544 = vmatprep.subr.bf16.mxu0 %v772_v18 }
  0x39   :  { %601 = vmatpush3.bf16.msra.mxu1 %v766_v17 }
  0x3a   :  { %602 = vmatprep.subr.bf16.mxu1 %v785_v20 }
  0x3b   :  { %545 = vmatpush3.bf16.msra.mxu0 %v778_v19 }
  0x3c   :  { %546 = vmatprep.subr.bf16.mxu0 %v797_v23 }
  0x3d   :  { %603 = vmatpush3.bf16.msra.mxu1 %v785_v20 }
  0x3e   :  { %604 = vmatprep.subr.bf16.mxu1 %v822_v31 }
  0x3f   :  { %547 = vmatpush3.bf16.msra.mxu0 %v809_v27 }
  0x41   :  { %605 = vmatpush3.bf16.msra.mxu1 %v822_v31 }
  0x42   :  { %388 = vmatmul.mubr.bf16.vlgmr.msra.gmra.mxu0 %v349_v52 }
  0x43   :  { %395 = vmatprep.mubr.bf16.mxu0 %v353_v55 }
  0x44   :  { %607 = vmatmul.mubr.bf16.vlgmr.msra.gmra.mxu1 %v354_v56 }
  0x4a   :  { %396 = vmatmul.mubr.bf16.gmra.mxu0 %v352_v59 }
  0xe2   :  { %v510_v60 = vpop.f32.mrf.mxu0 }
  0xe4   :  { %v511_v61 = vpop.f32.mrf.mxu0  ;;  %v588_v1 = vpop.f32.mrf.mxu1 }
  0xe5   :  { %v512_v5 = vadd.f32 %v511_v61, %v510_v60 }
  0xe6   :  { %v513_v62 = vpop.f32.mrf.mxu0  ;;  %v318_v3 = vpop.f32.mrf.mxu1 }
  0xe7   :  { %v270_v10 = vadd.f32 %v512_v5, %v469_v6 }
  0xe8   :  { %v514_v63 = vpop.f32.mrf.mxu0  ;;  %v589_v7 = vpop.f32.mrf.mxu1 }
  0xe9   :  { %v515_v9 = vadd.f32 %v514_v63, %v513_v62  ;;  %v319_v16 = vadd.f32 %v318_v3, %v270_v10 }
  0xea   :  { %v516_v0 = vpop.f32.mrf.mxu0  ;;  %v321_v12 = vpop.f32.mrf.mxu1 }
  0xeb   :  { %v273_v17 = vadd.f32 %v515_v9, %v469_v6  ;;  %v333_v26 = vmax.f32 %v319_v16, 0.0 }
  0xec   :  { %v517_v2 = vpop.f32.mrf.mxu0 }
  0xed   :  { %v518_v19 = vadd.f32 %v517_v2, %v516_v0  ;;  %v322_v27 = vadd.f32 %v321_v12, %v273_v17 }
  0xee   :  { %v519_v4 = vpop.f32.mrf.mxu0 }
  0xef   :  { %v278_v29 = vadd.f32 %v518_v19, %v469_v6  ;;  %v334_v38 = vmax.f32 %v322_v27, 0.0 }
  0xf0   :  { %v520_v8 = vpop.f32.mrf.mxu0 }
  0xf1   :  { %v521_v30 = vadd.f32 %v520_v8, %v519_v4  ;;  %v327_v40 = vadd.f32 %v588_v1, %v278_v29 }
  0xf3   :  { %v281_v41 = vadd.f32 %v521_v30, %v469_v6  ;;  %v335_v48 = vmax.f32 %v327_v40, 0.0 }
  0xf5   :  { %v330_v49 = vadd.f32 %v589_v7, %v281_v41 }
  0xf7   :  { %v336_v54 = vmax.f32 %v330_v49, 0.0 }
 0x102   :  { %v548_v11 = vpop.f32.mrf.mxu0 }
 0x104   :  { %v549_v13 = vpop.f32.mrf.mxu0  ;;  %v608_v15 = vpop.f32.mrf.mxu1 }
 0x105   :  { %v550_v14 = vadd.f32 %v549_v13, %v548_v11 }
 0x106   :  { %v551_v18 = vpop.f32.mrf.mxu0  ;;  %v438_v21 = vpop.f32.mrf.mxu1 }
 0x107   :  { %v390_v20 = vadd.f32 %v550_v14, %v469_v6 }
 0x108   :  { %v552_v22 = vpop.f32.mrf.mxu0  ;;  %v609_v25 = vpop.f32.mrf.mxu1 }
 0x109   :  { %v553_v23 = vadd.f32 %v552_v22, %v551_v18  ;;  %v439_v24 = vadd.f32 %v438_v21, %v390_v20 }
 0x10a   :  { %v554_v28 = vpop.f32.mrf.mxu0  ;;  %v441_v33 = vpop.f32.mrf.mxu1 }
 0x10b   :  { %v453_v31 = vmax.f32 %v439_v24, 0.0  ;;  %v393_v32 = vadd.f32 %v553_v23, %v469_v6 }
 0x10c   :  { %v555_v34 = vpop.f32.mrf.mxu0 }
 0x10d   :  { %v457_v35 = vmax.f32 %v333_v26, %v453_v31  ;;  %v556_v36 = vadd.f32 %v555_v34, %v554_v28  ;;  %v442_v37 = vadd.f32 %v441_v33, %v393_v32 }
 0x10e   :  { %v557_v39 = vpop.f32.mrf.mxu0 }
 0x10f   :  { %461 = vst [vmem:[%s934_s4] sm:$0xff] %v457_v35  ;;  %v398_v42 = vadd.f32 %v556_v36, %v469_v6  ;;  %v454_v43 = vmax.f32 %v442_v37, 0.0 }
 0x110   :  { %v558_v44 = vpop.f32.mrf.mxu0 }
 0x111   :  { %v447_v45 = vadd.f32 %v608_v15, %v398_v42  ;;  %v458_v46 = vmax.f32 %v334_v38, %v454_v43  ;;  %v559_v47 = vadd.f32 %v558_v44, %v557_v39 }
 0x113   :  { %v455_v50 = vmax.f32 %v447_v45, 0.0  ;;  %462 = vst [vmem:[%s934_s4 + $0x8] sm:$0xff] %v458_v46  ;;  %v401_v51 = vadd.f32 %v559_v47, %v469_v6 }
 0x115   :  { %v459_v52 = vmax.f32 %v335_v48, %v455_v50  ;;  %v450_v53 = vadd.f32 %v609_v25, %v401_v51 }
 0x117   :  { %463 = vst [vmem:[%s934_s4 + $0x10] sm:$0xff] %v459_v52  ;;  %v456_v55 = vmax.f32 %v450_v53, 0.0 }
 0x119   :  { %v460_v56 = vmax.f32 %v336_v54, %v456_v55 }
 0x11b   :  { %464 = vst [vmem:[%s934_s4 + $0x18] sm:$0xff] %v460_v56 }

// kernel: transformer_model_forward.22
= control target key start
LH: loop header
LB: loop body
LE: loop exit
PB: predicated region body
PF: predicated region fallthrough
CT: control target
= control target key end

     0   :  { %v627_v1 = vmov 0   ;;  %s954_s2 = inlined_call_operand.vmem [shape: bf16[384,256], index: 2, kind: input, shape index: {}]   ;;  %s955_s0 = inlined_call_operand.vmem [shape: f32[8,384], index: 0, kind: input, shape index: {}]   ;;  %s956_s1 = inlined_call_operand.vmem [shape: f32[8,384], index: 1, kind: input, shape index: {}]   ;;  %s957_s3 = inlined_call_operand.vmem [shape: f32[1,256], index: 3, kind: input, shape index: {}]   ;;  %s958_s4 = inlined_call_operand.vmem [shape: f32[8,256], index: 4, kind: output, shape index: {}]  }
   0x1   :  { %v656_v0 = vld [vmem:[%s954_s2 + $0x74] ss:$8 sps:$4 sm:$0xff]   ;;  %397 = vmatprep.mubr.bf16.mxu1 %v627_v1  ;;  %v668_v3 = vld [vmem:[%s954_s2 + $0x70] ss:$8 sps:$4 sm:$0xff]   ;;  %v679_v5 = vld [vmem:[%s954_s2 + $0x64] ss:$8 sps:$4 sm:$0xff]  }
   0x2   :  { %v662_v2 = vld [vmem:[%s954_s2 + $0x174] ss:$8 sps:$4 sm:$0xff]   ;;  %324 = vmatprep.subr.bf16.mxu0 %v656_v0  ;;  %v673_v4 = vld [vmem:[%s954_s2 + $0x170] ss:$8 sps:$4 sm:$0xff]   ;;  %v686_v6 = vld [vmem:[%s954_s2 + $0x164] ss:$8 sps:$4 sm:$0xff]  }
   0x3   :  { %365 = vmatprep.subr.bf16.mxu1 %v662_v2  ;;  %325 = vmatpush1.bf16.msra.mxu0 %v668_v3  ;;  %v691_v7 = vld [vmem:[%s954_s2 + $0x60] ss:$8 sps:$4 sm:$0xff]   ;;  %v703_v9 = vld [vmem:[%s954_s2 + $0x54] ss:$8 sps:$4 sm:$0xff]   ;;  %v713_v11 = vld [vmem:[%s954_s2 + $0x50] ss:$8 sps:$4 sm:$0xff]  }
   0x4   :  { %366 = vmatpush1.bf16.msra.mxu1 %v673_v4  ;;  %326 = vmatprep.subr.bf16.mxu0 %v679_v5  ;;  %v697_v8 = vld [vmem:[%s954_s2 + $0x160] ss:$8 sps:$4 sm:$0xff]   ;;  %v708_v10 = vld [vmem:[%s954_s2 + $0x154] ss:$8 sps:$4 sm:$0xff]   ;;  %v718_v12 = vld [vmem:[%s954_s2 + $0x150] ss:$8 sps:$4 sm:$0xff]  }
   0x5   :  { %367 = vmatprep.subr.bf16.mxu1 %v686_v6  ;;  %v725_v13 = vld [vmem:[%s954_s2 + $0x44] ss:$8 sps:$4 sm:$0xff]   ;;  %v737_v15 = vld [vmem:[%s954_s2 + $0x40] ss:$8 sps:$4 sm:$0xff]   ;;  %v749_v17 = vld [vmem:[%s954_s2 + $0x34] ss:$8 sps:$4 sm:$0xff]  }
   0x6   :  { %v732_v14 = vld [vmem:[%s954_s2 + $0x144] ss:$8 sps:$4 sm:$0xff]   ;;  %v744_v16 = vld [vmem:[%s954_s2 + $0x140] ss:$8 sps:$4 sm:$0xff]   ;;  %v756_v18 = vld [vmem:[%s954_s2 + $0x134] ss:$8 sps:$4 sm:$0xff]  }
   0x7   :  { %327 = vmatpush1.bf16.msra.mxu0 %v691_v7  ;;  %v761_v19 = vld [vmem:[%s954_s2 + $0x30] ss:$8 sps:$4 sm:$0xff]   ;;  %v773_v21 = vld [vmem:[%s954_s2 + $0x24] ss:$8 sps:$4 sm:$0xff]   ;;  %v785_v23 = vld [vmem:[%s954_s2 + $0x20] ss:$8 sps:$4 sm:$0xff]  }
   0x8   :  { %368 = vmatpush1.bf16.msra.mxu1 %v697_v8  ;;  %328 = vmatprep.subr.bf16.mxu0 %v703_v9  ;;  %v766_v20 = vld [vmem:[%s954_s2 + $0x130] ss:$8 sps:$4 sm:$0xff]   ;;  %v780_v22 = vld [vmem:[%s954_s2 + $0x124] ss:$8 sps:$4 sm:$0xff]   ;;  %v792_v24 = vld [vmem:[%s954_s2 + $0x120] ss:$8 sps:$4 sm:$0xff]  }
   0x9   :  { %369 = vmatprep.subr.bf16.mxu1 %v708_v10  ;;  %v797_v25 = vld [vmem:[%s954_s2 + $0x14] ss:$8 sps:$4 sm:$0xff]   ;;  %v809_v27 = vld [vmem:[%s954_s2 + $0x10] ss:$8 sps:$4 sm:$0xff]   ;;  %v823_v29 = vld [vmem:[%s954_s2 + $0x4] ss:$8 sps:$4 sm:$0xff]  }
   0xa   :  { %v804_v26 = vld [vmem:[%s954_s2 + $0x114] ss:$8 sps:$4 sm:$0xff]   ;;  %v816_v28 = vld [vmem:[%s954_s2 + $0x110] ss:$8 sps:$4 sm:$0xff]   ;;  %v828_v30 = vld [vmem:[%s954_s2 + $0x104] ss:$8 sps:$4 sm:$0xff]  }
   0xb   :  { %329 = vmatpush1.bf16.msra.mxu0 %v713_v11  ;;  %v833_v31 = vld [vmem:[%s954_s2] ss:$8 sps:$4 sm:$0xff]   ;;  %v69_v33 = vld [vmem:[%s955_s0 + $0x10] sm:$0xff]  ;;  %v606_v38 = vld [vmem:[%s954_s2 + $0xe4] ss:$8 sps:$4 sm:$0xff]  }
   0xc   :  { %370 = vmatpush1.bf16.msra.mxu1 %v718_v12  ;;  %330 = vmatprep.subr.bf16.mxu0 %v725_v13  ;;  %v838_v32 = vld [vmem:[%s954_s2 + $0x100] ss:$8 sps:$4 sm:$0xff]   ;;  %v603_v34 = vld [vmem:[%s954_s2 + $0xf4] ss:$8 sps:$4 sm:$0xff]   ;;  %v72_v35 = vpack.c.bf16 %v69_v33, %v69_v33  ;;  %v605_v36 = vld [vmem:[%s954_s2 + $0xf0] ss:$8 sps:$4 sm:$0xff]  }
   0xd   :  { %371 = vmatprep.subr.bf16.mxu1 %v732_v14  ;;  %v68_v37 = vld [vmem:[%s955_s0 + $0x8] sm:$0xff]  ;;  %v609_v43 = vld [vmem:[%s954_s2 + $0xd4] ss:$8 sps:$4 sm:$0xff]   ;;  %v611_v44 = vld [vmem:[%s954_s2 + $0xd0] ss:$8 sps:$4 sm:$0xff]  }
   0xe   :  { %v71_v39 = vpack.c.bf16 %v68_v37, %v68_v37  ;;  %v409_v40 = vld [vmem:[%s956_s1 + $0x8] sm:$0xff]  ;;  %v615_v47 = vld [vmem:[%s954_s2 + $0xb4] ss:$8 sps:$4 sm:$0xff]   ;;  %v617_v48 = vld [vmem:[%s954_s2 + $0xb0] ss:$8 sps:$4 sm:$0xff]  }
   0xf   :  { %331 = vmatpush1.bf16.msra.mxu0 %v737_v15  ;;  %v412_v41 = vpack.c.bf16 %v409_v40, %v409_v40  ;;  %v608_v42 = vld [vmem:[%s954_s2 + $0xe0] ss:$8 sps:$4 sm:$0xff]   ;;  %v612_v45 = vld [vmem:[%s954_s2 + $0xc4] ss:$8 sps:$4 sm:$0xff]   ;;  %v621_v51 = vld [vmem:[%s954_s2 + $0x94] ss:$8 sps:$4 sm:$0xff]  }
  0x10   :  { %372 = vmatpush1.bf16.msra.mxu1 %v744_v16  ;;  %332 = vmatprep.subr.bf16.mxu0 %v749_v17  ;;  %v614_v46 = vld [vmem:[%s954_s2 + $0xc0] ss:$8 sps:$4 sm:$0xff]   ;;  %v618_v49 = vld [vmem:[%s954_s2 + $0xa4] ss:$8 sps:$4 sm:$0xff]   ;;  %v623_v52 = vld [vmem:[%s954_s2 + $0x90] ss:$8 sps:$4 sm:$0xff]  }
  0x11   :  { %373 = vmatprep.subr.bf16.mxu1 %v756_v18  ;;  %356 = vmatprep.mubr.bf16.mxu0 %v71_v39  ;;  %v620_v50 = vld [vmem:[%s954_s2 + $0xa0] ss:$8 sps:$4 sm:$0xff]   ;;  %v624_v53 = vld [vmem:[%s954_s2 + $0x84] ss:$8 sps:$4 sm:$0xff]   ;;  %v410_v58 = vld [vmem:[%s956_s1 + $0x10] sm:$0xff] }
  0x12   :  { %v626_v54 = vld [vmem:[%s954_s2 + $0x80] ss:$8 sps:$4 sm:$0xff]   ;;  %v413_v60 = vpack.c.bf16 %v410_v58, %v410_v58 }
  0x13   :  { %333 = vmatpush1.bf16.msra.mxu0 %v761_v19  ;;  %v67_v55 = vld [vmem:[%s955_s0] sm:$0xff] }
  0x14   :  { %374 = vmatpush1.bf16.msra.mxu1 %v766_v20  ;;  %334 = vmatprep.subr.bf16.mxu0 %v773_v21  ;;  %v70_v56 = vpack.c.bf16 %v67_v55, %v67_v55  ;;  %v408_v57 = vld [vmem:[%s956_s1] sm:$0xff] }
  0x15   :  { %375 = vmatprep.subr.bf16.mxu1 %v780_v22  ;;  %v411_v59 = vpack.c.bf16 %v408_v57, %v408_v57 }
  0x17   :  { %335 = vmatpush1.bf16.msra.mxu0 %v785_v23 }
  0x18   :  { %376 = vmatpush1.bf16.msra.mxu1 %v792_v24  ;;  %336 = vmatprep.subr.bf16.mxu0 %v797_v25 }
  0x19   :  { %377 = vmatprep.subr.bf16.mxu1 %v804_v26 }
  0x1b   :  { %337 = vmatpush1.bf16.msra.mxu0 %v809_v27 }
  0x1c   :  { %378 = vmatpush1.bf16.msra.mxu1 %v816_v28  ;;  %338 = vmatprep.subr.bf16.mxu0 %v823_v29 }
  0x1d   :  { %379 = vmatprep.subr.bf16.mxu1 %v828_v30 }
  0x1f   :  { %339 = vmatpush1.bf16.msra.mxu0 %v833_v31 }
  0x20   :  { %380 = vmatpush1.bf16.msra.mxu1 %v838_v32  ;;  %340 = vmatprep.subr.bf16.mxu0 %v603_v34 }
  0x21   :  { %414 = vmatprep.subr.bf16.mxu1 %v656_v0 }
  0x23   :  { %398 = vmatmul.mubr.bf16.vlgmr.msra.gmra.mxu1 %v72_v35  ;;  %341 = vmatpush2.bf16.msra.mxu0 %v605_v36 }
  0x24   :  { %415 = vmatpush1.bf16.msra.mxu1 %v668_v3  ;;  %342 = vmatprep.subr.bf16.mxu0 %v606_v38 }
  0x25   :  { %416 = vmatprep.subr.bf16.mxu1 %v679_v5  ;;  %446 = vmatprep.mubr.bf16.mxu1 %v412_v41  ;;  %v74_v5 = vlaneseq }
  0x27   :  { %343 = vmatpush2.bf16.msra.mxu0 %v608_v42 }
  0x28   :  { %417 = vmatpush1.bf16.msra.mxu1 %v691_v7  ;;  %344 = vmatprep.subr.bf16.mxu0 %v609_v43 }
  0x29   :  { %418 = vmatprep.subr.bf16.mxu1 %v703_v9 }
  0x2b   :  { %345 = vmatpush2.bf16.msra.mxu0 %v611_v44 }
  0x2c   :  { %419 = vmatpush1.bf16.msra.mxu1 %v713_v11  ;;  %346 = vmatprep.subr.bf16.mxu0 %v612_v45 }
  0x2d   :  { %420 = vmatprep.subr.bf16.mxu1 %v725_v13 }
  0x2f   :  { %347 = vmatpush2.bf16.msra.mxu0 %v614_v46 }
  0x30   :  { %421 = vmatpush1.bf16.msra.mxu1 %v737_v15  ;;  %348 = vmatprep.subr.bf16.mxu0 %v615_v47 }
  0x31   :  { %422 = vmatprep.subr.bf16.mxu1 %v749_v17 }
  0x33   :  { %349 = vmatpush2.bf16.msra.mxu0 %v617_v48 }
  0x34   :  { %423 = vmatpush1.bf16.msra.mxu1 %v761_v19  ;;  %350 = vmatprep.subr.bf16.mxu0 %v618_v49 }
  0x35   :  { %424 = vmatprep.subr.bf16.mxu1 %v773_v21 }
  0x37   :  { %351 = vmatpush2.bf16.msra.mxu0 %v620_v50 }
  0x38   :  { %425 = vmatpush1.bf16.msra.mxu1 %v785_v23  ;;  %352 = vmatprep.subr.bf16.mxu0 %v621_v51 }
  0x39   :  { %426 = vmatprep.subr.bf16.mxu1 %v797_v25 }
  0x3b   :  { %353 = vmatpush2.bf16.msra.mxu0 %v623_v52 }
  0x3c   :  { %427 = vmatpush1.bf16.msra.mxu1 %v809_v27  ;;  %354 = vmatprep.subr.bf16.mxu0 %v624_v53 }
  0x3d   :  { %428 = vmatprep.subr.bf16.mxu1 %v823_v29 }
  0x3f   :  { %355 = vmatpush2.bf16.msra.mxu0 %v626_v54 }
  0x40   :  { %429 = vmatpush1.bf16.msra.mxu1 %v833_v31  ;;  %455 = vmatprep.subr.bf16.mxu0 %v662_v2 }
  0x41   :  { %430 = vmatprep.subr.bf16.mxu1 %v603_v34 }
  0x42   :  { %357 = vmatmul.mubr.bf16.vlgmr.msra.gmra.mxu0 %v70_v56 }
  0x43   :  { %456 = vmatpush1.bf16.msra.mxu0 %v673_v4  ;;  %487 = vmatprep.mubr.bf16.mxu0 %v627_v1 }
  0x44   :  { %431 = vmatpush2.bf16.msra.mxu1 %v605_v36  ;;  %457 = vmatprep.subr.bf16.mxu0 %v686_v6  ;;  %v75_v6 = vshrl.u32 %v74_v5, 7 }
  0x45   :  { %432 = vmatprep.subr.bf16.mxu1 %v606_v38 }
  0x46   :  { %v76_v7 = vsub.s32 0, %v75_v6  ;;  %v80_v9 = vsub.s32 1, %v75_v6 }
  0x47   :  { %458 = vmatpush1.bf16.msra.mxu0 %v697_v8  ;;  %v66_v8 = vld [vmem:[%s957_s3] sm:$0x3] }
  0x48   :  { %433 = vmatpush2.bf16.msra.mxu1 %v608_v42  ;;  %459 = vmatprep.subr.bf16.mxu0 %v708_v10  ;;  %v77_v10 = vrot.slane %v66_v8, %v76_v7  ;;  %v81_v11 = vrot.slane %v66_v8, %v80_v9 }
  0x49   :  { %434 = vmatprep.subr.bf16.mxu1 %v609_v43 }
  0x4b   :  { %460 = vmatpush1.bf16.msra.mxu0 %v718_v12 }
  0x4c   :  { %435 = vmatpush2.bf16.msra.mxu1 %v611_v44  ;;  %461 = vmatprep.subr.bf16.mxu0 %v732_v14 }
  0x4d   :  { %436 = vmatprep.subr.bf16.mxu1 %v612_v45 }
  0x4f   :  { %462 = vmatpush1.bf16.msra.mxu0 %v744_v16 }
  0x50   :  { %437 = vmatpush2.bf16.msra.mxu1 %v614_v46  ;;  %463 = vmatprep.subr.bf16.mxu0 %v756_v18 }
  0x51   :  { %438 = vmatprep.subr.bf16.mxu1 %v615_v47 }
  0x53   :  { %464 = vmatpush1.bf16.msra.mxu0 %v766_v20 }
  0x54   :  { %439 = vmatpush2.bf16.msra.mxu1 %v617_v48  ;;  %465 = vmatprep.subr.bf16.mxu0 %v780_v22 }
  0x55   :  { %440 = vmatprep.subr.bf16.mxu1 %v618_v49 }
  0x57   :  { %466 = vmatpush1.bf16.msra.mxu0 %v792_v24 }
  0x58   :  { %441 = vmatpush2.bf16.msra.mxu1 %v620_v50  ;;  %467 = vmatprep.subr.bf16.mxu0 %v804_v26 }
  0x59   :  { %442 = vmatprep.subr.bf16.mxu1 %v621_v51 }
  0x5b   :  { %468 = vmatpush1.bf16.msra.mxu0 %v816_v28 }
  0x5c   :  { %443 = vmatpush2.bf16.msra.mxu1 %v623_v52  ;;  %469 = vmatprep.subr.bf16.mxu0 %v828_v30 }
  0x5d   :  { %444 = vmatprep.subr.bf16.mxu1 %v624_v53 }
  0x5f   :  { %470 = vmatpush1.bf16.msra.mxu0 %v838_v32 }
  0x60   :  { %445 = vmatpush2.bf16.msra.mxu1 %v626_v54 }
  0x62   :  { %488 = vmatmul.mubr.bf16.vlgmr.msra.gmra.mxu0 %v413_v60 }
  0x63   :  { %447 = vmatmul.mubr.bf16.vlgmr.msra.gmra.mxu1 %v411_v59 }
  0xe3   :  { %v399_v61 = vpop.f32.mrf.mxu1 }
  0xe5   :  { %v401_v62 = vpop.f32.mrf.mxu1 }
  0xe7   :  { %v403_v63 = vpop.f32.mrf.mxu1 }
  0xe9   :  { %v404_v0 = vpop.f32.mrf.mxu1 }
 0x102   :  { %v358_v1 = vpop.f32.mrf.mxu0 }
 0x103   :  { %v359_v12 = vadd.f32 %v358_v1, %v77_v10 }
 0x104   :  { %v360_v2 = vpop.f32.mrf.mxu0 }
 0x105   :  { %v361_v13 = vadd.f32 %v360_v2, %v81_v11  ;;  %v400_v16 = vadd.f32 %v399_v61, %v359_v12 }
 0x106   :  { %v362_v3 = vpop.f32.mrf.mxu0 }
 0x107   :  { %v402_v20 = vadd.f32 %v401_v62, %v361_v13  ;;  %v406_v25 = vmax.f32 %v400_v16, 0.0 }
 0x108   :  { %v363_v4 = vpop.f32.mrf.mxu0 }
 0x109   :  { %v407_v30 = vmax.f32 %v402_v20, 0.0 }
 0x122   :  { %v489_v15 = vpop.f32.mrf.mxu0 }
 0x123   :  { %v448_v14 = vpop.f32.mrf.mxu1 }
 0x124   :  { %v449_v17 = vadd.f32 %v448_v14, %v77_v10  ;;  %v491_v19 = vpop.f32.mrf.mxu0 }
 0x125   :  { %v450_v18 = vpop.f32.mrf.mxu1 }
 0x126   :  { %v490_v21 = vadd.f32 %v489_v15, %v449_v17  ;;  %v451_v22 = vadd.f32 %v450_v18, %v81_v11  ;;  %v493_v24 = vpop.f32.mrf.mxu0 }
 0x127   :  { %v452_v23 = vpop.f32.mrf.mxu1 }
 0x128   :  { %v496_v26 = vmax.f32 %v490_v21, 0.0  ;;  %v492_v27 = vadd.f32 %v491_v19, %v451_v22  ;;  %v494_v29 = vpop.f32.mrf.mxu0 }
 0x129   :  { %v453_v28 = vpop.f32.mrf.mxu1 }
 0x12a   :  { %v498_v31 = vmax.f32 %v406_v25, %v496_v26  ;;  %v497_v32 = vmax.f32 %v492_v27, 0.0 }
 0x12c   :  { %500 = vst [vmem:[%s958_s4] sm:$0xff] %v498_v31  ;;  %v499_v33 = vmax.f32 %v407_v30, %v497_v32 }
 0x12e   :  { %501 = vst [vmem:[%s958_s4 + $0x8] sm:$0xff] %v499_v33 }

// kernel: transformer_model_forward.23
= control target key start
LH: loop header
LB: loop body
LE: loop exit
PB: predicated region body
PF: predicated region fallthrough
CT: control target
= control target key end

     0   :  { %vm194_vm0 = vcmask 523264   ;;  %s335_s1 = inlined_call_operand.vmem [shape: bf16[256,64], index: 1, kind: input, shape index: {}]   ;;  %s336_s0 = inlined_call_operand.vmem [shape: f32[8,256], index: 0, kind: input, shape index: {}]   ;;  %s337_s2 = inlined_call_operand.vmem [shape: f32[1,64], index: 2, kind: input, shape index: {}]   ;;  %s338_s3 = inlined_call_operand.vmem [shape: f32[8,64], index: 3, kind: output, shape index: {}]  }
   0x1   :  { %v239_v0 = vld [vmem:[%s335_s1 + $0x78] sm:$0xff]   ;;  %v241_v2 = vld [vmem:[%s335_s1 + $0x70] sm:$0xff]   ;;  %v243_v4 = vld [vmem:[%s335_s1 + $0x68] sm:$0xff]  }
   0x2   :  { %v240_v1 = vld [vmem:[%s335_s1 + $0x38] sm:$0xff]   ;;  %217 = vmatprep.subr.bf16.mxu0 %v239_v0  ;;  %v242_v3 = vld [vmem:[%s335_s1 + $0x30] sm:$0xff]   ;;  %v244_v5 = vld [vmem:[%s335_s1 + $0x28] sm:$0xff]  }
   0x3   :  { %218 = vmatpush3.bf16.msra.mxu0 %v240_v1  ;;  %v245_v6 = vld [vmem:[%s335_s1 + $0x60] sm:$0xff]   ;;  %v247_v8 = vld [vmem:[%s335_s1 + $0x58] sm:$0xff]   ;;  %v249_v10 = vld [vmem:[%s335_s1 + $0x50] sm:$0xff]  }
   0x4   :  { %219 = vmatprep.subr.bf16.mxu0 %v241_v2  ;;  %v246_v7 = vld [vmem:[%s335_s1 + $0x20] sm:$0xff]   ;;  %v248_v9 = vld [vmem:[%s335_s1 + $0x18] sm:$0xff]   ;;  %v48_v11 = vld [vmem:[%s336_s0 + $0x8] sm:$0xff] }
   0x5   :  { %v50_v12 = vpack.c.bf16 %v48_v11, %v48_v11  ;;  %v250_v13 = vld [vmem:[%s335_s1 + $0x10] sm:$0xff]   ;;  %v251_v14 = vld [vmem:[%s335_s1 + $0x48] sm:$0xff]   ;;  %v253_v16 = vld [vmem:[%s335_s1 + $0x40] sm:$0xff]  }
   0x6   :  { %v252_v15 = vld [vmem:[%s335_s1 + $0x8] sm:$0xff]   ;;  %v254_v17 = vld [vmem:[%s335_s1] sm:$0xff]  }
   0x7   :  { %220 = vmatpush3.bf16.msra.mxu0 %v242_v3  ;;  %186 = vmatprep.mubr.bf16.mxu0 %v50_v12  ;;  %v47_v18 = vld [vmem:[%s336_s0] sm:$0xff] }
   0x8   :  { %221 = vmatprep.subr.bf16.mxu0 %v243_v4  ;;  %v49_v19 = vpack.c.bf16 %v47_v18, %v47_v18  ;;  %v200_v21 = vld [vmem:[%s337_s2] ss:$0 sm:$0xff] }
   0xb   :  { %222 = vmatpush3.bf16.msra.mxu0 %v244_v5 }
   0xc   :  { %223 = vmatprep.subr.bf16.mxu0 %v245_v6 }
   0xf   :  { %224 = vmatpush3.bf16.msra.mxu0 %v246_v7 }
  0x10   :  { %225 = vmatprep.subr.bf16.mxu0 %v247_v8 }
  0x13   :  { %226 = vmatpush3.bf16.msra.mxu0 %v248_v9 }
  0x14   :  { %227 = vmatprep.subr.bf16.mxu0 %v249_v10 }
  0x17   :  { %228 = vmatpush3.bf16.msra.mxu0 %v250_v13 }
  0x18   :  { %229 = vmatprep.subr.bf16.mxu0 %v251_v14 }
  0x1b   :  { %230 = vmatpush3.bf16.msra.mxu0 %v252_v15 }
  0x1c   :  { %231 = vmatprep.subr.bf16.mxu0 %v253_v16 }
  0x1f   :  { %232 = vmatpush3.bf16.msra.mxu0 %v254_v17 }
  0x22   :  { %187 = vmatmul.mubr.bf16.vlgmr.msra.gmra.mxu0 %v49_v19 }
  0xe2   :  { %v233_v20 = vpop.f32.mrf.mxu0 }
  0xe4   :  { %v234_v22 = vpop.f32.mrf.mxu0 }
  0xe5   :  { %v235_v23 = vadd.f32 %v234_v22, %v233_v20 }
  0xe6   :  { %v236_v24 = vpop.f32.mrf.mxu0 }
  0xe7   :  { %v189_v25 = vadd.f32 %v235_v23, %v200_v21 }
  0xe8   :  { %v237_v26 = vpop.f32.mrf.mxu0 }
  0xe9   :  { %195 = vst.msk [vmem:[%s338_s3] sm:$0xff] %vm194_vm0, %v189_v25 }

// kernel: transformer_model_forward.24
= control target key start
LH: loop header
LB: loop body
LE: loop exit
PB: predicated region body
PF: predicated region fallthrough
CT: control target
= control target key end

     0   :  { %v150_v1 = vmov 0   ;;  %vm77_vm0 = vcmask 523264   ;;  %v27_v11 = vlaneseq  ;;  %s209_s1 = inlined_call_operand.vmem [shape: bf16[64,192], index: 1, kind: input, shape index: {}]   ;;  %s210_s0 = inlined_call_operand.vmem [shape: f32[8,64], index: 0, kind: input, shape index: {}]   ;;  %s211_s2 = inlined_call_operand.vmem [shape: f32[1,192], index: 2, kind: input, shape index: {}]   ;;  %s212_s3 = inlined_call_operand.vmem [shape: f32[8,192], index: 3, kind: output, shape index: {}]  }
   0x1   :  { %v138_v0 = vld [vmem:[%s209_s1 + $0x34] ss:$8 sps:$4 sm:$0xff]   ;;  %113 = vmatprep.mubr.bf16.mxu0 %v150_v1  ;;  %v140_v2 = vld [vmem:[%s209_s1 + $0x30] ss:$8 sps:$4 sm:$0xff]   ;;  %v141_v3 = vld [vmem:[%s209_s1 + $0x24] ss:$8 sps:$4 sm:$0xff]  }
   0x2   :  { %89 = vmatprep.subr.bf16.mxu0 %v138_v0  ;;  %v143_v4 = vld [vmem:[%s209_s1 + $0x20] ss:$8 sps:$4 sm:$0xff]   ;;  %v144_v5 = vld [vmem:[%s209_s1 + $0x14] ss:$8 sps:$4 sm:$0xff]   ;;  %v146_v6 = vld [vmem:[%s209_s1 + $0x10] ss:$8 sps:$4 sm:$0xff]  }
   0x3   :  { %90 = vmatpush1.bf16.msra.mxu0 %v140_v2  ;;  %v147_v7 = vld [vmem:[%s209_s1 + $0x4] ss:$8 sps:$4 sm:$0xff]   ;;  %v149_v8 = vld [vmem:[%s209_s1] ss:$8 sps:$4 sm:$0xff]   ;;  %v28_v12 = vshrl.u32 %v27_v11, 7 }
   0x4   :  { %91 = vmatprep.subr.bf16.mxu0 %v141_v3  ;;  %v23_v9 = vld [vmem:[%s210_s0] sm:$0xff] }
   0x5   :  { %v24_v10 = vpack.c.bf16 %v23_v9, %v23_v9  ;;  %v29_v13 = vsub.s32 0, %v28_v12  ;;  %v25_v14 = vld [vmem:[%s211_s2] sm:$0x3]  ;;  %v33_v15 = vsub.s32 1, %v28_v12 }
   0x7   :  { %92 = vmatpush1.bf16.msra.mxu0 %v143_v4  ;;  %v30_v16 = vrot.slane %v25_v14, %v29_v13  ;;  %v34_v17 = vrot.slane %v25_v14, %v33_v15 }
   0x8   :  { %93 = vmatprep.subr.bf16.mxu0 %v144_v5 }
   0xb   :  { %94 = vmatpush1.bf16.msra.mxu0 %v146_v6 }
   0xc   :  { %95 = vmatprep.subr.bf16.mxu0 %v147_v7 }
   0xf   :  { %96 = vmatpush1.bf16.msra.mxu0 %v149_v8 }
  0x12   :  { %136 = vmatmul.mubr.msk.bf16.vlgmr.msra.gmra.mxu0 %vm77_vm0, %v24_v10 }
  0xd2   :  { %v115_v18 = vpop.f32.mrf.mxu0 }
  0xd3   :  { %v116_v19 = vadd.f32 %v115_v18, %v30_v16 }
  0xd4   :  { %v117_v20 = vpop.f32.mrf.mxu0 }
  0xd5   :  { %122 = vst [vmem:[%s212_s3] sm:$0xff] %v116_v19  ;;  %v118_v21 = vadd.f32 %v117_v20, %v34_v17 }
  0xd6   :  { %v119_v22 = vpop.f32.mrf.mxu0 }
  0xd7   :  { %123 = vst.msk [vmem:[%s212_s3 + $0x8] sm:$0xff] %vm77_vm0, %v118_v21 }
  0xd8   :  { %v120_v23 = vpop.f32.mrf.mxu0 }

// kernel: transformer_model_forward.27
= control target key start
LH: loop header
LB: loop body
LE: loop exit
PB: predicated region body
PF: predicated region fallthrough
CT: control target
= control target key end

     0   :  { %v152_v1 = vmov 0   ;;  %vm77_vm0 = vcmask 523264   ;;  %v27_v11 = vlaneseq  ;;  %s209_s1 = inlined_call_operand.vmem [shape: bf16[64,256], index: 1, kind: input, shape index: {}]   ;;  %s210_s0 = inlined_call_operand.vmem [shape: f32[8,64], index: 0, kind: input, shape index: {}]   ;;  %s211_s2 = inlined_call_operand.vmem [shape: f32[1,256], index: 2, kind: input, shape index: {}]   ;;  %s212_s3 = inlined_call_operand.vmem [shape: f32[8,256], index: 3, kind: output, shape index: {}]  }
   0x1   :  { %v140_v0 = vld [vmem:[%s209_s1 + $0x34] ss:$8 sps:$4 sm:$0xff]   ;;  %113 = vmatprep.mubr.bf16.mxu0 %v152_v1  ;;  %v142_v2 = vld [vmem:[%s209_s1 + $0x30] ss:$8 sps:$4 sm:$0xff]   ;;  %v143_v3 = vld [vmem:[%s209_s1 + $0x24] ss:$8 sps:$4 sm:$0xff]  }
   0x2   :  { %89 = vmatprep.subr.bf16.mxu0 %v140_v0  ;;  %v145_v4 = vld [vmem:[%s209_s1 + $0x20] ss:$8 sps:$4 sm:$0xff]   ;;  %v146_v5 = vld [vmem:[%s209_s1 + $0x14] ss:$8 sps:$4 sm:$0xff]   ;;  %v148_v6 = vld [vmem:[%s209_s1 + $0x10] ss:$8 sps:$4 sm:$0xff]  }
   0x3   :  { %90 = vmatpush1.bf16.msra.mxu0 %v142_v2  ;;  %v149_v7 = vld [vmem:[%s209_s1 + $0x4] ss:$8 sps:$4 sm:$0xff]   ;;  %v151_v8 = vld [vmem:[%s209_s1] ss:$8 sps:$4 sm:$0xff]   ;;  %v28_v12 = vshrl.u32 %v27_v11, 7 }
   0x4   :  { %91 = vmatprep.subr.bf16.mxu0 %v143_v3  ;;  %v23_v9 = vld [vmem:[%s210_s0] sm:$0xff] }
   0x5   :  { %v24_v10 = vpack.c.bf16 %v23_v9, %v23_v9  ;;  %v29_v13 = vsub.s32 0, %v28_v12  ;;  %v25_v14 = vld [vmem:[%s211_s2] sm:$0x3]  ;;  %v33_v15 = vsub.s32 1, %v28_v12 }
   0x7   :  { %92 = vmatpush1.bf16.msra.mxu0 %v145_v4  ;;  %v30_v16 = vrot.slane %v25_v14, %v29_v13  ;;  %v34_v17 = vrot.slane %v25_v14, %v33_v15 }
   0x8   :  { %93 = vmatprep.subr.bf16.mxu0 %v146_v5 }
   0xb   :  { %94 = vmatpush1.bf16.msra.mxu0 %v148_v6 }
   0xc   :  { %95 = vmatprep.subr.bf16.mxu0 %v149_v7 }
   0xf   :  { %96 = vmatpush1.bf16.msra.mxu0 %v151_v8 }
  0x12   :  { %138 = vmatmul.mubr.msk.bf16.vlgmr.msra.gmra.mxu0 %vm77_vm0, %v24_v10 }
  0xd2   :  { %v115_v18 = vpop.f32.mrf.mxu0 }
  0xd3   :  { %v116_v19 = vadd.f32 %v115_v18, %v30_v16 }
  0xd4   :  { %v117_v20 = vpop.f32.mrf.mxu0 }
  0xd5   :  { %v122_v21 = vmax.f32 %v116_v19, 0.0  ;;  %v118_v22 = vadd.f32 %v117_v20, %v34_v17 }
  0xd6   :  { %v119_v23 = vpop.f32.mrf.mxu0 }
  0xd7   :  { %124 = vst [vmem:[%s212_s3] sm:$0xff] %v122_v21  ;;  %v123_v24 = vmax.f32 %v118_v22, 0.0 }
  0xd8   :  { %v120_v25 = vpop.f32.mrf.mxu0 }
  0xd9   :  { %125 = vst [vmem:[%s212_s3 + $0x8] sm:$0xff] %v123_v24 }

// kernel: transformer_model_forward.26
= control target key start
LH: loop header
LB: loop body
LE: loop exit
PB: predicated region body
PF: predicated region fallthrough
CT: control target
= control target key end

     0   :  { %v205_v0 = vmov 0.0   ;;  %vm206_vm0 = vmmov 0   ;;  %vm65_vm1 = vcmask 523264   ;;  %vm111_vm2 = vcmask 261120   ;;  %s280_s1 = inlined_call_operand.vmem [shape: bf16[64,64], index: 1, kind: input, shape index: {}]   ;;  %s281_s0 = inlined_call_operand.vmem [shape: f32[8,64], index: 0, kind: input, shape index: {}]   ;;  %s282_s2 = inlined_call_operand.vmem [shape: f32[1,64], index: 2, kind: input, shape index: {}]   ;;  %s283_s3 = inlined_call_operand.vmem [shape: f32[8,64], index: 3, kind: input, shape index: {}]   ;;  %s284_s4 = inlined_call_operand.vmem [shape: f32[1,64], index: 4, kind: input, shape index: {}]   ;;  %s285_s5 = inlined_call_operand.vmem [shape: f32[1,64], index: 5, kind: input, shape index: {}]   ;;  %s286_s6 = inlined_call_operand.vmem [shape: f32[8,64], index: 6, kind: output, shape index: {}]  }
   0x1   :  { %182 = vmatprep.subr.bf16.mxu0 %v205_v0  ;;  %v197_v1 = vld [vmem:[%s280_s1 + $0x18] sm:$0xff]   ;;  %190 = vmatprep.mubr.msk.bf16.mxu0 %vm206_vm0, %v205_v0  ;;  %v198_v2 = vld [vmem:[%s280_s1 + $0x10] sm:$0xff]   ;;  %v199_v3 = vld [vmem:[%s280_s1 + $0x8] sm:$0xff]  }
   0x2   :  { %183 = vmatpush3.bf16.msra.mxu0 %v197_v1  ;;  %v200_v4 = vld [vmem:[%s280_s1] sm:$0xff]  }
   0x3   :  { %184 = vmatprep.subr.bf16.mxu0 %v205_v0  ;;  %v32_v5 = vld [vmem:[%s281_s0] sm:$0xff]  ;;  %s207_s0 = smov 96  }
   0x4   :  { %v33_v6 = vpack.c.bf16 %v32_v5, %v32_v5  ;;  %v169_v7 = vld [vmem:[%s282_s2] ss:$0 sm:$0xff] }
   0x5   :  { %v109_v9 = vld [vmem:[%s283_s3] sm:$0xff] }
   0x6   :  { %185 = vmatpush3.bf16.msra.mxu0 %v198_v2  ;;  %v175_v38 = vld [vmem:[%s284_s4] ss:$0 sm:$0xff] }
   0x7   :  { %186 = vmatprep.subr.bf16.mxu0 %v205_v0  ;;  %v176_v40 = vld [vmem:[%s285_s5] ss:$0 sm:$0xff] }
   0xa   :  { %187 = vmatpush3.bf16.msra.mxu0 %v199_v3 }
   0xb   :  { %188 = vmatprep.subr.bf16.mxu0 %v205_v0 }
   0xe   :  { %189 = vmatpush3.bf16.msra.mxu0 %v200_v4 }
  0x11   :  { %191 = vmatmul.mubr.msk.bf16.vlgmr.msra.gmra.mxu0 %vm65_vm1, %v33_v6 }
  0xd1   :  { %v103_v8 = vpop.f32.mrf.mxu0 }
  0xd2   :  { %v104_v10 = vadd.f32 %v169_v7, %v103_v8 }
  0xd3   :  { %v192_v11 = vpop.f32.mrf.mxu0 }
  0xd4   :  { %v110_v12 = vadd.f32 %v109_v9, %v104_v10 }
  0xd5   :  { %v106_v13 = vpop.f32.mrf.mxu0 }
  0xd6   :  { %127 = vrot.lane.b32.xlu0 %v110_v12, %s207_s0  ;;  %v112_v14 = vsel %vm111_vm2, %v110_v12, 0.0 }
  0xd7   :  { %113 = vadd.xlane.f32.xlu1 %v112_v14  ;;  %v193_v15 = vpop.f32.mrf.mxu0 }
 0x148   :  { %v128_v16 = vpop.permute.xlu0 %127 }
 0x149   :  { %v130_v17 = vsel %vm111_vm2, %v128_v16, 0.0 }
 0x14a   :  { %131 = vadd.xlane.f32.xlu0 %v130_v17 }
 0x160   :  { %v114_v22 = vpop.xlane.xlu1 %113 }
 0x161   :  { %v116_v23 = vmul.f32 0.03125, %v114_v22 }
 0x163   :  { %v117_v24 = vsub.f32 %v110_v12, %v116_v23 }
 0x165   :  { %v118_v25 = vmul.f32 %v117_v24, %v117_v24 }
 0x167   :  { %v119_v26 = vsel %vm111_vm2, %v118_v25, 0.0 }
 0x1d3   :  { %v132_v18 = vpop.xlane.xlu0 %131 }
 0x1d4   :  { %v133_v19 = vmul.f32 0.03125, %v132_v18 }
 0x1d6   :  { %v134_v20 = vsub.f32 %v110_v12, %v133_v19 }
 0x1d8   :  { %v135_v21 = vmul.f32 %v134_v20, %v134_v20 }
 0x1da   :  { %137 = vrot.lane.b32.xlu1 %v135_v21, %s207_s0 }
 0x1fe   :  { %120 = vadd.xlane.f32.xlu1 %v119_v26 }
 0x24c   :  { %v138_v27 = vpop.permute.xlu1 %137 }
 0x24d   :  { %v140_v28 = vsel %vm111_vm2, %v138_v27, 0.0 }
 0x24e   :  { %141 = vadd.xlane.f32.xlu0 %v140_v28 }
 0x287   :  { %v121_v29 = vpop.xlane.xlu1 %120 }
 0x288   :  { %v122_v30 = vmul.f32 0.03125, %v121_v29 }
 0x28a   :  { %v123_v31 = vadd.f32 1e-05, %v122_v30 }
 0x28c   :  { %201 = vrsqrt.f32 %v123_v31 }
 0x299   :  { %v202_v35 = vpop.eup %201 }
 0x29a   :  { %v125_v37 = vmul.f32 %v202_v35, %v117_v24 }
 0x2d7   :  { %v142_v32 = vpop.xlane.xlu0 %141 }
 0x2d8   :  { %v143_v33 = vmul.f32 0.03125, %v142_v32 }
 0x2da   :  { %v144_v34 = vadd.f32 1e-05, %v143_v33 }
 0x2dc   :  { %203 = vrsqrt.f32 %v144_v34 }
 0x2e9   :  { %v204_v36 = vpop.eup %203 }
 0x2ea   :  { %v146_v39 = vmul.f32 %v204_v36, %v134_v20 }
 0x2ec   :  { %v147_v41 = vsel %vm111_vm2, %v125_v37, %v146_v39 }
 0x2ed   :  { %v155_v42 = vmul.f32 %v175_v38, %v147_v41 }
 0x2ef   :  { %v163_v43 = vadd.f32 %v176_v40, %v155_v42 }
 0x2f1   :  { %164 = vst.msk [vmem:[%s286_s6] sm:$0xff] %vm65_vm1, %v163_v43 }

// kernel: transformer_model_forward.25
= control target key start
LH: loop header
LB: loop body
LE: loop exit
PB: predicated region body
PF: predicated region fallthrough
CT: control target
= control target key end

     0   :  { %s1210_s12 = smov 0   ;;  %s1484_s0 = inlined_call_operand.vmem [shape: f32[8,8,8], index: 0, kind: input, shape index: {}]   ;;  %s1485_s1 = inlined_call_operand.vmem [shape: f32[8,8,8], index: 1, kind: input, shape index: {}]   ;;  %s1486_s2 = inlined_call_operand.vmem [shape: f32[8,8,8], index: 2, kind: input, shape index: {}]   ;;  %s1487_s3 = inlined_call_operand.vmem [shape: f32[8,4,16], index: 3, kind: output, shape index: {}]  }
   0x1 LB: > { %s1003_s13 = sadd.s32 4294967295, %s1183_s12   ;;  %p1007_p0 = scmp.ge.s32.totalorder %s1183_s12, 1  ;;  %s1183_s12 = sphi %s1210_s12, %s13_s12  }
   0x2   : > { %p160_p1 = scmp.lt.s32.totalorder %s1183_s12, 3 }
   0x4   : > { %p161_p2 = pnand %p1007_p0, %p160_p1 }
   0x5   : > { %s1008_s14 = sshll.u32 (!%p161_p2), %s1003_s13, 2  ;;  %s1187_s22 = smov (!%p161_p2), 124  }
   0x6   : > { %164 = sbr.rel (%p161_p2) target bundleno = 1045 (0x415), region = 32  ;;  %p195_p3 = scmp.lt.s32.totalorder (!%p161_p2), %s1008_s14, 7 }
   0x7   : > { %s1188_s26 = smov (!%p161_p2), 8   ;;  %s1189_s27 = smov (!%p161_p2), 4  }
   0xb   : > { %v1185_v0 = vmov 0.0   ;;  %vm1186_vm0 = vmmov 0   ;;  %s1489_s14 = smov (!%p195_p3, %s1008_s14), 7  ;;  %vm239_vm1 = vcmask 64512   ;;  %vm510_vm2 = vcmask 31748  }
   0xc   : > { %1042 = vmatprep.subr.bf16.mxu0 %v1185_v0  ;;  %1048 = vmatprep.subr.bf16.mxu1 %v1185_v0  ;;  %s1227_s15 = sshll.u32 %s1489_s14, 3  ;;  %vm469_vm3 = vcmask 64548   ;;  %vm555_vm4 = vcmask 60448   ;;  %vm424_vm5 = vcmask 27648   ;;  %vm721_vm6 = vcmask 1043456   ;;  %s1015_s28 = sshll.u32 %s1489_s14, 2 }
   0xd   : > { %1044 = vmatprep.mubr.msk.bf16.mxu0 %vm1186_vm0, %v1185_v0  ;;  %1050 = vmatprep.mubr.msk.bf16.mxu1 %vm1186_vm0, %v1185_v0  ;;  %s204_s18 = scalar_lea.vmem %s1485_s1, %s1227_s15  ;;  %s198_s21 = scalar_lea.vmem %s1484_s0, %s1227_s15  ;;  %vm684_vm7 = vcmask 31744   ;;  %vm918_vm8 = vcmask 125952  }
   0xe   : > { %v227_v1 = vld [vmem:[%s204_s18] sm:$0xff]  ;;  %v228_v2 = vld [vmem:[%s204_s18 + $0x8] sm:$0xff]  ;;  %v229_v5 = vld [vmem:[%s204_s18 + $0x10] sm:$0xff]  ;;  %s210_s25 = scalar_lea.vmem %s1486_s2, %s1227_s15  ;;  %s216_s4 = scalar_lea.vmem %s1487_s3, %s1015_s28 }
   0xf   : > { %v231_v3 = vpack.c.bf16 %v227_v1, %v227_v1  ;;  %v232_v4 = vpack.c.bf16 %v228_v2, %v228_v2  ;;  %v230_v6 = vld [vmem:[%s204_s18 + $0x18] sm:$0xff]  ;;  %v219_v9 = vld [vmem:[%s198_s21] sm:$0xff]  ;;  %v220_v10 = vld [vmem:[%s198_s21 + $0x8] sm:$0xff]  ;;  %v233_v11 = vpack.c.bf16 %v229_v5, %v229_v5 }
  0x10   : > { %v234_v12 = vpack.c.bf16 %v230_v6, %v230_v6  ;;  %v223_v13 = vpack.c.bf16 %v219_v9, %v219_v9  ;;  %v224_v14 = vpack.c.bf16 %v220_v10, %v220_v10  ;;  %v221_v17 = vld [vmem:[%s198_s21 + $0x10] sm:$0xff]  ;;  %v222_v18 = vld [vmem:[%s198_s21 + $0x18] sm:$0xff] }
  0x11   : > { %v244_v7 = vsel %vm239_vm1, %v231_v3, 0  ;;  %v290_v8 = vsel %vm239_vm1, %v232_v4, 0  ;;  %v336_v15 = vsel %vm239_vm1, %v233_v11, 0  ;;  %v225_v19 = vpack.c.bf16 %v221_v17, %v221_v17 }
  0x12   : > { %1043 = vmatpush3.bf16.xpose.msra.mxu0 %v244_v7  ;;  %1049 = vmatpush3.bf16.xpose.msra.mxu1 %v290_v8  ;;  %v382_v16 = vsel %vm239_vm1, %v234_v12, 0  ;;  %v226_v20 = vpack.c.bf16 %v222_v18, %v222_v18 }
  0x13   : > { %1054 = vmatprep.subr.bf16.mxu0 %v1185_v0  ;;  %1060 = vmatprep.subr.bf16.mxu1 %v1185_v0 }
  0x19   : > { %1045 = vmatmul.mubr.msk.bf16.vlgmr.msra.gmra.mxu0 %vm239_vm1, %v223_v13  ;;  %1051 = vmatmul.mubr.msk.bf16.vlgmr.msra.gmra.mxu1 %vm239_vm1, %v224_v14 }
  0x1a   : > { %1055 = vmatpush3.bf16.xpose.msra.mxu0 %v336_v15  ;;  %1061 = vmatpush3.bf16.xpose.msra.mxu1 %v382_v16 }
  0x1b   : > { %1056 = vmatprep.mubr.msk.bf16.mxu0 %vm1186_vm0, %v1185_v0  ;;  %1062 = vmatprep.mubr.msk.bf16.mxu1 %vm1186_vm0, %v1185_v0 }
  0x1c   : > { %1066 = vmatprep.subr.bf16.mxu0 %v1185_v0  ;;  %1072 = vmatprep.subr.bf16.mxu1 %v1185_v0 }
  0x21   : > { %1057 = vmatmul.mubr.msk.bf16.vlgmr.msra.gmra.mxu0 %vm239_vm1, %v225_v19  ;;  %1063 = vmatmul.mubr.msk.bf16.vlgmr.msra.gmra.mxu1 %vm239_vm1, %v226_v20 }
  0x22   : > { %1068 = vmatprep.mubr.msk.bf16.mxu0 %vm1186_vm0, %v1185_v0  ;;  %1074 = vmatprep.mubr.msk.bf16.mxu1 %vm1186_vm0, %v1185_v0 }
  0xd9   : > { %v1257_v21 = vpop.f32.mrf.mxu0  ;;  %v1259_v22 = vpop.f32.mrf.mxu1 }
  0xda   : > { %v619_v23 = vsel %vm510_vm2, %v1259_v22, -inf  ;;  %v470_v24 = vsel %vm469_vm3, %v1257_v21, -inf  ;;  %v559_v27 = vsel %vm555_vm4, %v1259_v22, -inf  ;;  %v473_v28 = vsel %vm469_vm3, %v1259_v22, -inf }
  0xdb   : > { %620 = vmax.xlane.f32.xlu1 %v619_v23  ;;  %v1052_v25 = vpop.f32.mrf.mxu1  ;;  %471 = vmax.xlane.f32.xlu0 %v470_v24  ;;  %v1046_v26 = vpop.f32.mrf.mxu0  ;;  %v428_v35 = vsel %vm424_vm5, %v1259_v22, -inf  ;;  %v616_v36 = vsel %vm510_vm2, %v1257_v21, -inf  ;;  %v556_v42 = vsel %vm555_vm4, %v1257_v21, -inf  ;;  %v425_v46 = vsel %vm424_vm5, %v1257_v21, -inf }
  0xdd   : > { %v283_v29 = vpop.f32.mrf.mxu0  ;;  %v329_v30 = vpop.f32.mrf.mxu1 }
  0xdf   : > { %560 = vmax.xlane.f32.xlu1 %v559_v27  ;;  %v1053_v31 = vpop.f32.mrf.mxu1  ;;  %474 = vmax.xlane.f32.xlu0 %v473_v28  ;;  %v1047_v32 = vpop.f32.mrf.mxu0 }
  0xe1   : > { %v1269_v33 = vpop.f32.mrf.mxu0  ;;  %v1271_v34 = vpop.f32.mrf.mxu1 }
  0xe2   : > { %v476_v39 = vsel %vm469_vm3, %v1269_v33, -inf  ;;  %v479_v45 = vsel %vm469_vm3, %v1271_v34, -inf  ;;  %v622_v47 = vsel %vm510_vm2, %v1269_v33, -inf  ;;  %v625_v48 = vsel %vm510_vm2, %v1271_v34, -inf }
  0xe3   : > { %429 = vmax.xlane.f32.xlu1 %v428_v35  ;;  %617 = vmax.xlane.f32.xlu0 %v616_v36  ;;  %v1058_v37 = vpop.f32.mrf.mxu0  ;;  %v1064_v38 = vpop.f32.mrf.mxu1  ;;  %v562_v49 = vsel %vm555_vm4, %v1269_v33, -inf  ;;  %v565_v50 = vsel %vm555_vm4, %v1271_v34, -inf  ;;  %v431_v51 = vsel %vm424_vm5, %v1269_v33, -inf  ;;  %v434_v52 = vsel %vm424_vm5, %v1271_v34, -inf }
  0xe5   : > { %v375_v40 = vpop.f32.mrf.mxu0  ;;  %v421_v41 = vpop.f32.mrf.mxu1 }
  0xe7   : > { %557 = vmax.xlane.f32.xlu0 %v556_v42  ;;  %477 = vmax.xlane.f32.xlu1 %v476_v39  ;;  %v1059_v43 = vpop.f32.mrf.mxu0  ;;  %v1065_v44 = vpop.f32.mrf.mxu1 }
  0xeb   : > { %426 = vmax.xlane.f32.xlu0 %v425_v46  ;;  %480 = vmax.xlane.f32.xlu1 %v479_v45 }
  0xef   : > { %623 = vmax.xlane.f32.xlu0 %v622_v47  ;;  %626 = vmax.xlane.f32.xlu1 %v625_v48 }
  0xf3   : > { %563 = vmax.xlane.f32.xlu0 %v562_v49  ;;  %566 = vmax.xlane.f32.xlu1 %v565_v50 }
  0xf7   : > { %432 = vmax.xlane.f32.xlu0 %v431_v51 }
  0xfb   : > { %435 = vmax.xlane.f32.xlu0 %v434_v52 }
 0x164   : > { %v621_v53 = vpop.xlane.xlu1 %620  ;;  %v472_v54 = vpop.xlane.xlu0 %471 }
 0x165   : > { %v482_v55 = vsub.f32 %v1257_v21, %v472_v54  ;;  %v629_v10 = vsub.f32 %v1259_v22, %v621_v53 }
 0x167   : > { %v486_v56 = vmul.f32 1.442695, %v482_v55  ;;  %v634_v13 = vmul.f32 1.442695, %v629_v10 }
 0x168   : > { %v561_v57 = vpop.xlane.xlu1 %560  ;;  %v475_v58 = vpop.xlane.xlu0 %474 }
 0x169   : > { %v483_v59 = vsub.f32 %v1259_v22, %v475_v58  ;;  %1113 = vpow2.f32 %v486_v56  ;;  %v569_v60 = vsub.f32 %v1259_v22, %v561_v57 }
 0x16b   : > { %v488_v61 = vmul.f32 1.442695, %v483_v59  ;;  %v574_v63 = vmul.f32 1.442695, %v569_v60 }
 0x16c   : > { %v618_v62 = vpop.xlane.xlu0 %617  ;;  %v430_v9 = vpop.xlane.xlu1 %429 }
 0x16d   : > { %1115 = vpow2.f32 %v488_v61  ;;  %v628_v8 = vsub.f32 %v1257_v21, %v618_v62  ;;  %v438_v11 = vsub.f32 %v1259_v22, %v430_v9 }
 0x16e   : > { %1117 = vpow2.f32 %v574_v63 }
 0x16f   : > { %v632_v12 = vmul.f32 1.442695, %v628_v8  ;;  %v443_v14 = vmul.f32 1.442695, %v438_v11 }
 0x170   : > { %v558_v1 = vpop.xlane.xlu0 %557  ;;  %v478_v16 = vpop.xlane.xlu1 %477 }
 0x171   : > { %v568_v2 = vsub.f32 %v1257_v21, %v558_v1  ;;  %v484_v19 = vsub.f32 %v1269_v33, %v478_v16  ;;  %v1387_v16 = vld [vmem:[%s210_s25 + $0x10] sm:$0xff] }
 0x173   : > { %v572_v3 = vmul.f32 1.442695, %v568_v2  ;;  %v490_v25 = vmul.f32 1.442695, %v484_v19  ;;  %v695_v19 = vrot.slane %v1387_v16, 4 }
 0x174   : > { %v427_v15 = vpop.xlane.xlu0 %426  ;;  %v481_v23 = vpop.xlane.xlu1 %480 }
 0x175   : > { %1119 = vpow2.f32 %v572_v3  ;;  %v485_v26 = vsub.f32 %v1271_v34, %v481_v23  ;;  %v437_v40 = vsub.f32 %v1257_v21, %v427_v15 }
 0x176   : > { %v1301_v4 = vpop.eup %1113  ;;  %1121 = vpow2.f32 %v632_v12 }
 0x177   : > { %498 = vrot.lane.b32.xlu0 %v1301_v4, %s1187_s22  ;;  %1123 = vpow2.f32 %v634_v13  ;;  %v492_v31 = vmul.f32 1.442695, %v485_v26  ;;  %v441_v43 = vmul.f32 1.442695, %v437_v40  ;;  %v236_v26 = vld [vmem:[%s210_s25 + $0x8] sm:$0xff] }
 0x178   : > { %1125 = vpow2.f32 %v443_v14  ;;  %v624_v17 = vpop.xlane.xlu0 %623  ;;  %v627_v45 = vpop.xlane.xlu1 %626 }
 0x179   : > { %1127 = vpow2.f32 %v490_v25  ;;  %v630_v38 = vsub.f32 %v1269_v33, %v624_v17  ;;  %v631_v59 = vsub.f32 %v1271_v34, %v627_v45  ;;  %v1389_v17 = vld [vmem:[%s210_s25 + $0x18] sm:$0xff]  ;;  %v1393_v25 = vld [vmem:[%s210_s25] sm:$0xff] }
 0x17a   : > { %v1305_v5 = vpop.eup %1115  ;;  %1129 = vpow2.f32 %v492_v31  ;;  %v696_v23 = vrot.slane %v1389_v17, 4 }
 0x17b   : > { %500 = vrot.lane.b32.xlu1 %v1305_v5, %s1187_s22  ;;  %v1309_v6 = vpop.eup %1117  ;;  %v636_v41 = vmul.f32 1.442695, %v630_v38  ;;  %v638_v60 = vmul.f32 1.442695, %v631_v59 }
 0x17c   : > { %v564_v27 = vpop.xlane.xlu0 %563  ;;  %v567_v46 = vpop.xlane.xlu1 %566 }
 0x17d   : > { %v570_v30 = vsub.f32 %v1269_v33, %v564_v27  ;;  %v571_v48 = vsub.f32 %v1271_v34, %v567_v46  ;;  %v693_v27 = vrot.slane %v1393_v25, 4 }
 0x17f   : > { %586 = vrot.lane.b32.xlu1 %v1309_v6, %s1187_s22  ;;  %v576_v32 = vmul.f32 1.442695, %v570_v30 }
 0x180   : > { %v433_v39 = vpop.xlane.xlu0 %432 }
 0x181   : > { %1131 = vpow2.f32 %v576_v32  ;;  %v439_v42 = vsub.f32 %v1269_v33, %v433_v39  ;;  %v578_v33 = vmul.f32 1.442695, %v571_v48 }
 0x182   : > { %v1313_v7 = vpop.eup %1119  ;;  %1133 = vpow2.f32 %v636_v41 }
 0x183   : > { %584 = vrot.lane.b32.xlu0 %v1313_v7, %s1187_s22  ;;  %v1320_v18 = vpop.eup %1121  ;;  %v445_v44 = vmul.f32 1.442695, %v439_v42  ;;  %1135 = vpow2.f32 %v441_v43 }
 0x184   : > { %v1323_v20 = vpop.eup %1123  ;;  %v640_v24 = vsel %vm510_vm2, %v1320_v18, 0.0  ;;  %v436_v53 = vpop.xlane.xlu0 %435 }
 0x185   : > { %v1327_v22 = vpop.eup %1125  ;;  %v643_v28 = vsel %vm510_vm2, %v1323_v20, 0.0  ;;  %1137 = vpow2.f32 %v445_v44  ;;  %v440_v61 = vsub.f32 %v1271_v34, %v436_v53 }
 0x186   : > { %v452_v29 = vsel %vm424_vm5, %v1327_v22, 0.0  ;;  %v1335_v35 = vpop.eup %1127  ;;  %1139 = vpow2.f32 %v578_v33 }
 0x187   : > { %v1339_v36 = vpop.eup %1129  ;;  %1141 = vpow2.f32 %v638_v60  ;;  %v447_v62 = vmul.f32 1.442695, %v440_v61 }
 0x189   : > { %1143 = vpow2.f32 %v447_v62 }
 0x18e   : > { %v1343_v37 = vpop.eup %1131 }
 0x18f   : > { %v1350_v47 = vpop.eup %1133 }
 0x190   : > { %v1353_v49 = vpop.eup %1135  ;;  %v646_v50 = vsel %vm510_vm2, %v1350_v47, 0.0 }
 0x191   : > { %v449_v51 = vsel %vm424_vm5, %v1353_v49, 0.0 }
 0x192   : > { %v1357_v21 = vpop.eup %1137 }
 0x193   : > { %v455_v52 = vsel %vm424_vm5, %v1357_v21, 0.0  ;;  %v1364_v56 = vpop.eup %1139 }
 0x194   : > { %v1371_v63 = vpop.eup %1141 }
 0x195   : > { %v649_v1 = vsel %vm510_vm2, %v1371_v63, 0.0 }
 0x196   : > { %v1375_v2 = vpop.eup %1143 }
 0x197   : > { %v458_v8 = vsel %vm424_vm5, %v1375_v2, 0.0 }
 0x1a2   : > { %641 = vadd.xlane.f32.xlu0 %v640_v24  ;;  %v1108_v24 = vpack.i.bf16 %v696_v23, %v695_v19 }
 0x1a3   : > { %644 = vadd.xlane.f32.xlu1 %v643_v28  ;;  %v694_v28 = vrot.slane %v236_v26, 4 }
 0x1a6   : > { %453 = vadd.xlane.f32.xlu0 %v452_v29  ;;  %v1103_v29 = vpack.i.bf16 %v694_v28, %v693_v27 }
 0x1b4   : > { %502 = vrot.lane.b32.xlu1 %v1335_v35, %s1187_s22 }
 0x1b8   : > { %504 = vrot.lane.b32.xlu1 %v1339_v36, %s1187_s22 }
 0x1bc   : > { %588 = vrot.lane.b32.xlu0 %v1343_v37, %s1187_s22 }
 0x1db   : > { %647 = vadd.xlane.f32.xlu0 %v646_v50 }
 0x1dc   : > { %450 = vadd.xlane.f32.xlu1 %v449_v51 }
 0x1df   : > { %456 = vadd.xlane.f32.xlu0 %v455_v52 }
 0x1e9   : > { %v499_v54 = vpop.permute.xlu0 %498 }
 0x1ea   : > { %v511_v55 = vsel %vm510_vm2, %v499_v54, 0.0 }
 0x1eb   : > { %512 = vadd.xlane.f32.xlu0 %v511_v55 }
 0x1ed   : > { %590 = vrot.lane.b32.xlu1 %v1364_v56, %s1187_s22  ;;  %v501_v3 = vpop.permute.xlu1 %500 }
 0x1ee   : > { %v514_v9 = vsel %vm510_vm2, %v501_v3, 0.0  ;;  %v714_v3 = vsub.f32 0.0, %v236_v26 }
 0x1f1   : > { %v587_v34 = vpop.permute.xlu1 %586 }
 0x1f2   : > { %v599_v10 = vsel %vm424_vm5, %v587_v34, 0.0 }
 0x1f5   : > { %v585_v57 = vpop.permute.xlu0 %584 }
 0x1f6   : > { %v596_v58 = vsel %vm424_vm5, %v585_v57, 0.0 }
 0x1f7   : > { %597 = vadd.xlane.f32.xlu0 %v596_v58 }
 0x211   : > { %650 = vadd.xlane.f32.xlu1 %v649_v1  ;;  %v713_v1 = vsub.f32 0.0, %v1393_v25 }
 0x215   : > { %459 = vadd.xlane.f32.xlu1 %v458_v8 }
 0x219   : > { %515 = vadd.xlane.f32.xlu1 %v514_v9 }
 0x21d   : > { %600 = vadd.xlane.f32.xlu1 %v599_v10 }
 0x22b   : > { %v642_v30 = vpop.xlane.xlu0 %641 }
 0x22c   : > { %v645_v11 = vpop.xlane.xlu1 %644  ;;  %1145 = vrcp.f32 %v642_v30 }
 0x22d   : > { %1147 = vrcp.f32 %v645_v11 }
 0x22f   : > { %v1396_v31 = vpop.xlane.xlu0 %453 }
 0x230   : > { %v503_v12 = vpop.permute.xlu1 %502 }
 0x231   : > { %v517_v13 = vsel %vm510_vm2, %v503_v12, 0.0 }
 0x232   : > { %518 = vadd.xlane.f32.xlu1 %v517_v13 }
 0x233   : > { %v589_v38 = vpop.permute.xlu0 %588 }
 0x234   : > { %v505_v14 = vpop.permute.xlu1 %504  ;;  %v602_v42 = vsel %vm424_vm5, %v589_v38, 0.0 }
 0x235   : > { %v520_v15 = vsel %vm510_vm2, %v505_v14, 0.0 }
 0x236   : > { %521 = vadd.xlane.f32.xlu0 %v520_v15 }
 0x239   : > { %v1146_v44 = vpop.eup %1145 }
 0x23a   : > { %v653_v46 = vmul.f32 %v1146_v44, %v1320_v18  ;;  %v1148_v48 = vpop.eup %1147  ;;  %v715_v44 = vsub.f32 0.0, %v1387_v16 }
 0x23b   : > { %v655_v33 = vmul.f32 %v1148_v48, %v1323_v20 }
 0x23c   : > { %v664_v50 = vrot.slane %v653_v46, 4 }
 0x23d   : > { %v665_v51 = vrot.slane %v655_v33, 4 }
 0x243   : > { %1109 = vrot.lane.b32.xlu1 %v1108_v24, %s1188_s26 }
 0x24c   : > { %1104 = vrot.lane.b32.xlu0 %v1103_v29, %s1188_s26 }
 0x264   : > { %v648_v40 = vpop.xlane.xlu0 %647 }
 0x265   : > { %v1398_v32 = vpop.xlane.xlu1 %450 }
 0x268   : > { %v1402_v43 = vpop.xlane.xlu0 %456 }
 0x269   : > { %v591_v39 = vpop.permute.xlu1 %590 }
 0x26a   : > { %v605_v41 = vsel %vm424_vm5, %v591_v39, 0.0 }
 0x26b   : > { %606 = vadd.xlane.f32.xlu1 %v605_v41  ;;  %603 = vadd.xlane.f32.xlu0 %v602_v42 }
 0x274   : > { %v513_v45 = vpop.xlane.xlu0 %512 }
 0x275   : > { %1149 = vrcp.f32 %v513_v45 }
 0x27c   : > { %668 = vrot.lane.b32.xlu1 %v664_v50, %s1189_s27 }
 0x280   : > { %v598_v61 = vpop.xlane.xlu0 %597 }
 0x281   : > { %670 = vrot.lane.b32.xlu0 %v665_v51, %s1189_s27 }
 0x282   : > { %v1150_v52 = vpop.eup %1149 }
 0x283   : > { %v524_v53 = vmul.f32 %v1150_v52, %v1301_v4 }
 0x285   : > { %v535_v54 = vrot.slane %v524_v53, 4 }
 0x287   : > { %539 = vrot.lane.b32.xlu1 %v535_v54, %s1187_s22 }
 0x29a   : > { %v651_v55 = vpop.xlane.xlu1 %650 }
 0x29e   : > { %v1410_v57 = vpop.xlane.xlu1 %459 }
 0x2a2   : > { %v516_v18 = vpop.xlane.xlu1 %515 }
 0x2a3   : > { %1151 = vrcp.f32 %v516_v18 }
 0x2a4   : > { %1153 = vrcp.f32 %v648_v40 }
 0x2a6   : > { %v1414_v60 = vpop.xlane.xlu1 %600 }
 0x2b0   : > { %v1152_v58 = vpop.eup %1151 }
 0x2b1   : > { %v526_v20 = vmul.f32 %v1152_v58, %v1305_v5  ;;  %v1154_v15 = vpop.eup %1153 }
 0x2b2   : > { %v657_v30 = vmul.f32 %v1154_v15, %v1350_v47 }
 0x2b3   : > { %v536_v59 = vrot.slane %v526_v20, 4 }
 0x2b5   : > { %541 = vrot.lane.b32.xlu1 %v536_v59, %s1187_s22 }
 0x2bb   : > { %v519_v62 = vpop.xlane.xlu1 %518 }
 0x2bc   : > { %1155 = vrcp.f32 %v519_v62 }
 0x2bd   : > { %1157 = vrcp.f32 %v651_v55 }
 0x2bf   : > { %v522_v4 = vpop.xlane.xlu0 %521  ;;  %v1110_v47 = vpop.permute.xlu1 %1109 }
 0x2c0   : > { %1159 = vrcp.f32 %v522_v4  ;;  %v1111_v45 = vunpack.i.l.bf16 %v1110_v47 }
 0x2c1   : > { %1161 = vrcp.f32 %v1398_v32 }
 0x2c2   : > { %1163 = vrcp.f32 %v598_v61 }
 0x2c3   : > { %v1105_v8 = vpop.permute.xlu0 %1104  ;;  %1165 = vrcp.f32 %v1396_v31 }
 0x2c4   : > { %v1107_v9 = vunpack.i.h.bf16 %v1105_v8  ;;  %v1106_v34 = vunpack.i.l.bf16 %v1105_v8  ;;  %1167 = vrcp.f32 %v1414_v60 }
 0x2c5   : > { %1169 = vrcp.f32 %v1402_v43 }
 0x2c6   : > { %v710_v5 = vsel %vm239_vm1, %v236_v26, %v1107_v9  ;;  %v718_v10 = vsel %vm239_vm1, %v714_v3, %v1107_v9  ;;  %v709_v11 = vsel %vm239_vm1, %v1393_v25, %v1106_v34  ;;  %v717_v12 = vsel %vm239_vm1, %v713_v1, %v1106_v34 }
 0x2c7   : > { %v722_v13 = vsel %vm721_vm6, %v709_v11, %v717_v12  ;;  %v723_v14 = vsel %vm721_vm6, %v710_v5, %v718_v10 }
 0x2c8   : > { %v730_v19 = vpack.c.bf16 %v722_v13, %v722_v13  ;;  %v731_v23 = vpack.c.bf16 %v723_v14, %v723_v14 }
 0x2c9   : > { %v1156_v24 = vpop.eup %1155 }
 0x2ca   : > { %v528_v27 = vmul.f32 %v1156_v24, %v1335_v35  ;;  %v738_v28 = vsel %vm721_vm6, %v730_v19, 0  ;;  %v784_v26 = vsel %vm721_vm6, %v731_v23, 0  ;;  %v1158_v29 = vpop.eup %1157  ;;  %v666_v35 = vrot.slane %v657_v30, 4 }
 0x2cb   : > { %1067 = vmatpush3.bf16.msra.mxu0 %v738_v28  ;;  %1073 = vmatpush3.bf16.msra.mxu1 %v784_v26  ;;  %v659_v41 = vmul.f32 %v1158_v29, %v1371_v63  ;;  %v719_v63 = vsel %vm239_vm1, %v715_v44, %v1111_v45 }
 0x2cc   : > { %v537_v25 = vrot.slane %v528_v27, 4  ;;  %1078 = vmatprep.subr.bf16.mxu0 %v1185_v0  ;;  %1084 = vmatprep.subr.bf16.mxu1 %v1185_v0 }
 0x2cd   : > { %v1160_v38 = vpop.eup %1159  ;;  %v667_v42 = vrot.slane %v659_v41, 4 }
 0x2ce   : > { %543 = vrot.lane.b32.xlu0 %v537_v25, %s1187_s22  ;;  %v530_v39 = vmul.f32 %v1160_v38, %v1339_v36  ;;  %v711_v36 = vsel %vm239_vm1, %v1387_v16, %v1111_v45  ;;  %v1162_v48 = vpop.eup %1161 }
 0x2cf   : > { %v1164_v50 = vpop.eup %1163  ;;  %v724_v51 = vsel %vm721_vm6, %v711_v36, %v719_v63  ;;  %v462_v32 = vmul.f32 %v1162_v48, %v1353_v49  ;;  %v1112_v49 = vunpack.i.h.bf16 %v1110_v47 }
 0x2d0   : > { %v538_v40 = vrot.slane %v530_v39, 4  ;;  %v609_v52 = vmul.f32 %v1164_v50, %v1313_v7  ;;  %v732_v54 = vpack.c.bf16 %v724_v51, %v724_v51  ;;  %v716_v7 = vsub.f32 0.0, %v1389_v17  ;;  %v1166_v61 = vpop.eup %1165 }
 0x2d1   : > { %v1168_v62 = vpop.eup %1167  ;;  %v712_v4 = vsel %vm239_vm1, %v1389_v17, %v1112_v49  ;;  %v464_v9 = vmul.f32 %v1166_v61, %v1327_v22 }
 0x2d2   : > { %672 = vrot.lane.b32.xlu0 %v666_v35, %s1189_s27  ;;  %545 = vrot.lane.b32.xlu1 %v538_v40, %s1187_s22  ;;  %v830_v16 = vsel %vm721_vm6, %v732_v54, 0  ;;  %v720_v1 = vsel %vm239_vm1, %v716_v7, %v1112_v49  ;;  %v611_v8 = vmul.f32 %v1168_v62, %v1309_v6  ;;  %v1170_v6 = vpop.eup %1169 }
 0x2d3   : > { %v725_v31 = vsel %vm721_vm6, %v712_v4, %v720_v1  ;;  %v466_v15 = vmul.f32 %v1170_v6, %v1357_v21 }
 0x2d4   : > { %v733_v10 = vpack.c.bf16 %v725_v31, %v725_v31 }
 0x2d6   : > { %674 = vrot.lane.b32.xlu1 %v667_v42, %s1189_s27  ;;  %v876_v17 = vsel %vm721_vm6, %v733_v10, 0 }
 0x2f4   : > { %v607_v46 = vpop.xlane.xlu1 %606  ;;  %v604_v59 = vpop.xlane.xlu0 %603 }
 0x2f5   : > { %1171 = vrcp.f32 %v604_v59 }
 0x2f6   : > { %1173 = vrcp.f32 %v1410_v57 }
 0x2f7   : > { %1175 = vrcp.f32 %v607_v46 }
 0x2f8   : > { %v669_v33 = vpop.permute.xlu1 %668  ;;  %v671_v3 = vpop.permute.xlu0 %670 }
 0x2f9   : > { %v680_v55 = vadd.f32 %v669_v33, %v609_v52  ;;  %v681_v60 = vadd.f32 %v671_v3, %v611_v8 }
 0x2fc   : > { %v540_v53 = vpop.permute.xlu1 %539 }
 0x2fd   : > { %v551_v18 = vsub.f32 %v462_v32, %v540_v53 }
 0x2ff   : > { %v685_v58 = vsel %vm684_vm7, %v551_v18, %v680_v55 }
 0x300   : > { %v726_v20 = vpack.c.bf16 %v685_v58, %v685_v58 }
 0x302   : > { %1069 = vmatmul.mubr.msk.bf16.vlgmr.msra.gmra.mxu0 %vm239_vm1, %v726_v20  ;;  %v1172_v22 = vpop.eup %1171 }
 0x303   : > { %1079 = vmatpush3.bf16.msra.mxu0 %v830_v16  ;;  %1080 = vmatprep.mubr.msk.bf16.mxu0 %vm1186_vm0, %v1185_v0  ;;  %v1174_v14 = vpop.eup %1173  ;;  %v613_v19 = vmul.f32 %v1172_v22, %v1343_v37 }
 0x304   : > { %v1176_v23 = vpop.eup %1175  ;;  %v468_v43 = vmul.f32 %v1174_v14, %v1375_v2 }
 0x305   : > { %v615_v57 = vmul.f32 %v1176_v23, %v1364_v56 }
 0x327   : > { %v542_v34 = vpop.permute.xlu1 %541 }
 0x328   : > { %v552_v5 = vsub.f32 %v464_v9, %v542_v34 }
 0x32a   : > { %v686_v11 = vsel %vm684_vm7, %v552_v5, %v681_v60 }
 0x32b   : > { %v727_v12 = vpack.c.bf16 %v686_v11, %v686_v11 }
 0x32d   : > { %1075 = vmatmul.mubr.msk.bf16.vlgmr.msra.gmra.mxu1 %vm239_vm1, %v727_v12 }
 0x32e   : > { %1085 = vmatpush3.bf16.msra.mxu1 %v876_v17  ;;  %1086 = vmatprep.mubr.msk.bf16.mxu1 %vm1186_vm0, %v1185_v0 }
 0x340   : > { %v544_v13 = vpop.permute.xlu0 %543 }
 0x341   : > { %v553_v28 = vsub.f32 %v466_v15, %v544_v13 }
 0x344   : > { %v546_v24 = vpop.permute.xlu1 %545  ;;  %v673_v27 = vpop.permute.xlu0 %672 }
 0x345   : > { %v682_v0 = vadd.f32 %v673_v27, %v613_v19  ;;  %v554_v30 = vsub.f32 %v468_v43, %v546_v24 }
 0x347   : > { %v687_v26 = vsel %vm684_vm7, %v553_v28, %v682_v0 }
 0x348   : > { %v728_v29 = vpack.c.bf16 %v687_v26, %v687_v26  ;;  %v675_v25 = vpop.permute.xlu1 %674 }
 0x349   : > { %v683_v38 = vadd.f32 %v675_v25, %v615_v57 }
 0x34a   : > { %1081 = vmatmul.mubr.msk.bf16.vlgmr.msra.gmra.mxu0 %vm239_vm1, %v728_v29 }
 0x34b   : > { %v688_v37 = vsel %vm684_vm7, %v554_v30, %v683_v38 }
 0x34c   : > { %v729_v21 = vpack.c.bf16 %v688_v37, %v688_v37 }
 0x34e   : > { %1087 = vmatmul.mubr.msk.bf16.vlgmr.msra.gmra.mxu1 %vm239_vm1, %v729_v21 }
 0x3c2   : > { %v774_v2 = vpop.f32.mrf.mxu0 }
 0x3c3   : > { %919 = vst.msk [vmem:[%s216_s4] sm:$0xf] %vm918_vm8, %v774_v2 }
 0x3c4   : > { %v1070_v56 = vpop.f32.mrf.mxu0 }
 0x3c6   : > { %v777_v39 = vpop.f32.mrf.mxu0 }
 0x3c8   : > { %v1071_v35 = vpop.f32.mrf.mxu0 }
 0x3ed   : > { %v820_v40 = vpop.f32.mrf.mxu1 }
 0x3ee   : > { %920 = vst.msk [vmem:[%s216_s4 + $0x4] sm:$0xf] %vm918_vm8, %v820_v40 }
 0x3ef   : > { %v1076_v41 = vpop.f32.mrf.mxu1 }
 0x3f1   : > { %v823_v42 = vpop.f32.mrf.mxu1 }
 0x3f3   : > { %v1077_v47 = vpop.f32.mrf.mxu1 }
 0x40a   : > { %v866_v44 = vpop.f32.mrf.mxu0 }
 0x40b   : > { %921 = vst.msk [vmem:[%s216_s4 + $0x8] sm:$0xf] %vm918_vm8, %v866_v44 }
 0x40c   : > { %v1082_v45 = vpop.f32.mrf.mxu0 }
 0x40e   : > { %v869_v46 = vpop.f32.mrf.mxu0  ;;  %v912_v36 = vpop.f32.mrf.mxu1 }
 0x40f   : > { %922 = vst.msk [vmem:[%s216_s4 + $0xc] sm:$0xf] %vm918_vm8, %v912_v36 }
 0x410   : > { %v1083_v63 = vpop.f32.mrf.mxu0  ;;  %v1088_v48 = vpop.f32.mrf.mxu1 }
 0x412   : > { %v915_v50 = vpop.f32.mrf.mxu1 }
 0x414   : > { %v1089_v33 = vpop.f32.mrf.mxu1 }
 0x415 PF: > { %s13_s12 = sadd.s32 1, %s1183_s12  }
 0x416   : > { %p10_p4 = scmp.ge.s32.totalorder %s13_s12, 4  }
 0x418   :  { %12 = sbr.rel (!%p10_p4) target bundleno = 1 (0x1), region = 68 }

// kernel: transformer_model_forward.28
= control target key start
LH: loop header
LB: loop body
LE: loop exit
PB: predicated region body
PF: predicated region fallthrough
CT: control target
= control target key end

     0   :  { %vm205_vm0 = vcmask 261120   ;;  %vm258_vm1 = vcmask 523264   ;;  %s436_s1 = inlined_call_operand.vmem [shape: bf16[256,64], index: 1, kind: input, shape index: {}]   ;;  %s437_s0 = inlined_call_operand.vmem [shape: f32[8,256], index: 0, kind: input, shape index: {}]   ;;  %s438_s2 = inlined_call_operand.vmem [shape: f32[1,64], index: 2, kind: input, shape index: {}]   ;;  %s439_s3 = inlined_call_operand.vmem [shape: f32[8,64], index: 3, kind: input, shape index: {}]   ;;  %s440_s4 = inlined_call_operand.vmem [shape: f32[1,64], index: 4, kind: input, shape index: {}]   ;;  %s441_s5 = inlined_call_operand.vmem [shape: f32[1,64], index: 5, kind: input, shape index: {}]   ;;  %s442_s6 = inlined_call_operand.vmem [shape: f32[8,64], index: 6, kind: output, shape index: {}]  }
   0x1   :  { %v306_v0 = vld [vmem:[%s436_s1 + $0x78] sm:$0xff]   ;;  %v308_v2 = vld [vmem:[%s436_s1 + $0x70] sm:$0xff]   ;;  %v310_v4 = vld [vmem:[%s436_s1 + $0x68] sm:$0xff]  }
   0x2   :  { %v307_v1 = vld [vmem:[%s436_s1 + $0x38] sm:$0xff]   ;;  %283 = vmatprep.subr.bf16.mxu0 %v306_v0  ;;  %v309_v3 = vld [vmem:[%s436_s1 + $0x30] sm:$0xff]   ;;  %v311_v5 = vld [vmem:[%s436_s1 + $0x28] sm:$0xff]  }
   0x3   :  { %284 = vmatpush3.bf16.msra.mxu0 %v307_v1  ;;  %v312_v6 = vld [vmem:[%s436_s1 + $0x60] sm:$0xff]   ;;  %v314_v8 = vld [vmem:[%s436_s1 + $0x58] sm:$0xff]   ;;  %v316_v10 = vld [vmem:[%s436_s1 + $0x50] sm:$0xff]  }
   0x4   :  { %285 = vmatprep.subr.bf16.mxu0 %v308_v2  ;;  %v313_v7 = vld [vmem:[%s436_s1 + $0x20] sm:$0xff]   ;;  %v315_v9 = vld [vmem:[%s436_s1 + $0x18] sm:$0xff]   ;;  %v57_v11 = vld [vmem:[%s437_s0 + $0x8] sm:$0xff] }
   0x5   :  { %v59_v12 = vpack.c.bf16 %v57_v11, %v57_v11  ;;  %v317_v13 = vld [vmem:[%s436_s1 + $0x10] sm:$0xff]   ;;  %v318_v14 = vld [vmem:[%s436_s1 + $0x48] sm:$0xff]   ;;  %v320_v16 = vld [vmem:[%s436_s1 + $0x40] sm:$0xff]  }
   0x6   :  { %v319_v15 = vld [vmem:[%s436_s1 + $0x8] sm:$0xff]   ;;  %v321_v17 = vld [vmem:[%s436_s1] sm:$0xff]  }
   0x7   :  { %286 = vmatpush3.bf16.msra.mxu0 %v309_v3  ;;  %195 = vmatprep.mubr.bf16.mxu0 %v59_v12  ;;  %v56_v18 = vld [vmem:[%s437_s0] sm:$0xff]  ;;  %s326_s0 = smov 96  }
   0x8   :  { %287 = vmatprep.subr.bf16.mxu0 %v310_v4  ;;  %v58_v19 = vpack.c.bf16 %v56_v18, %v56_v18  ;;  %v264_v21 = vld [vmem:[%s438_s2] ss:$0 sm:$0xff] }
   0x9   :  { %v203_v24 = vld [vmem:[%s439_s3] sm:$0xff] }
   0xa   :  { %v281_v52 = vld [vmem:[%s440_s4] ss:$0 sm:$0xff] }
   0xb   :  { %288 = vmatpush3.bf16.msra.mxu0 %v311_v5  ;;  %v282_v54 = vld [vmem:[%s441_s5] ss:$0 sm:$0xff] }
   0xc   :  { %289 = vmatprep.subr.bf16.mxu0 %v312_v6 }
   0xf   :  { %290 = vmatpush3.bf16.msra.mxu0 %v313_v7 }
  0x10   :  { %291 = vmatprep.subr.bf16.mxu0 %v314_v8 }
  0x13   :  { %292 = vmatpush3.bf16.msra.mxu0 %v315_v9 }
  0x14   :  { %293 = vmatprep.subr.bf16.mxu0 %v316_v10 }
  0x17   :  { %294 = vmatpush3.bf16.msra.mxu0 %v317_v13 }
  0x18   :  { %295 = vmatprep.subr.bf16.mxu0 %v318_v14 }
  0x1b   :  { %296 = vmatpush3.bf16.msra.mxu0 %v319_v15 }
  0x1c   :  { %297 = vmatprep.subr.bf16.mxu0 %v320_v16 }
  0x1f   :  { %298 = vmatpush3.bf16.msra.mxu0 %v321_v17 }
  0x22   :  { %196 = vmatmul.mubr.bf16.vlgmr.msra.gmra.mxu0 %v58_v19 }
  0xe2   :  { %v299_v20 = vpop.f32.mrf.mxu0 }
  0xe4   :  { %v300_v22 = vpop.f32.mrf.mxu0 }
  0xe5   :  { %v301_v23 = vadd.f32 %v300_v22, %v299_v20 }
  0xe6   :  { %v302_v25 = vpop.f32.mrf.mxu0 }
  0xe7   :  { %v198_v26 = vadd.f32 %v301_v23, %v264_v21 }
  0xe8   :  { %v303_v27 = vpop.f32.mrf.mxu0 }
  0xe9   :  { %v204_v28 = vadd.f32 %v203_v24, %v198_v26 }
  0xeb   :  { %221 = vrot.lane.b32.xlu0 %v204_v28, %s326_s0  ;;  %v206_v29 = vsel %vm205_vm0, %v204_v28, 0.0 }
  0xec   :  { %207 = vadd.xlane.f32.xlu1 %v206_v29 }
 0x15d   :  { %v222_v30 = vpop.permute.xlu0 %221 }
 0x15e   :  { %v224_v31 = vsel %vm205_vm0, %v222_v30, 0.0 }
 0x15f   :  { %225 = vadd.xlane.f32.xlu0 %v224_v31 }
 0x175   :  { %v208_v36 = vpop.xlane.xlu1 %207 }
 0x176   :  { %v210_v37 = vmul.f32 0.03125, %v208_v36 }
 0x178   :  { %v211_v38 = vsub.f32 %v204_v28, %v210_v37 }
 0x17a   :  { %v212_v39 = vmul.f32 %v211_v38, %v211_v38 }
 0x17c   :  { %v213_v40 = vsel %vm205_vm0, %v212_v39, 0.0 }
 0x1e8   :  { %v226_v32 = vpop.xlane.xlu0 %225 }
 0x1e9   :  { %v227_v33 = vmul.f32 0.03125, %v226_v32 }
 0x1eb   :  { %v228_v34 = vsub.f32 %v204_v28, %v227_v33 }
 0x1ed   :  { %v229_v35 = vmul.f32 %v228_v34, %v228_v34 }
 0x1ef   :  { %231 = vrot.lane.b32.xlu1 %v229_v35, %s326_s0 }
 0x213   :  { %214 = vadd.xlane.f32.xlu1 %v213_v40 }
 0x261   :  { %v232_v41 = vpop.permute.xlu1 %231 }
 0x262   :  { %v234_v42 = vsel %vm205_vm0, %v232_v41, 0.0 }
 0x263   :  { %235 = vadd.xlane.f32.xlu0 %v234_v42 }
 0x29c   :  { %v215_v43 = vpop.xlane.xlu1 %214 }
 0x29d   :  { %v216_v44 = vmul.f32 0.03125, %v215_v43 }
 0x29f   :  { %v217_v45 = vadd.f32 1e-05, %v216_v44 }
 0x2a1   :  { %322 = vrsqrt.f32 %v217_v45 }
 0x2ae   :  { %v323_v49 = vpop.eup %322 }
 0x2af   :  { %v219_v51 = vmul.f32 %v323_v49, %v211_v38 }
 0x2ec   :  { %v236_v46 = vpop.xlane.xlu0 %235 }
 0x2ed   :  { %v237_v47 = vmul.f32 0.03125, %v236_v46 }
 0x2ef   :  { %v238_v48 = vadd.f32 1e-05, %v237_v47 }
 0x2f1   :  { %324 = vrsqrt.f32 %v238_v48 }
 0x2fe   :  { %v325_v50 = vpop.eup %324 }
 0x2ff   :  { %v240_v53 = vmul.f32 %v325_v50, %v228_v34 }
 0x301   :  { %v241_v55 = vsel %vm205_vm0, %v219_v51, %v240_v53 }
 0x302   :  { %v249_v56 = vmul.f32 %v281_v52, %v241_v55 }
 0x304   :  { %v257_v57 = vadd.f32 %v282_v54, %v249_v56 }
 0x306   :  { %259 = vst.msk [vmem:[%s442_s6] sm:$0xff] %vm258_vm1, %v257_v57 }

// kernel: transformer_model_forward.35
= control target key start
LH: loop header
LB: loop body
LE: loop exit
PB: predicated region body
PF: predicated region fallthrough
CT: control target
= control target key end

     0   :  { %v143_v1 = vmov 0.0   ;;  %vm144_vm0 = vmmov 0   ;;  %s181_s0 = inlined_call_operand.vmem [shape: f32[8,32], index: 0, kind: input, shape index: {}]   ;;  %s182_s1 = inlined_call_operand.vmem [shape: bf16[32,16], index: 1, kind: input, shape index: {}]   ;;  %s183_s2 = inlined_call_operand.vmem [shape: f32[1,16], index: 2, kind: input, shape index: {}]   ;;  %s184_s3 = inlined_call_operand.hbm [shape: f32[8,16], index: 3, kind: output, shape index: {}]  }
   0x1   :  { %v119_v0 = vld [vmem:[%s182_s1 + $0x8] sm:$0xff]   ;;  %108 = vmatprep.subr.bf16.mxu0 %v143_v1  ;;  %v120_v2 = vld [vmem:[%s182_s1] sm:$0xff]   ;;  %112 = vmatprep.mubr.msk.bf16.mxu0 %vm144_vm0, %v143_v1 }
   0x2   :  { %109 = vmatpush3.bf16.msra.mxu0 %v119_v0  ;;  %v20_v3 = vld [vmem:[%s181_s0] sm:$0xff] }
   0x3   :  { %8 = vsyncpa [#allocation3], 0  ;;  %110 = vmatprep.subr.bf16.mxu0 %v143_v1  ;;  %v21_v4 = vpack.c.bf16 %v20_v3, %v20_v3  ;;  %vm41_vm1 = vcmask 261120   ;;  %v101_v5 = vld [vmem:[%s183_s2] ss:$0 sm:$0xff]  ;;  %s145_s20 = smov [#allocation2]  }
   0x4   :  { %s93_s21 = sshll.u32 %s145_s20, 4  ;;  %vm85_vm2 = vcmask 130048   ;;  %s94_s21 = int_to_ptr.vmem [resolvable:$true] %s93_s21 }
   0x5   :  { %s121_s0 = scalar_lea.vmem %s94_s21, 128  ;;  %p126_p1 = scmp.lt.s32.totalorder %s94_s21, %s94_s21 }
   0x6   :  { %111 = vmatpush3.bf16.msra.mxu0 %v120_v2  ;;  %p122_p0 = scmp.ne.s32.totalorder %s94_s21, %s121_s0  ;;  %p127_p2 = scmp.lt.s32.totalorder %s121_s0, %s121_s0 }
   0x8   :  { %p128_p3 = por %p127_p2, %p126_p1 }
   0x9   :  { %113 = vmatmul.mubr.msk.bf16.vlgmr.msra.gmra.mxu0 %vm41_vm1, %v21_v4 }
   0xa   :  { %p129_p4 = pnand %p128_p3, %p122_p0 }
  0xc9   :  { %v79_v6 = vpop.f32.mrf.mxu0 }
  0xca   :  { %v80_v7 = vadd.f32 %v101_v5, %v79_v6 }
  0xcb   :  { %v114_v8 = vpop.f32.mrf.mxu0 }
  0xcc   :  { %86 = vst.msk [vmem:[#allocation2] sm:$0xff] %vm85_vm2, %v80_v7 }
  0xcd   :  { %v82_v9 = vpop.f32.mrf.mxu0 }
  0xce   :  { %132 = shalt.err (!%p129_p4)
}
  0xcf   :  { %96 = dma.vmem_to_hbm [thread:$0]  %s94_s21, 128, %s184_s3, [#allocation3]   ;;  %v115_v10 = vpop.f32.mrf.mxu0 }
  0xd0   :  { %141 = dma.done.wait [#allocation3], 128  }
  0xd1   :  { %142 = vsyncadd [#allocation3], 4294967168 }
  0xd2   :  { %100 = vsyncpa [#allocation3], 1 }

// kernel: transformer_model_forward.34
= control target key start
LH: loop header
LB: loop body
LE: loop exit
PB: predicated region body
PF: predicated region fallthrough
CT: control target
= control target key end

     0   :  { %v136_v0 = vmov 0.0   ;;  %vm137_vm0 = vmmov 0   ;;  %vm56_vm1 = vcmask 523264   ;;  %vm101_vm2 = vcmask 261120   ;;  %s179_s1 = inlined_call_operand.vmem [shape: bf16[64,32], index: 1, kind: input, shape index: {}]   ;;  %s180_s0 = inlined_call_operand.vmem [shape: f32[8,64], index: 0, kind: input, shape index: {}]   ;;  %s181_s2 = inlined_call_operand.vmem [shape: f32[1,32], index: 2, kind: input, shape index: {}]   ;;  %s182_s3 = inlined_call_operand.vmem [shape: f32[8,32], index: 3, kind: output, shape index: {}]  }
   0x1   :  { %118 = vmatprep.subr.bf16.mxu0 %v136_v0  ;;  %v132_v1 = vld [vmem:[%s179_s1 + $0x18] sm:$0xff]   ;;  %126 = vmatprep.mubr.msk.bf16.mxu0 %vm137_vm0, %v136_v0  ;;  %v133_v2 = vld [vmem:[%s179_s1 + $0x10] sm:$0xff]   ;;  %v134_v3 = vld [vmem:[%s179_s1 + $0x8] sm:$0xff]  }
   0x2   :  { %119 = vmatpush3.bf16.msra.mxu0 %v132_v1  ;;  %v135_v4 = vld [vmem:[%s179_s1] sm:$0xff]  }
   0x3   :  { %120 = vmatprep.subr.bf16.mxu0 %v136_v0  ;;  %v23_v5 = vld [vmem:[%s180_s0] sm:$0xff] }
   0x4   :  { %v24_v6 = vpack.c.bf16 %v23_v5, %v23_v5  ;;  %v107_v7 = vld [vmem:[%s181_s2] ss:$0 sm:$0xff] }
   0x6   :  { %121 = vmatpush3.bf16.msra.mxu0 %v133_v2 }
   0x7   :  { %122 = vmatprep.subr.bf16.mxu0 %v136_v0 }
   0xa   :  { %123 = vmatpush3.bf16.msra.mxu0 %v134_v3 }
   0xb   :  { %124 = vmatprep.subr.bf16.mxu0 %v136_v0 }
   0xe   :  { %125 = vmatpush3.bf16.msra.mxu0 %v135_v4 }
  0x11   :  { %127 = vmatmul.mubr.msk.bf16.vlgmr.msra.gmra.mxu0 %vm56_vm1, %v24_v6 }
  0xd1   :  { %v94_v8 = vpop.f32.mrf.mxu0 }
  0xd2   :  { %v95_v9 = vadd.f32 %v107_v7, %v94_v8 }
  0xd3   :  { %v128_v10 = vpop.f32.mrf.mxu0 }
  0xd4   :  { %v100_v11 = vmax.f32 %v95_v9, 0.0 }
  0xd5   :  { %v97_v12 = vpop.f32.mrf.mxu0 }
  0xd6   :  { %102 = vst.msk [vmem:[%s182_s3] sm:$0xff] %vm101_vm2, %v100_v11 }
  0xd7   :  { %v129_v13 = vpop.f32.mrf.mxu0 }

</bundles_post_ra>
